<compile_context>
chip_gen: v7x
topology: tpu7x:2x2x1
jax: 0.10.0
libtpu: 0.0.40
codegen_flags: <defaults>
</compile_context>

<pallas_src>
import jax
import jax.numpy as jnp
from jax import lax
from jax.experimental import pallas as pl
from jax.experimental.pallas import tpu as pltpu


def bigru_kernel(x_ref, len_ref,
                 wi_ref, bi_ref,
                 whf_ref, whb_ref,
                 bhnf_ref, bhnb_ref,
                 out_ref, hid_ref,
                 gi_ref):
    """Bidirectional GRU over one batch tile.

    x_ref:    (T, Bb, H)   embedded inputs (matmul dtype, VMEM)
    len_ref:  (Bb, 1)      int32 valid lengths
    wi_ref:   (H, 6H)      fused input-proj weights [W_ih_fwd | W_ih_bwd],
                           pre-transposed, gate order (r, z, n) per direction
    bi_ref:   (1, 6H)      fused input-proj bias (r/z hidden biases folded in)
    wh*_ref:  (H, 3H)      recurrent weights (fwd / bwd)
    bhn*_ref: (1, H)       hidden bias of the n gate (kept separate; it is
                           multiplied by r inside the cell)
    out_ref:  (T, Bb, H)   fwd + bwd outputs (padded positions are 0), f32
    hid_ref:  (2, Bb, H)   final hidden states [fwd, bwd], f32
    gi_ref:   (T, Bb, 6H)  scratch: hoisted fused input projections (mx dtype)
    """
    T, B, H = x_ref.shape
    H3 = 3 * H
    mx = whf_ref.dtype                      # MXU dtype (bf16 or f32)
    prec = lax.Precision.HIGHEST if mx == jnp.float32 else None
    lens = len_ref[...]                     # (Bb, 1) int32

    # ---- fused hoisted input projection: ONE (T*Bb, H) x (H, 6H) MXU pass --
    x2 = x_ref[...].reshape(T * B, H).astype(mx)
    gi = jnp.dot(x2, wi_ref[...], preferred_element_type=jnp.float32,
                 precision=prec) + bi_ref[...]
    gi_ref[...] = gi.astype(mx).reshape(T, B, 6 * H)

    # Pre-broadcast the n-gate hidden biases once (JAX does not CSE
    # broadcast_in_dim -> never do this inside the loop).
    bhnf = jnp.broadcast_to(bhnf_ref[...], (B, H))
    bhnb = jnp.broadcast_to(bhnb_ref[...], (B, H))

    # Recurrent weights stay resident across the serial time loop.
    whf = whf_ref[...]
    whb = whb_ref[...]

    # Both directions accumulate into out_ref; zero it once.
    out_ref[...] = jnp.zeros_like(out_ref)

    def gates(gi_t, gh, bhn, h_prev):
        # PyTorch GRU cell, gate order (r, z, n).  r/z biases already in gi_t.
        r = jax.nn.sigmoid(gi_t[:, :H] + gh[:, :H])
        z = jax.nn.sigmoid(gi_t[:, H:2 * H] + gh[:, H:2 * H])
        n = jnp.tanh(gi_t[:, 2 * H:] + r * (gh[:, 2 * H:] + bhn))
        return (1.0 - z) * n + z * h_prev

    # ---- interleaved forward (time t) / backward (time T-1-t) recurrence ---
    def body(s, carry):
        h_f, h_b = carry
        t = s
        rt = T - 1 - s
        # Two independent recurrent matmuls issued back-to-back so MXU / EUP /
        # VPU slots of the two chains can overlap.
        # TODO(synk): for very long sequences keep these matmuls in f32 to
        # avoid compounding bf16 rounding through the recurrence.
        gh_f = jnp.dot(h_f.astype(mx), whf, preferred_element_type=jnp.float32,
                       precision=prec)
        gh_b = jnp.dot(h_b.astype(mx), whb, preferred_element_type=jnp.float32,
                       precision=prec)
        gi_f = gi_ref[t, :, :H3].astype(jnp.float32)
        gi_b = gi_ref[rt, :, H3:].astype(jnp.float32)
        hf_new = gates(gi_f, gh_f, bhnf, h_f)
        hb_new = gates(gi_b, gh_b, bhnb, h_b)

        valid_f = t < lens                                  # (Bb, 1) bool
        valid_b = rt < lens
        # Each time index receives exactly one fwd and one bwd contribution.
        out_ref[t] = out_ref[t] + jnp.where(valid_f, hf_new, 0.0)
        out_ref[rt] = out_ref[rt] + jnp.where(valid_b, hb_new, 0.0)

        # fwd holds its state past L_b; bwd stays 0 until it enters the valid
        # range (i.e. starts at t = L_b - 1 with zero state).
        return (jnp.where(valid_f, hf_new, h_f),
                jnp.where(valid_b, hb_new, h_b))

    h0 = jnp.zeros((B, H), jnp.float32)
    h_f, h_b = lax.fori_loop(0, T, body, (h0, h0))
    hid_ref[0] = h_f
    hid_ref[1] = h_b


def _round_up(x, m):
    return ((x + m - 1) // m) * m


def encoder_forward(input_seq, input_lengths, emb_table,
                    wih_f, whh_f, bih_f, bhh_f,
                    wih_b, whh_b, bih_b, bhh_b,
                    *, block_b=128, matmul_dtype=jnp.bfloat16):
    """Equivalent of EncoderRNN.forward(input_seq, input_lengths, hidden=None)."""
    H = emb_table.shape[1]
    # Activations carried in the matmul dtype: the x block is only consumed by
    # MXU matmuls, so f32 storage would double HBM DMA and VMEM for nothing.
    # TODO(synk): fuse the embedding gather into the kernel (scalar-prefetched
    # row gather of input_seq) to avoid the (T,B,H) HBM round trip on v5e.
    embedded = jnp.take(emb_table, input_seq, axis=0).astype(matmul_dtype)
    T, B, _ = embedded.shape
    lens = input_lengths.astype(jnp.int32).reshape(B, 1)

    # --- weight prep (PyTorch layout: wih/whh (3H,H); bih/bhh (3H,)) --------
    def prep(wih, whh, bih, bhh):
        wi = wih.T.astype(matmul_dtype)                      # (H, 3H)
        wh = whh.T.astype(matmul_dtype)                      # (H, 3H)
        # r/z hidden biases fold fully into the hoisted input projection; the
        # n-gate hidden bias stays separate (multiplied by r in the cell).
        bi = jnp.concatenate([bih[:2 * H] + bhh[:2 * H], bih[2 * H:]]
                             ).reshape(1, 3 * H).astype(jnp.float32)
        bhn = bhh[2 * H:].reshape(1, H).astype(jnp.float32)
        return wi, wh, bi, bhn

    wif, whf, bif, bhnf = prep(wih_f, whh_f, bih_f, bhh_f)
    wib, whb, bib, bhnb = prep(wih_b, whh_b, bih_b, bhh_b)
    # Fuse the two input projections into one (H, 6H) matmul.
    wi_cat = jnp.concatenate([wif, wib], axis=1)             # (H, 6H)
    bi_cat = jnp.concatenate([bif, bib], axis=1)             # (1, 6H)

    # --- batch-tile selection & VMEM budgeting -------------------------------
    mxb = jnp.dtype(matmul_dtype).itemsize

    def footprint(bb, weight_bufs):
        x_blk = T * bb * H * mxb * 2                 # input block, double buffered
        out_blk = T * bb * H * 4 * 2                 # f32 output block
        hid_blk = 2 * bb * H * 4 * 2
        gi_blk = T * bb * 6 * H * mxb                # hoisted-GI scratch
        w_blk = (6 * H * H + 2 * 3 * H * H) * mxb * weight_bufs
        b_blk = (6 * H + 2 * H) * 4 * weight_bufs
        len_blk = bb * 4 * 2
        return x_blk + out_blk + hid_blk + gi_blk + w_blk + b_blk + len_blk

    try:
        info = pltpu.get_tpu_info()
        vmem_cap = int(getattr(info, "vmem_capacity_bytes", 64 << 20))
    except Exception:                                 # interpret mode / query fail
        vmem_cap = 64 << 20                           # conservative (v7x per-TC)
    budget = (vmem_cap * 7) // 8                      # headroom for compiler scratch

    B8 = _round_up(B, 8)
    bb = max(8, min((block_b // 8) * 8, B8))
    # Keep >= 2 grid blocks whenever the batch allows it so dual-TC parts
    # (v7x) can shard the "parallel" axis across TensorCores.
    if B8 // bb < 2 and B8 >= 16:
        bb = max(8, ((B8 // 2) // 8) * 8)
    # Shrink the tile until the per-block VMEM footprint fits the budget.
    # (Past Bb~64 the interleaved fwd/bwd gate temporaries may also start
    # spilling vregs; the grid covers the remaining batch either way.)
    while bb > 8 and footprint(bb, 2) > budget:
        bb = max(8, ((bb // 2) // 8) * 8)
    B_pad = _round_up(B8, bb)
    nb = B_pad // bb

    if B_pad != B:
        # Padded rows get length 0 => masked everywhere => zero outputs/hidden.
        embedded = jnp.pad(embedded, ((0, 0), (0, B_pad - B), (0, 0)))
        lens = jnp.pad(lens, ((0, B_pad - B), (0, 0)))

    def build(weight_bufs):
        if weight_bufs == 1:
            # Grid-invariant operands (constant index_map): single-buffer them
            # to reclaim one full copy of every weight for bigger batch tiles.
            def rep(shape):
                return pl.BlockSpec(shape, lambda b: (0, 0),
                                    pipeline_mode=pl.Buffered(buffer_count=1))
        else:
            def rep(shape):
                return pl.BlockSpec(shape, lambda b: (0, 0))

        grid_spec = pltpu.PrefetchScalarGridSpec(
            num_scalar_prefetch=0,
            grid=(nb,),
            in_specs=[
                pl.BlockSpec((T, bb, H), lambda b: (0, b, 0)),   # embedded
                pl.BlockSpec((bb, 1), lambda b: (b, 0)),         # lengths
                rep((H, 6 * H)), rep((1, 6 * H)),                # fused W_ih / bias
                rep((H, 3 * H)), rep((H, 3 * H)),                # W_hh fwd / bwd
                rep((1, H)), rep((1, H)),                        # n-gate hidden biases
            ],
            out_specs=(
                pl.BlockSpec((T, bb, H), lambda b: (0, b, 0)),   # outputs
                pl.BlockSpec((2, bb, H), lambda b: (0, b, 0)),   # hidden
            ),
            scratch_shapes=[
                pltpu.VMEM((T, bb, 6 * H), matmul_dtype),        # hoisted GI
            ],
        )
        fp = footprint(bb, weight_bufs)
        vmem_limit = int(min(budget, max((fp * 3) // 2 + (4 << 20), 32 << 20)))
        return pl.pallas_call(
            bigru_kernel,
            out_shape=(jax.ShapeDtypeStruct((T, B_pad, H), jnp.float32),
                       jax.ShapeDtypeStruct((2, B_pad, H), jnp.float32)),
            grid_spec=grid_spec,
            compiler_params=pltpu.CompilerParams(
                dimension_semantics=("parallel",),
                vmem_limit_bytes=vmem_limit),
        )

    args = (embedded, lens, wi_cat, bi_cat, whf, whb, bhnf, bhnb)
    try:
        outputs, hidden = build(weight_bufs=1)(*args)
        jax.block_until_ready((outputs, hidden))
    except Exception:
        # pl.Buffered(1) not supported by this Pallas build: fall back to the
        # default double-buffered replicated weights.
        outputs, hidden = build(weight_bufs=2)(*args)

    if B_pad != B:
        outputs = outputs[:, :B]
        hidden = hidden[:, :B]
    return outputs, hidden


# ---- pure-JAX f32 reference (same packed-sequence semantics) ----------------
def ref_forward(embedded, lengths,
                wih_f, whh_f, bih_f, bhh_f,
                wih_b, whh_b, bih_b, bhh_b):
    T, B, H = embedded.shape
    lens = lengths.astype(jnp.int32).reshape(B, 1)

    def cell(x_t, h, wih, whh, bih, bhh):
        gi = x_t @ wih.T + bih
        gh = h @ whh.T + bhh
        i_r, i_z, i_n = jnp.split(gi, 3, axis=1)
        h_r, h_z, h_n = jnp.split(gh, 3, axis=1)
        r = jax.nn.sigmoid(i_r + h_r)
        z = jax.nn.sigmoid(i_z + h_z)
        n = jnp.tanh(i_n + r * h_n)
        return (1.0 - z) * n + z * h

    h = jnp.zeros((B, H), jnp.float32)
    out_f = []
    for t in range(T):
        hn = cell(embedded[t], h, wih_f, whh_f, bih_f, bhh_f)
        valid = t < lens
        out_f.append(jnp.where(valid, hn, 0.0))
        h = jnp.where(valid, hn, h)
    hid_f = h

    h = jnp.zeros((B, H), jnp.float32)
    out_b = [None] * T
    for t in range(T - 1, -1, -1):
        hn = cell(embedded[t], h, wih_b, whh_b, bih_b, bhh_b)
        valid = t < lens
        out_b[t] = jnp.where(valid, hn, 0.0)
        h = jnp.where(valid, hn, h)
    hid_b = h

    outputs = jnp.stack(out_f) + jnp.stack(out_b)
    hidden = jnp.stack([hid_f, hid_b])
    return outputs, hidden


if __name__ == "__main__":
    # seq_len, batch, hidden, vocab.  H multiple of 128 (lane-dense), batch is
    # padded/tiled to sublane-dense multiples of 8 with >= 2 grid blocks.
    T, B, H, V = 8, 16, 128, 64
    key = jax.random.PRNGKey(0)
    ks = jax.random.split(key, 10)
    scale = 1.0 / (H ** 0.5)

    def u(k, shape):
        return jax.random.uniform(k, shape, jnp.float32, -scale, scale)

    emb_table = jax.random.normal(ks[0], (V, H), jnp.float32) * 0.1
    wih_f = u(ks[1], (3 * H, H)); whh_f = u(ks[2], (3 * H, H))
    bih_f = u(ks[3], (3 * H,));   bhh_f = u(ks[4], (3 * H,))
    wih_b = u(ks[5], (3 * H, H)); whh_b = u(ks[6], (3 * H, H))
    bih_b = u(ks[7], (3 * H,));   bhh_b = u(ks[8], (3 * H,))

    input_seq = jax.random.randint(ks[9], (T, B), 0, V)
    # pack_padded_sequence requires lengths sorted descending.
    input_lengths = jnp.array([8, 8, 7, 7, 6, 6, 5, 5, 4, 4, 3, 3, 2, 2, 1, 1],
                              dtype=jnp.int32)

    embedded = jnp.take(emb_table, input_seq, axis=0)
    ref_out, ref_hid = ref_forward(embedded, input_lengths,
                                   wih_f, whh_f, bih_f, bhh_f,
                                   wih_b, whh_b, bih_b, bhh_b)

    # bf16 MXU mode (default): loose tolerance vs the f32 reference.
    out_bf, hid_bf = encoder_forward(input_seq, input_lengths, emb_table,
                                     wih_f, whh_f, bih_f, bhh_f,
                                     wih_b, whh_b, bih_b, bhh_b,
                                     matmul_dtype=jnp.bfloat16)
    jax.block_until_ready((out_bf, hid_bf))

    # f32 mode: strict check of the packed-sequence / GRU semantics.
    out_f32, hid_f32 = encoder_forward(input_seq, input_lengths, emb_table,
                                       wih_f, whh_f, bih_f, bhh_f,
                                       wih_b, whh_b, bih_b, bhh_b,
                                       matmul_dtype=jnp.float32)
    jax.block_until_ready((out_f32, hid_f32))

    assert out_bf.shape == (T, B, H) and hid_bf.shape == (2, B, H)
    assert jnp.allclose(out_f32, ref_out, atol=2e-4, rtol=2e-3), "f32 outputs mismatch"
    assert jnp.allclose(hid_f32, ref_hid, atol=2e-4, rtol=2e-3), "f32 hidden mismatch"
    assert jnp.allclose(out_bf, ref_out, atol=5e-2, rtol=5e-2), "bf16 outputs mismatch"
    assert jnp.allclose(hid_bf, ref_hid, atol=5e-2, rtol=5e-2), "bf16 hidden mismatch"
    print("KERNEL_OK")
</pallas_src>

<mosaic_0001>
module attributes {stable_mosaic.version = 11 : i64} {
  func.func @bigru_kernel(%arg0: i32, %arg1: memref<8x8x128xbf16, #tpu.memory_space<vmem>>, %arg2: memref<8x1xi32, #tpu.memory_space<vmem>>, %arg3: memref<128x768xbf16, #tpu.memory_space<vmem>>, %arg4: memref<1x768xf32, #tpu.memory_space<vmem>>, %arg5: memref<128x384xbf16, #tpu.memory_space<vmem>>, %arg6: memref<128x384xbf16, #tpu.memory_space<vmem>>, %arg7: memref<1x128xf32, #tpu.memory_space<vmem>>, %arg8: memref<1x128xf32, #tpu.memory_space<vmem>>, %arg9: memref<8x8x128xf32, #tpu.memory_space<vmem>>, %arg10: memref<2x8x128xf32, #tpu.memory_space<vmem>>, %arg11: memref<8x8x768xbf16, #tpu.memory_space<vmem>>) attributes {dimension_semantics = [#tpu.dimension_semantics<parallel>], iteration_bounds = array<i64: 2>, scalar_prefetch = 0 : i64, scratch_operands = 1 : i64, tpu.core_type = #tpu.core_type<tc>, window_params = [{transform_indices = @transform_0, window_bounds = array<i64: 8, 8, 128>}, {transform_indices = @transform_1, window_bounds = array<i64: 8, 1>}, {pipeline_mode = #tpu.pipeline_mode<synchronous>, transform_indices = @transform_2, window_bounds = array<i64: 128, 768>}, {pipeline_mode = #tpu.pipeline_mode<synchronous>, transform_indices = @transform_3, window_bounds = array<i64: 1, 768>}, {pipeline_mode = #tpu.pipeline_mode<synchronous>, transform_indices = @transform_4, window_bounds = array<i64: 128, 384>}, {pipeline_mode = #tpu.pipeline_mode<synchronous>, transform_indices = @transform_5, window_bounds = array<i64: 128, 384>}, {pipeline_mode = #tpu.pipeline_mode<synchronous>, transform_indices = @transform_6, window_bounds = array<i64: 1, 128>}, {pipeline_mode = #tpu.pipeline_mode<synchronous>, transform_indices = @transform_7, window_bounds = array<i64: 1, 128>}, {transform_indices = @transform_8, window_bounds = array<i64: 8, 8, 128>}, {transform_indices = @transform_9, window_bounds = array<i64: 2, 8, 128>}]} {
    %c0 = arith.constant 0 : index
    %c0_0 = arith.constant 0 : index
    %0 = vector.load %arg2[%c0, %c0_0] : memref<8x1xi32, #tpu.memory_space<vmem>>, vector<8x1xi32>
    %c0_1 = arith.constant 0 : index
    %c0_2 = arith.constant 0 : index
    %c0_3 = arith.constant 0 : index
    %1 = vector.load %arg1[%c0_1, %c0_2, %c0_3] : memref<8x8x128xbf16, #tpu.memory_space<vmem>>, vector<8x8x128xbf16>
    %2 = vector.shape_cast %1 : vector<8x8x128xbf16> to vector<64x128xbf16>
    %c0_4 = arith.constant 0 : index
    %c0_5 = arith.constant 0 : index
    %3 = vector.load %arg3[%c0_4, %c0_5] : memref<128x768xbf16, #tpu.memory_space<vmem>>, vector<128x768xbf16>
    %cst = arith.constant dense<0.000000e+00> : vector<64x768xf32>
    %4 = tpu.matmul %2, %3, %cst {dimension_numbers = #tpu.dot_dimension_numbers<[1], [0], [0], [1], [0, 0, 1, 1], [], []>} : vector<64x128xbf16>, vector<128x768xbf16>, vector<64x768xf32> -> vector<64x768xf32>
    %c0_6 = arith.constant 0 : index
    %c0_7 = arith.constant 0 : index
    %5 = vector.load %arg4[%c0_6, %c0_7] : memref<1x768xf32, #tpu.memory_space<vmem>>, vector<1x768xf32>
    %6 = vector.broadcast %5 : vector<1x768xf32> to vector<64x768xf32>
    %7 = arith.addf %4, %6 : vector<64x768xf32>
    %8 = arith.truncf %7 : vector<64x768xf32> to vector<64x768xbf16>
    %9 = vector.shape_cast %8 : vector<64x768xbf16> to vector<8x8x768xbf16>
    %c0_8 = arith.constant 0 : index
    %c0_9 = arith.constant 0 : index
    %c0_10 = arith.constant 0 : index
    %10 = vector.load %arg11[%c0_8, %c0_9, %c0_10] : memref<8x8x768xbf16, #tpu.memory_space<vmem>>, vector<8x8x768xbf16>
    tpu.vector_store %arg11[%c0_8, %c0_9, %c0_10], %9 {strides = array<i32>} : memref<8x8x768xbf16, #tpu.memory_space<vmem>>, vector<8x8x768xbf16>,
    %c0_11 = arith.constant 0 : index
    %c0_12 = arith.constant 0 : index
    %11 = vector.load %arg7[%c0_11, %c0_12] : memref<1x128xf32, #tpu.memory_space<vmem>>, vector<1x128xf32>
    %12 = vector.shape_cast %11 : vector<1x128xf32> to vector<1x128xf32>
    %13 = vector.broadcast %12 : vector<1x128xf32> to vector<8x128xf32>
    %c0_13 = arith.constant 0 : index
    %c0_14 = arith.constant 0 : index
    %14 = vector.load %arg8[%c0_13, %c0_14] : memref<1x128xf32, #tpu.memory_space<vmem>>, vector<1x128xf32>
    %15 = vector.shape_cast %14 : vector<1x128xf32> to vector<1x128xf32>
    %16 = vector.broadcast %15 : vector<1x128xf32> to vector<8x128xf32>
    %c0_15 = arith.constant 0 : index
    %c0_16 = arith.constant 0 : index
    %17 = vector.load %arg5[%c0_15, %c0_16] : memref<128x384xbf16, #tpu.memory_space<vmem>>, vector<128x384xbf16>
    %c0_17 = arith.constant 0 : index
    %c0_18 = arith.constant 0 : index
    %18 = vector.load %arg6[%c0_17, %c0_18] : memref<128x384xbf16, #tpu.memory_space<vmem>>, vector<128x384xbf16>
    %cst_19 = arith.constant 0.000000e+00 : f32
    %19 = vector.broadcast %cst_19 : f32 to vector<8x8x128xf32>
    %c0_20 = arith.constant 0 : index
    %c0_21 = arith.constant 0 : index
    %c0_22 = arith.constant 0 : index
    %20 = vector.load %arg9[%c0_20, %c0_21, %c0_22] : memref<8x8x128xf32, #tpu.memory_space<vmem>>, vector<8x8x128xf32>
    tpu.vector_store %arg9[%c0_20, %c0_21, %c0_22], %19 {strides = array<i32>} : memref<8x8x128xf32, #tpu.memory_space<vmem>>, vector<8x8x128xf32>,
    %cst_23 = arith.constant 0.000000e+00 : f32
    %21 = vector.broadcast %cst_23 : f32 to vector<8x128xf32>
    %c0_i32 = arith.constant 0 : i32
    %c8_i32 = arith.constant 8 : i32
    %22 = arith.addi %c0_i32, %c8_i32 : i32
    %c1_i32 = arith.constant 1 : i32
    %23:2 = scf.for %arg12 = %c0_i32 to %22 step %c1_i32 iter_args(%arg13 = %21, %arg14 = %21) -> (vector<8x128xf32>, vector<8x128xf32>)  : i32 {
      %c7_i32 = arith.constant 7 : i32
      %30 = arith.subi %c7_i32, %arg12 : i32
      %31 = arith.truncf %arg13 : vector<8x128xf32> to vector<8x128xbf16>
      %cst_30 = arith.constant dense<0.000000e+00> : vector<8x384xf32>
      %32 = tpu.matmul %31, %17, %cst_30 {dimension_numbers = #tpu.dot_dimension_numbers<[1], [0], [0], [1], [0, 0, 1, 1], [], []>} : vector<8x128xbf16>, vector<128x384xbf16>, vector<8x384xf32> -> vector<8x384xf32>
      %33 = arith.truncf %arg14 : vector<8x128xf32> to vector<8x128xbf16>
      %cst_31 = arith.constant dense<0.000000e+00> : vector<8x384xf32>
      %34 = tpu.matmul %33, %18, %cst_31 {dimension_numbers = #tpu.dot_dimension_numbers<[1], [0], [0], [1], [0, 0, 1, 1], [], []>} : vector<8x128xbf16>, vector<128x384xbf16>, vector<8x384xf32> -> vector<8x384xf32>
      %35 = arith.index_cast %arg12 : i32 to index
      %c0_32 = arith.constant 0 : index
      %c0_33 = arith.constant 0 : index
      %36 = vector.load %arg11[%35, %c0_32, %c0_33] : memref<8x8x768xbf16, #tpu.memory_space<vmem>>, vector<1x8x384xbf16>
      %37 = vector.shape_cast %36 : vector<1x8x384xbf16> to vector<8x384xbf16>
      %38 = arith.extf %37 : vector<8x384xbf16> to vector<8x384xf32>
      %39 = arith.index_cast %30 : i32 to index
      %c0_34 = arith.constant 0 : index
      %c384 = arith.constant 384 : index
      %40 = vector.load %arg11[%39, %c0_34, %c384] : memref<8x8x768xbf16, #tpu.memory_space<vmem>>, vector<1x8x384xbf16>
      %41 = vector.shape_cast %40 : vector<1x8x384xbf16> to vector<8x384xbf16>
      %42 = arith.extf %41 : vector<8x384xbf16> to vector<8x384xf32>
      %43 = vector.extract_strided_slice %38 {offsets = [0, 0], sizes = [8, 128], strides = [1, 1]} : vector<8x384xf32> to vector<8x128xf32>
      %44 = vector.extract_strided_slice %32 {offsets = [0, 0], sizes = [8, 128], strides = [1, 1]} : vector<8x384xf32> to vector<8x128xf32>
      %45 = arith.addf %43, %44 : vector<8x128xf32>
      %46 = arith.negf %45 : vector<8x128xf32>
      %47 = math.exp %46 : vector<8x128xf32>
      %cst_35 = arith.constant 1.000000e+00 : f32
      %48 = vector.broadcast %cst_35 : f32 to vector<8x128xf32>
      %49 = arith.addf %48, %47 : vector<8x128xf32>
      %50 = arith.divf %48, %49 : vector<8x128xf32>
      %51 = vector.extract_strided_slice %38 {offsets = [0, 128], sizes = [8, 128], strides = [1, 1]} : vector<8x384xf32> to vector<8x128xf32>
      %52 = vector.extract_strided_slice %32 {offsets = [0, 128], sizes = [8, 128], strides = [1, 1]} : vector<8x384xf32> to vector<8x128xf32>
      %53 = arith.addf %51, %52 : vector<8x128xf32>
      %54 = arith.negf %53 : vector<8x128xf32>
      %55 = math.exp %54 : vector<8x128xf32>
      %cst_36 = arith.constant 1.000000e+00 : f32
      %56 = vector.broadcast %cst_36 : f32 to vector<8x128xf32>
      %57 = arith.addf %56, %55 : vector<8x128xf32>
      %58 = arith.divf %56, %57 : vector<8x128xf32>
      %59 = vector.extract_strided_slice %38 {offsets = [0, 256], sizes = [8, 128], strides = [1, 1]} : vector<8x384xf32> to vector<8x128xf32>
      %60 = vector.extract_strided_slice %32 {offsets = [0, 256], sizes = [8, 128], strides = [1, 1]} : vector<8x384xf32> to vector<8x128xf32>
      %61 = arith.addf %60, %13 : vector<8x128xf32>
      %62 = arith.mulf %50, %61 : vector<8x128xf32>
      %63 = arith.addf %59, %62 : vector<8x128xf32>
      %64 = math.tanh %63 : vector<8x128xf32>
      %cst_37 = arith.constant 1.000000e+00 : f32
      %65 = vector.broadcast %cst_37 : f32 to vector<8x128xf32>
      %66 = arith.subf %65, %58 : vector<8x128xf32>
      %67 = arith.mulf %66, %64 : vector<8x128xf32>
      %68 = arith.mulf %58, %arg13 : vector<8x128xf32>
      %69 = arith.addf %67, %68 : vector<8x128xf32>
      %70 = vector.extract_strided_slice %42 {offsets = [0, 0], sizes = [8, 128], strides = [1, 1]} : vector<8x384xf32> to vector<8x128xf32>
      %71 = vector.extract_strided_slice %34 {offsets = [0, 0], sizes = [8, 128], strides = [1, 1]} : vector<8x384xf32> to vector<8x128xf32>
      %72 = arith.addf %70, %71 : vector<8x128xf32>
      %73 = arith.negf %72 : vector<8x128xf32>
      %74 = math.exp %73 : vector<8x128xf32>
      %cst_38 = arith.constant 1.000000e+00 : f32
      %75 = vector.broadcast %cst_38 : f32 to vector<8x128xf32>
      %76 = arith.addf %75, %74 : vector<8x128xf32>
      %77 = arith.divf %75, %76 : vector<8x128xf32>
      %78 = vector.extract_strided_slice %42 {offsets = [0, 128], sizes = [8, 128], strides = [1, 1]} : vector<8x384xf32> to vector<8x128xf32>
      %79 = vector.extract_strided_slice %34 {offsets = [0, 128], sizes = [8, 128], strides = [1, 1]} : vector<8x384xf32> to vector<8x128xf32>
      %80 = arith.addf %78, %79 : vector<8x128xf32>
      %81 = arith.negf %80 : vector<8x128xf32>
      %82 = math.exp %81 : vector<8x128xf32>
      %cst_39 = arith.constant 1.000000e+00 : f32
      %83 = vector.broadcast %cst_39 : f32 to vector<8x128xf32>
      %84 = arith.addf %83, %82 : vector<8x128xf32>
      %85 = arith.divf %83, %84 : vector<8x128xf32>
      %86 = vector.extract_strided_slice %42 {offsets = [0, 256], sizes = [8, 128], strides = [1, 1]} : vector<8x384xf32> to vector<8x128xf32>
      %87 = vector.extract_strided_slice %34 {offsets = [0, 256], sizes = [8, 128], strides = [1, 1]} : vector<8x384xf32> to vector<8x128xf32>
      %88 = arith.addf %87, %16 : vector<8x128xf32>
      %89 = arith.mulf %77, %88 : vector<8x128xf32>
      %90 = arith.addf %86, %89 : vector<8x128xf32>
      %91 = math.tanh %90 : vector<8x128xf32>
      %cst_40 = arith.constant 1.000000e+00 : f32
      %92 = vector.broadcast %cst_40 : f32 to vector<8x128xf32>
      %93 = arith.subf %92, %85 : vector<8x128xf32>
      %94 = arith.mulf %93, %91 : vector<8x128xf32>
      %95 = arith.mulf %85, %arg14 : vector<8x128xf32>
      %96 = arith.addf %94, %95 : vector<8x128xf32>
      %97 = vector.broadcast %arg12 : i32 to vector<8x1xi32>
      %98 = arith.cmpi slt, %97, %0 : vector<8x1xi32>
      %99 = vector.broadcast %30 : i32 to vector<8x1xi32>
      %100 = arith.cmpi slt, %99, %0 : vector<8x1xi32>
      %101 = arith.index_cast %arg12 : i32 to index
      %c0_41 = arith.constant 0 : index
      %c0_42 = arith.constant 0 : index
      %102 = vector.load %arg9[%101, %c0_41, %c0_42] : memref<8x8x128xf32, #tpu.memory_space<vmem>>, vector<1x8x128xf32>
      %103 = vector.shape_cast %102 : vector<1x8x128xf32> to vector<8x128xf32>
      %cst_43 = arith.constant 0.000000e+00 : f32
      %104 = vector.shape_cast %98 : vector<8x1xi1> to vector<8x1xi1>
      %105 = vector.broadcast %104 : vector<8x1xi1> to vector<8x128xi1>
      %106 = vector.broadcast %cst_43 : f32 to vector<8x128xf32>
      %107 = arith.select %105, %69, %106 : vector<8x128xi1>, vector<8x128xf32>
      %108 = arith.addf %103, %107 : vector<8x128xf32>
      %109 = arith.index_cast %arg12 : i32 to index
      %c0_44 = arith.constant 0 : index
      %c0_45 = arith.constant 0 : index
      %110 = vector.load %arg9[%109, %c0_44, %c0_45] : memref<8x8x128xf32, #tpu.memory_space<vmem>>, vector<1x8x128xf32>
      %111 = vector.shape_cast %110 : vector<1x8x128xf32> to vector<8x128xf32>
      %112 = vector.shape_cast %108 : vector<8x128xf32> to vector<1x8x128xf32>
      tpu.vector_store %arg9[%109, %c0_44, %c0_45], %112 {strides = array<i32>} : memref<8x8x128xf32, #tpu.memory_space<vmem>>, vector<1x8x128xf32>,
      %113 = arith.index_cast %30 : i32 to index
      %c0_46 = arith.constant 0 : index
      %c0_47 = arith.constant 0 : index
      %114 = vector.load %arg9[%113, %c0_46, %c0_47] : memref<8x8x128xf32, #tpu.memory_space<vmem>>, vector<1x8x128xf32>
      %115 = vector.shape_cast %114 : vector<1x8x128xf32> to vector<8x128xf32>
      %cst_48 = arith.constant 0.000000e+00 : f32
      %116 = vector.shape_cast %100 : vector<8x1xi1> to vector<8x1xi1>
      %117 = vector.broadcast %116 : vector<8x1xi1> to vector<8x128xi1>
      %118 = vector.broadcast %cst_48 : f32 to vector<8x128xf32>
      %119 = arith.select %117, %96, %118 : vector<8x128xi1>, vector<8x128xf32>
      %120 = arith.addf %115, %119 : vector<8x128xf32>
      %121 = arith.index_cast %30 : i32 to index
      %c0_49 = arith.constant 0 : index
      %c0_50 = arith.constant 0 : index
      %122 = vector.load %arg9[%121, %c0_49, %c0_50] : memref<8x8x128xf32, #tpu.memory_space<vmem>>, vector<1x8x128xf32>
      %123 = vector.shape_cast %122 : vector<1x8x128xf32> to vector<8x128xf32>
      %124 = vector.shape_cast %120 : vector<8x128xf32> to vector<1x8x128xf32>
      tpu.vector_store %arg9[%121, %c0_49, %c0_50], %124 {strides = array<i32>} : memref<8x8x128xf32, #tpu.memory_space<vmem>>, vector<1x8x128xf32>,
      %125 = vector.shape_cast %98 : vector<8x1xi1> to vector<8x1xi1>
      %126 = vector.broadcast %125 : vector<8x1xi1> to vector<8x128xi1>
      %127 = arith.select %126, %69, %arg13 : vector<8x128xi1>, vector<8x128xf32>
      %128 = vector.shape_cast %100 : vector<8x1xi1> to vector<8x1xi1>
      %129 = vector.broadcast %128 : vector<8x1xi1> to vector<8x128xi1>
      %130 = arith.select %129, %96, %arg14 : vector<8x128xi1>, vector<8x128xf32>
      scf.yield %127, %130 : vector<8x128xf32>, vector<8x128xf32>
    }
    %c8_i32_24 = arith.constant 8 : i32
    %c0_25 = arith.constant 0 : index
    %c0_26 = arith.constant 0 : index
    %c0_27 = arith.constant 0 : index
    %24 = vector.load %arg10[%c0_25, %c0_26, %c0_27] : memref<2x8x128xf32, #tpu.memory_space<vmem>>, vector<1x8x128xf32>
    %25 = vector.shape_cast %24 : vector<1x8x128xf32> to vector<8x128xf32>
    %26 = vector.shape_cast %23#0 : vector<8x128xf32> to vector<1x8x128xf32>
    tpu.vector_store %arg10[%c0_25, %c0_26, %c0_27], %26 {strides = array<i32>} : memref<2x8x128xf32, #tpu.memory_space<vmem>>, vector<1x8x128xf32>,
    %c1 = arith.constant 1 : index
    %c0_28 = arith.constant 0 : index
    %c0_29 = arith.constant 0 : index
    %27 = vector.load %arg10[%c1, %c0_28, %c0_29] : memref<2x8x128xf32, #tpu.memory_space<vmem>>, vector<1x8x128xf32>
    %28 = vector.shape_cast %27 : vector<1x8x128xf32> to vector<8x128xf32>
    %29 = vector.shape_cast %23#1 : vector<8x128xf32> to vector<1x8x128xf32>
    tpu.vector_store %arg10[%c1, %c0_28, %c0_29], %29 {strides = array<i32>} : memref<2x8x128xf32, #tpu.memory_space<vmem>>, vector<1x8x128xf32>,
    return
  }
  func.func @transform_0(%arg0: i32) -> (i32, i32, i32) {
    %c0_i32 = arith.constant 0 : i32
    %c0_i32_0 = arith.constant 0 : i32
    %c0_i32_1 = arith.constant 0 : i32
    return %c0_i32, %arg0, %c0_i32_0 : i32, i32, i32
  }
  func.func @transform_1(%arg0: i32) -> (i32, i32) {
    %c0_i32 = arith.constant 0 : i32
    %c0_i32_0 = arith.constant 0 : i32
    return %arg0, %c0_i32 : i32, i32
  }
  func.func @transform_2(%arg0: i32) -> (i32, i32) {
    %c0_i32 = arith.constant 0 : i32
    %c0_i32_0 = arith.constant 0 : i32
    %c0_i32_1 = arith.constant 0 : i32
    return %c0_i32, %c0_i32_0 : i32, i32
  }
  func.func @transform_3(%arg0: i32) -> (i32, i32) {
    %c0_i32 = arith.constant 0 : i32
    %c0_i32_0 = arith.constant 0 : i32
    %c0_i32_1 = arith.constant 0 : i32
    return %c0_i32, %c0_i32_0 : i32, i32
  }
  func.func @transform_4(%arg0: i32) -> (i32, i32) {
    %c0_i32 = arith.constant 0 : i32
    %c0_i32_0 = arith.constant 0 : i32
    %c0_i32_1 = arith.constant 0 : i32
    return %c0_i32, %c0_i32_0 : i32, i32
  }
  func.func @transform_5(%arg0: i32) -> (i32, i32) {
    %c0_i32 = arith.constant 0 : i32
    %c0_i32_0 = arith.constant 0 : i32
    %c0_i32_1 = arith.constant 0 : i32
    return %c0_i32, %c0_i32_0 : i32, i32
  }
  func.func @transform_6(%arg0: i32) -> (i32, i32) {
    %c0_i32 = arith.constant 0 : i32
    %c0_i32_0 = arith.constant 0 : i32
    %c0_i32_1 = arith.constant 0 : i32
    return %c0_i32, %c0_i32_0 : i32, i32
  }
  func.func @transform_7(%arg0: i32) -> (i32, i32) {
    %c0_i32 = arith.constant 0 : i32
    %c0_i32_0 = arith.constant 0 : i32
    %c0_i32_1 = arith.constant 0 : i32
    return %c0_i32, %c0_i32_0 : i32, i32
  }
  func.func @transform_8(%arg0: i32) -> (i32, i32, i32) {
    %c0_i32 = arith.constant 0 : i32
    %c0_i32_0 = arith.constant 0 : i32
    %c0_i32_1 = arith.constant 0 : i32
    return %c0_i32, %arg0, %c0_i32_0 : i32, i32, i32
  }
  func.func @transform_9(%arg0: i32) -> (i32, i32, i32) {
    %c0_i32 = arith.constant 0 : i32
    %c0_i32_0 = arith.constant 0 : i32
    %c0_i32_1 = arith.constant 0 : i32
    return %c0_i32, %arg0, %c0_i32_0 : i32, i32, i32
  }
}

module attributes {stable_mosaic.version = 11 : i64} {
  func.func @bigru_kernel(%arg0: i32, %arg1: memref<8x8x128xbf16, #tpu.memory_space<vmem>>, %arg2: memref<8x1xi32, #tpu.memory_space<vmem>>, %arg3: memref<128x768xbf16, #tpu.memory_space<vmem>>, %arg4: memref<1x768xf32, #tpu.memory_space<vmem>>, %arg5: memref<128x384xbf16, #tpu.memory_space<vmem>>, %arg6: memref<128x384xbf16, #tpu.memory_space<vmem>>, %arg7: memref<1x128xf32, #tpu.memory_space<vmem>>, %arg8: memref<1x128xf32, #tpu.memory_space<vmem>>, %arg9: memref<8x8x128xf32, #tpu.memory_space<vmem>>, %arg10: memref<2x8x128xf32, #tpu.memory_space<vmem>>, %arg11: memref<8x8x768xbf16, #tpu.memory_space<vmem>>) attributes {dimension_semantics = [#tpu.dimension_semantics<parallel>], iteration_bounds = array<i64: 2>, scalar_prefetch = 0 : i64, scratch_operands = 1 : i64, tpu.core_type = #tpu.core_type<tc>, window_params = [{transform_indices = @transform_0, window_bounds = array<i64: 8, 8, 128>}, {transform_indices = @transform_1, window_bounds = array<i64: 8, 1>}, {pipeline_mode = #tpu.pipeline_mode<synchronous>, transform_indices = @transform_2, window_bounds = array<i64: 128, 768>}, {pipeline_mode = #tpu.pipeline_mode<synchronous>, transform_indices = @transform_3, window_bounds = array<i64: 1, 768>}, {pipeline_mode = #tpu.pipeline_mode<synchronous>, transform_indices = @transform_4, window_bounds = array<i64: 128, 384>}, {pipeline_mode = #tpu.pipeline_mode<synchronous>, transform_indices = @transform_5, window_bounds = array<i64: 128, 384>}, {pipeline_mode = #tpu.pipeline_mode<synchronous>, transform_indices = @transform_6, window_bounds = array<i64: 1, 128>}, {pipeline_mode = #tpu.pipeline_mode<synchronous>, transform_indices = @transform_7, window_bounds = array<i64: 1, 128>}, {transform_indices = @transform_8, window_bounds = array<i64: 8, 8, 128>}, {transform_indices = @transform_9, window_bounds = array<i64: 2, 8, 128>}]} {
    %c0 = arith.constant 0 : index
    %c0_0 = arith.constant 0 : index
    %0 = vector.load %arg2[%c0, %c0_0] : memref<8x1xi32, #tpu.memory_space<vmem>>, vector<8x1xi32>
    %c0_1 = arith.constant 0 : index
    %c0_2 = arith.constant 0 : index
    %c0_3 = arith.constant 0 : index
    %1 = vector.load %arg1[%c0_1, %c0_2, %c0_3] : memref<8x8x128xbf16, #tpu.memory_space<vmem>>, vector<8x8x128xbf16>
    %2 = vector.shape_cast %1 : vector<8x8x128xbf16> to vector<64x128xbf16>
    %c0_4 = arith.constant 0 : index
    %c0_5 = arith.constant 0 : index
    %3 = vector.load %arg3[%c0_4, %c0_5] : memref<128x768xbf16, #tpu.memory_space<vmem>>, vector<128x768xbf16>
    %cst = arith.constant dense<0.000000e+00> : vector<64x768xf32>
    %4 = tpu.matmul %2, %3, %cst {dimension_numbers = #tpu.dot_dimension_numbers<[1], [0], [0], [1], [0, 0, 1, 1], [], []>} : vector<64x128xbf16>, vector<128x768xbf16>, vector<64x768xf32> -> vector<64x768xf32>
    %c0_6 = arith.constant 0 : index
    %c0_7 = arith.constant 0 : index
    %5 = vector.load %arg4[%c0_6, %c0_7] : memref<1x768xf32, #tpu.memory_space<vmem>>, vector<1x768xf32>
    %6 = vector.broadcast %5 : vector<1x768xf32> to vector<64x768xf32>
    %7 = arith.addf %4, %6 : vector<64x768xf32>
    %8 = arith.truncf %7 : vector<64x768xf32> to vector<64x768xbf16>
    %9 = vector.shape_cast %8 : vector<64x768xbf16> to vector<8x8x768xbf16>
    %c0_8 = arith.constant 0 : index
    %c0_9 = arith.constant 0 : index
    %c0_10 = arith.constant 0 : index
    %10 = vector.load %arg11[%c0_8, %c0_9, %c0_10] : memref<8x8x768xbf16, #tpu.memory_space<vmem>>, vector<8x8x768xbf16>
    tpu.vector_store %arg11[%c0_8, %c0_9, %c0_10], %9 {strides = array<i32>} : memref<8x8x768xbf16, #tpu.memory_space<vmem>>, vector<8x8x768xbf16>,
    %c0_11 = arith.constant 0 : index
    %c0_12 = arith.constant 0 : index
    %11 = vector.load %arg7[%c0_11, %c0_12] : memref<1x128xf32, #tpu.memory_space<vmem>>, vector<1x128xf32>
    %12 = vector.shape_cast %11 : vector<1x128xf32> to vector<1x128xf32>
    %13 = vector.broadcast %12 : vector<1x128xf32> to vector<8x128xf32>
    %c0_13 = arith.constant 0 : index
    %c0_14 = arith.constant 0 : index
    %14 = vector.load %arg8[%c0_13, %c0_14] : memref<1x128xf32, #tpu.memory_space<vmem>>, vector<1x128xf32>
    %15 = vector.shape_cast %14 : vector<1x128xf32> to vector<1x128xf32>
    %16 = vector.broadcast %15 : vector<1x128xf32> to vector<8x128xf32>
    %c0_15 = arith.constant 0 : index
    %c0_16 = arith.constant 0 : index
    %17 = vector.load %arg5[%c0_15, %c0_16] : memref<128x384xbf16, #tpu.memory_space<vmem>>, vector<128x384xbf16>
    %c0_17 = arith.constant 0 : index
    %c0_18 = arith.constant 0 : index
    %18 = vector.load %arg6[%c0_17, %c0_18] : memref<128x384xbf16, #tpu.memory_space<vmem>>, vector<128x384xbf16>
    %cst_19 = arith.constant 0.000000e+00 : f32
    %19 = vector.broadcast %cst_19 : f32 to vector<8x8x128xf32>
    %c0_20 = arith.constant 0 : index
    %c0_21 = arith.constant 0 : index
    %c0_22 = arith.constant 0 : index
    %20 = vector.load %arg9[%c0_20, %c0_21, %c0_22] : memref<8x8x128xf32, #tpu.memory_space<vmem>>, vector<8x8x128xf32>
    tpu.vector_store %arg9[%c0_20, %c0_21, %c0_22], %19 {strides = array<i32>} : memref<8x8x128xf32, #tpu.memory_space<vmem>>, vector<8x8x128xf32>,
    %cst_23 = arith.constant 0.000000e+00 : f32
    %21 = vector.broadcast %cst_23 : f32 to vector<8x128xf32>
    %c0_i32 = arith.constant 0 : i32
    %c8_i32 = arith.constant 8 : i32
    %22 = arith.addi %c0_i32, %c8_i32 : i32
    %c1_i32 = arith.constant 1 : i32
    %23:2 = scf.for %arg12 = %c0_i32 to %22 step %c1_i32 iter_args(%arg13 = %21, %arg14 = %21) -> (vector<8x128xf32>, vector<8x128xf32>)  : i32 {
      %c7_i32 = arith.constant 7 : i32
      %30 = arith.subi %c7_i32, %arg12 : i32
      %31 = arith.truncf %arg13 : vector<8x128xf32> to vector<8x128xbf16>
      %cst_30 = arith.constant dense<0.000000e+00> : vector<8x384xf32>
      %32 = tpu.matmul %31, %17, %cst_30 {dimension_numbers = #tpu.dot_dimension_numbers<[1], [0], [0], [1], [0, 0, 1, 1], [], []>} : vector<8x128xbf16>, vector<128x384xbf16>, vector<8x384xf32> -> vector<8x384xf32>
      %33 = arith.truncf %arg14 : vector<8x128xf32> to vector<8x128xbf16>
      %cst_31 = arith.constant dense<0.000000e+00> : vector<8x384xf32>
      %34 = tpu.matmul %33, %18, %cst_31 {dimension_numbers = #tpu.dot_dimension_numbers<[1], [0], [0], [1], [0, 0, 1, 1], [], []>} : vector<8x128xbf16>, vector<128x384xbf16>, vector<8x384xf32> -> vector<8x384xf32>
      %35 = arith.index_cast %arg12 : i32 to index
      %c0_32 = arith.constant 0 : index
      %c0_33 = arith.constant 0 : index
      %36 = vector.load %arg11[%35, %c0_32, %c0_33] : memref<8x8x768xbf16, #tpu.memory_space<vmem>>, vector<1x8x384xbf16>
      %37 = vector.shape_cast %36 : vector<1x8x384xbf16> to vector<8x384xbf16>
      %38 = arith.extf %37 : vector<8x384xbf16> to vector<8x384xf32>
      %39 = arith.index_cast %30 : i32 to index
      %c0_34 = arith.constant 0 : index
      %c384 = arith.constant 384 : index
      %40 = vector.load %arg11[%39, %c0_34, %c384] : memref<8x8x768xbf16, #tpu.memory_space<vmem>>, vector<1x8x384xbf16>
      %41 = vector.shape_cast %40 : vector<1x8x384xbf16> to vector<8x384xbf16>
      %42 = arith.extf %41 : vector<8x384xbf16> to vector<8x384xf32>
      %43 = vector.extract_strided_slice %38 {offsets = [0, 0], sizes = [8, 128], strides = [1, 1]} : vector<8x384xf32> to vector<8x128xf32>
      %44 = vector.extract_strided_slice %32 {offsets = [0, 0], sizes = [8, 128], strides = [1, 1]} : vector<8x384xf32> to vector<8x128xf32>
      %45 = arith.addf %43, %44 : vector<8x128xf32>
      %46 = arith.negf %45 : vector<8x128xf32>
      %47 = math.exp %46 : vector<8x128xf32>
      %cst_35 = arith.constant 1.000000e+00 : f32
      %48 = vector.broadcast %cst_35 : f32 to vector<8x128xf32>
      %49 = arith.addf %48, %47 : vector<8x128xf32>
      %50 = arith.divf %48, %49 : vector<8x128xf32>
      %51 = vector.extract_strided_slice %38 {offsets = [0, 128], sizes = [8, 128], strides = [1, 1]} : vector<8x384xf32> to vector<8x128xf32>
      %52 = vector.extract_strided_slice %32 {offsets = [0, 128], sizes = [8, 128], strides = [1, 1]} : vector<8x384xf32> to vector<8x128xf32>
      %53 = arith.addf %51, %52 : vector<8x128xf32>
      %54 = arith.negf %53 : vector<8x128xf32>
      %55 = math.exp %54 : vector<8x128xf32>
      %cst_36 = arith.constant 1.000000e+00 : f32
      %56 = vector.broadcast %cst_36 : f32 to vector<8x128xf32>
      %57 = arith.addf %56, %55 : vector<8x128xf32>
      %58 = arith.divf %56, %57 : vector<8x128xf32>
      %59 = vector.extract_strided_slice %38 {offsets = [0, 256], sizes = [8, 128], strides = [1, 1]} : vector<8x384xf32> to vector<8x128xf32>
      %60 = vector.extract_strided_slice %32 {offsets = [0, 256], sizes = [8, 128], strides = [1, 1]} : vector<8x384xf32> to vector<8x128xf32>
      %61 = arith.addf %60, %13 : vector<8x128xf32>
      %62 = arith.mulf %50, %61 : vector<8x128xf32>
      %63 = arith.addf %59, %62 : vector<8x128xf32>
      %64 = math.tanh %63 : vector<8x128xf32>
      %cst_37 = arith.constant 1.000000e+00 : f32
      %65 = vector.broadcast %cst_37 : f32 to vector<8x128xf32>
      %66 = arith.subf %65, %58 : vector<8x128xf32>
      %67 = arith.mulf %66, %64 : vector<8x128xf32>
      %68 = arith.mulf %58, %arg13 : vector<8x128xf32>
      %69 = arith.addf %67, %68 : vector<8x128xf32>
      %70 = vector.extract_strided_slice %42 {offsets = [0, 0], sizes = [8, 128], strides = [1, 1]} : vector<8x384xf32> to vector<8x128xf32>
      %71 = vector.extract_strided_slice %34 {offsets = [0, 0], sizes = [8, 128], strides = [1, 1]} : vector<8x384xf32> to vector<8x128xf32>
      %72 = arith.addf %70, %71 : vector<8x128xf32>
      %73 = arith.negf %72 : vector<8x128xf32>
      %74 = math.exp %73 : vector<8x128xf32>
      %cst_38 = arith.constant 1.000000e+00 : f32
      %75 = vector.broadcast %cst_38 : f32 to vector<8x128xf32>
      %76 = arith.addf %75, %74 : vector<8x128xf32>
      %77 = arith.divf %75, %76 : vector<8x128xf32>
      %78 = vector.extract_strided_slice %42 {offsets = [0, 128], sizes = [8, 128], strides = [1, 1]} : vector<8x384xf32> to vector<8x128xf32>
      %79 = vector.extract_strided_slice %34 {offsets = [0, 128], sizes = [8, 128], strides = [1, 1]} : vector<8x384xf32> to vector<8x128xf32>
      %80 = arith.addf %78, %79 : vector<8x128xf32>
      %81 = arith.negf %80 : vector<8x128xf32>
      %82 = math.exp %81 : vector<8x128xf32>
      %cst_39 = arith.constant 1.000000e+00 : f32
      %83 = vector.broadcast %cst_39 : f32 to vector<8x128xf32>
      %84 = arith.addf %83, %82 : vector<8x128xf32>
      %85 = arith.divf %83, %84 : vector<8x128xf32>
      %86 = vector.extract_strided_slice %42 {offsets = [0, 256], sizes = [8, 128], strides = [1, 1]} : vector<8x384xf32> to vector<8x128xf32>
      %87 = vector.extract_strided_slice %34 {offsets = [0, 256], sizes = [8, 128], strides = [1, 1]} : vector<8x384xf32> to vector<8x128xf32>
      %88 = arith.addf %87, %16 : vector<8x128xf32>
      %89 = arith.mulf %77, %88 : vector<8x128xf32>
      %90 = arith.addf %86, %89 : vector<8x128xf32>
      %91 = math.tanh %90 : vector<8x128xf32>
      %cst_40 = arith.constant 1.000000e+00 : f32
      %92 = vector.broadcast %cst_40 : f32 to vector<8x128xf32>
      %93 = arith.subf %92, %85 : vector<8x128xf32>
      %94 = arith.mulf %93, %91 : vector<8x128xf32>
      %95 = arith.mulf %85, %arg14 : vector<8x128xf32>
      %96 = arith.addf %94, %95 : vector<8x128xf32>
      %97 = vector.broadcast %arg12 : i32 to vector<8x1xi32>
      %98 = arith.cmpi slt, %97, %0 : vector<8x1xi32>
      %99 = vector.broadcast %30 : i32 to vector<8x1xi32>
      %100 = arith.cmpi slt, %99, %0 : vector<8x1xi32>
      %101 = arith.index_cast %arg12 : i32 to index
      %c0_41 = arith.constant 0 : index
      %c0_42 = arith.constant 0 : index
      %102 = vector.load %arg9[%101, %c0_41, %c0_42] : memref<8x8x128xf32, #tpu.memory_space<vmem>>, vector<1x8x128xf32>
      %103 = vector.shape_cast %102 : vector<1x8x128xf32> to vector<8x128xf32>
      %cst_43 = arith.constant 0.000000e+00 : f32
      %104 = vector.shape_cast %98 : vector<8x1xi1> to vector<8x1xi1>
      %105 = vector.broadcast %104 : vector<8x1xi1> to vector<8x128xi1>
      %106 = vector.broadcast %cst_43 : f32 to vector<8x128xf32>
      %107 = arith.select %105, %69, %106 : vector<8x128xi1>, vector<8x128xf32>
      %108 = arith.addf %103, %107 : vector<8x128xf32>
      %109 = arith.index_cast %arg12 : i32 to index
      %c0_44 = arith.constant 0 : index
      %c0_45 = arith.constant 0 : index
      %110 = vector.load %arg9[%109, %c0_44, %c0_45] : memref<8x8x128xf32, #tpu.memory_space<vmem>>, vector<1x8x128xf32>
      %111 = vector.shape_cast %110 : vector<1x8x128xf32> to vector<8x128xf32>
      %112 = vector.shape_cast %108 : vector<8x128xf32> to vector<1x8x128xf32>
      tpu.vector_store %arg9[%109, %c0_44, %c0_45], %112 {strides = array<i32>} : memref<8x8x128xf32, #tpu.memory_space<vmem>>, vector<1x8x128xf32>,
      %113 = arith.index_cast %30 : i32 to index
      %c0_46 = arith.constant 0 : index
      %c0_47 = arith.constant 0 : index
      %114 = vector.load %arg9[%113, %c0_46, %c0_47] : memref<8x8x128xf32, #tpu.memory_space<vmem>>, vector<1x8x128xf32>
      %115 = vector.shape_cast %114 : vector<1x8x128xf32> to vector<8x128xf32>
      %cst_48 = arith.constant 0.000000e+00 : f32
      %116 = vector.shape_cast %100 : vector<8x1xi1> to vector<8x1xi1>
      %117 = vector.broadcast %116 : vector<8x1xi1> to vector<8x128xi1>
      %118 = vector.broadcast %cst_48 : f32 to vector<8x128xf32>
      %119 = arith.select %117, %96, %118 : vector<8x128xi1>, vector<8x128xf32>
      %120 = arith.addf %115, %119 : vector<8x128xf32>
      %121 = arith.index_cast %30 : i32 to index
      %c0_49 = arith.constant 0 : index
      %c0_50 = arith.constant 0 : index
      %122 = vector.load %arg9[%121, %c0_49, %c0_50] : memref<8x8x128xf32, #tpu.memory_space<vmem>>, vector<1x8x128xf32>
      %123 = vector.shape_cast %122 : vector<1x8x128xf32> to vector<8x128xf32>
      %124 = vector.shape_cast %120 : vector<8x128xf32> to vector<1x8x128xf32>
      tpu.vector_store %arg9[%121, %c0_49, %c0_50], %124 {strides = array<i32>} : memref<8x8x128xf32, #tpu.memory_space<vmem>>, vector<1x8x128xf32>,
      %125 = vector.shape_cast %98 : vector<8x1xi1> to vector<8x1xi1>
      %126 = vector.broadcast %125 : vector<8x1xi1> to vector<8x128xi1>
      %127 = arith.select %126, %69, %arg13 : vector<8x128xi1>, vector<8x128xf32>
      %128 = vector.shape_cast %100 : vector<8x1xi1> to vector<8x1xi1>
      %129 = vector.broadcast %128 : vector<8x1xi1> to vector<8x128xi1>
      %130 = arith.select %129, %96, %arg14 : vector<8x128xi1>, vector<8x128xf32>
      scf.yield %127, %130 : vector<8x128xf32>, vector<8x128xf32>
    }
    %c8_i32_24 = arith.constant 8 : i32
    %c0_25 = arith.constant 0 : index
    %c0_26 = arith.constant 0 : index
    %c0_27 = arith.constant 0 : index
    %24 = vector.load %arg10[%c0_25, %c0_26, %c0_27] : memref<2x8x128xf32, #tpu.memory_space<vmem>>, vector<1x8x128xf32>
    %25 = vector.shape_cast %24 : vector<1x8x128xf32> to vector<8x128xf32>
    %26 = vector.shape_cast %23#0 : vector<8x128xf32> to vector<1x8x128xf32>
    tpu.vector_store %arg10[%c0_25, %c0_26, %c0_27], %26 {strides = array<i32>} : memref<2x8x128xf32, #tpu.memory_space<vmem>>, vector<1x8x128xf32>,
    %c1 = arith.constant 1 : index
    %c0_28 = arith.constant 0 : index
    %c0_29 = arith.constant 0 : index
    %27 = vector.load %arg10[%c1, %c0_28, %c0_29] : memref<2x8x128xf32, #tpu.memory_space<vmem>>, vector<1x8x128xf32>
    %28 = vector.shape_cast %27 : vector<1x8x128xf32> to vector<8x128xf32>
    %29 = vector.shape_cast %23#1 : vector<8x128xf32> to vector<1x8x128xf32>
    tpu.vector_store %arg10[%c1, %c0_28, %c0_29], %29 {strides = array<i32>} : memref<2x8x128xf32, #tpu.memory_space<vmem>>, vector<1x8x128xf32>,
    return
  }
  func.func @transform_0(%arg0: i32) -> (i32, i32, i32) {
    %c0_i32 = arith.constant 0 : i32
    %c0_i32_0 = arith.constant 0 : i32
    %c0_i32_1 = arith.constant 0 : i32
    return %c0_i32, %arg0, %c0_i32_0 : i32, i32, i32
  }
  func.func @transform_1(%arg0: i32) -> (i32, i32) {
    %c0_i32 = arith.constant 0 : i32
    %c0_i32_0 = arith.constant 0 : i32
    return %arg0, %c0_i32 : i32, i32
  }
  func.func @transform_2(%arg0: i32) -> (i32, i32) {
    %c0_i32 = arith.constant 0 : i32
    %c0_i32_0 = arith.constant 0 : i32
    %c0_i32_1 = arith.constant 0 : i32
    return %c0_i32, %c0_i32_0 : i32, i32
  }
  func.func @transform_3(%arg0: i32) -> (i32, i32) {
    %c0_i32 = arith.constant 0 : i32
    %c0_i32_0 = arith.constant 0 : i32
    %c0_i32_1 = arith.constant 0 : i32
    return %c0_i32, %c0_i32_0 : i32, i32
  }
  func.func @transform_4(%arg0: i32) -> (i32, i32) {
    %c0_i32 = arith.constant 0 : i32
    %c0_i32_0 = arith.constant 0 : i32
    %c0_i32_1 = arith.constant 0 : i32
    return %c0_i32, %c0_i32_0 : i32, i32
  }
  func.func @transform_5(%arg0: i32) -> (i32, i32) {
    %c0_i32 = arith.constant 0 : i32
    %c0_i32_0 = arith.constant 0 : i32
    %c0_i32_1 = arith.constant 0 : i32
    return %c0_i32, %c0_i32_0 : i32, i32
  }
  func.func @transform_6(%arg0: i32) -> (i32, i32) {
    %c0_i32 = arith.constant 0 : i32
    %c0_i32_0 = arith.constant 0 : i32
    %c0_i32_1 = arith.constant 0 : i32
    return %c0_i32, %c0_i32_0 : i32, i32
  }
  func.func @transform_7(%arg0: i32) -> (i32, i32) {
    %c0_i32 = arith.constant 0 : i32
    %c0_i32_0 = arith.constant 0 : i32
    %c0_i32_1 = arith.constant 0 : i32
    return %c0_i32, %c0_i32_0 : i32, i32
  }
  func.func @transform_8(%arg0: i32) -> (i32, i32, i32) {
    %c0_i32 = arith.constant 0 : i32
    %c0_i32_0 = arith.constant 0 : i32
    %c0_i32_1 = arith.constant 0 : i32
    return %c0_i32, %arg0, %c0_i32_0 : i32, i32, i32
  }
  func.func @transform_9(%arg0: i32) -> (i32, i32, i32) {
    %c0_i32 = arith.constant 0 : i32
    %c0_i32_0 = arith.constant 0 : i32
    %c0_i32_1 = arith.constant 0 : i32
    return %c0_i32, %arg0, %c0_i32_0 : i32, i32, i32
  }
}

</mosaic_0001>

<bundles_post_ra>
// kernel: tpu_custom_call.1
= control target key start
LH: loop header
LB: loop body
LE: loop exit
PB: predicated region body
PF: predicated region fallthrough
CT: control target
= control target key end

     0   :  { %s3465_s0 = inlined_call_operand.hbm [shape: bf16[8,16,128], index: 0, kind: input, shape index: {}]   ;;  %s3466_s1 = inlined_call_operand.vmem [shape: s32[16,1], index: 1, kind: input, shape index: {}]   ;;  %s3467_s2 = inlined_call_operand.hbm [shape: bf16[128,768], index: 2, kind: input, shape index: {}]   ;;  %s3468_s3 = inlined_call_operand.vmem [shape: f32[1,768], index: 3, kind: input, shape index: {}]   ;;  %s3469_s4 = inlined_call_operand.hbm [shape: bf16[128,384], index: 4, kind: input, shape index: {}]   ;;  %s3470_s5 = inlined_call_operand.hbm [shape: bf16[128,384], index: 5, kind: input, shape index: {}]   ;;  %s3471_s6 = inlined_call_operand.vmem [shape: f32[1,128], index: 6, kind: input, shape index: {}]   ;;  %s3472_s7 = inlined_call_operand.vmem [shape: f32[1,128], index: 7, kind: input, shape index: {}]   ;;  %s3473_s8 = inlined_call_operand.hbm [shape: f32[8,16,128], index: 8, kind: output, shape index: {0}]   ;;  %s3474_s9 = inlined_call_operand.hbm [shape: f32[2,16,128], index: 9, kind: output, shape index: {1}]  }
   0x1   :  { %3508 = sst [smem:[#allocation59_spill]] %s3467_s2 }
   0x2   :  { %3509 = sst [smem:[#allocation60_spill]] %s3473_s8 }
   0x3   :  { %3510 = sst [smem:[#allocation61_spill]] %s3474_s9 }
   0x4   :  { %15 = vsyncpa [#allocation4], 0 }
   0x5   :  { %17 = vsyncpa [#allocation4 + $0x1], 0 }
   0x6   :  { %18 = vsyncpa [#allocation7], 0 }
   0x7   :  { %19 = vsyncpa [#allocation10], 0 }
   0x8   :  { %20 = vsyncpa [#allocation5], 0 }
   0x9   :  { %22 = vsyncpa [#allocation5 + $0x1], 0 }
   0xa   :  { %23 = vsyncpa [#allocation13], 0 }
   0xb   :  { %25 = vsyncpa [#allocation13 + $0x1], 0  ;;  %s2759_s30 = smov 0   ;;  %s2761_s10 = smov 0  }
   0xc   :  { %s2763_s11 = smov 0   ;;  %s2765_s12 = smov 0  }
   0xd LB: > { %3511 = sst [smem:[#allocation19_spill]] %s2662_s30  ;;  %s2780_s13 = sadd.s32 4294967295, %s2674_s12   ;;  %s2674_s12 = sphi %s2765_s12, %s3615_s12   ;;  %s2670_s11 = sphi %s2763_s11, %s3619_s11   ;;  %s2666_s10 = sphi %s2761_s10, %s3618_s10   ;;  %s2662_s30 = sphi %s2759_s30, %s3617_s30  }
   0xe   : > { %s1967_s14 = sadd.s32 4294967294, %s2674_s12   ;;  %s2784_s15 = sadd.s32 1, %s2674_s12  }
   0xf   : > { %3512 = sst [smem:[#allocation20_spill]] %s2784_s15  ;;  %s38_s16 = sadd.s32 1, %s2670_s11 }
  0x10   : > { %s35_s17 = ssub.s32 %s2674_s12, %s2784_s15  ;;  %p45_p0 = scmp.ne.s32.totalorder %s2670_s11, %s2666_s10 }
  0x11   : > { %p36_p1 = scmp.eq.s32.totalorder %s35_s17, 0  ;;  %p46_p2 = scmp.eq.s32.totalorder %s2674_s12, 0 }
  0x12   : > { %p51_p3 = scmp.ne.s32.totalorder %s2666_s10, %s2662_s30  ;;  %p3478_p4 = scmp.eq.s32.totalorder %s2780_s13, 0 }
  0x13   : > { %s2796_s18 = scalar_select %p36_p1, %s2670_s11, %s38_s16  }
  0x14   : > { %p2798_p5 = por %p46_p2, %p45_p0  ;;  %p2804_p6 = por %p3478_p4, %p51_p3 }
  0x15   : > { %3513 = sst [smem:[#allocation21_spill]] %s2796_s18  ;;  %p227_p7 = scmp.eq.s32.totalorder %s2780_s13, 1 }
  0x16   : > { %s3514_s19 = scalar_select %p2798_p5, 1, 0 }
  0x17   : > { %s3515_s20 = scalar_select %p2804_p6, 1, 0 }
  0x18   : > { %p233_p8 = scmp.eq.s32.totalorder %s1967_s14, 1  ;;  %p1968_p9 = scmp.ge.s32.totalorder %s2674_s12, 1 }
  0x19   : > { %p266_p10 = scmp.lt.s32.totalorder %s2674_s12, 3  ;;  %p2811_p11 = por %p227_p7, %p45_p0 }
  0x1a   : > { %p2815_p12 = por %p233_p8, %p51_p3  ;;  %s2688_s24 = smov [#allocation6]  }
  0x1b   : > { %s3516_s21 = scalar_select %p2811_p11, 1, 0 }
  0x1c   : > { %s3518_s22 = scalar_select %p2815_p12, 1, 0 }
  0x1d   : > { %3517 = sst [smem:[#allocation22_spill]] %s3516_s21  ;;  %p2819_p13 = pnand %p1968_p9, %p266_p10 }
  0x1e   : > { %3519 = sst [smem:[#allocation23_spill]] %s3518_s22  ;;  %s278_s25 = sshll.u32 %s2688_s24, 4  ;;  %s279_s25 = int_to_ptr.vmem [resolvable:$true] %s278_s25 }
  0x1f   : > { %s3520_s23 = scalar_select %p2819_p13, 1, 0 }
  0x20   : > { %p2242_p1 = pneg %p2819_p13  ;;  %s2689_s27 = smov [#allocation8]  }
  0x21   : > { %s294_s28 = sshll.u32 %s2689_s27, 4  ;;  %s3522_s2 = sld [smem:[#allocation59_spill]]  ;;  %s295_s28 = int_to_ptr.vmem [resolvable:$true] %s294_s28 }
  0x22   : > { %p2827_p2 = pnand %p2242_p1, %p3478_p4 }
  0x24   : > { %p2841_p8 = pneg %p2827_p2 }
  0x27   : > { %s2442_s16 = scalar_lea.hbm %s3522_s2, 6144 }
  0x28   : > { %p2443_p7 = scmp.ne.s32.totalorder %s3522_s2, %s2442_s16  ;;  %p2449_p1 = scmp.lt.u32.totalorder %s2442_s16, %s3522_s2 }
  0x2a   : > { %p2445_p9 = pnand %p2841_p8, %p2443_p7 }
  0x2c   : > { %p2446_p10 = pneg %p2445_p9 }
  0x2e   : > { %p2451_p0 = pnand %p2449_p1, %p2446_p10 }
  0x30   : > { %2454 = shalt.err (!%p2451_p0)
}
  0x31   : > { %s2455_s27 = scalar_lea.vmem %s279_s25, 6144  ;;  %p2463_p11 = scmp.lt.s32.totalorder %s279_s25, %s279_s25 }
  0x32   : > { %p2456_p4 = scmp.ne.s32.totalorder %s279_s25, %s2455_s27  ;;  %p2464_p6 = scmp.lt.s32.totalorder %s2455_s27, %s2455_s27 }
  0x34   : > { %p2458_p3 = pnand %p2456_p4, %p2841_p8  ;;  %p2465_p13 = por %p2464_p6, %p2463_p11 }
  0x36   : > { %p2459_p12 = pneg %p2458_p3 }
  0x38   : > { %p2466_p5 = pnand %p2465_p13, %p2459_p12 }
  0x3a   : > { %2469 = shalt.err (!%p2466_p5)
}
  0x3b   : > { %s2690_s18 = smov 384   ;;  %s2691_s15 = smov 24  }
  0x3c   : > { %2245 = dma.hbm_to_vmem [thread:$0]  (!%p2827_p2), %s3522_s2, 6144, %s279_s25, [#allocation7], %s2690_s18, %s2690_s18, %s2691_s15  }
  0x3d   : > { %p3524_p0 = scmp.ne.s32.totalorder %s3514_s19, 0  ;;  %p3525_p7 = scmp.lt.s32.totalorder %s2674_s12, 2 }
  0x3e   : > { %s2470_s27 = scalar_lea.hbm %s3469_s4, 3072 }
  0x3f   : > { %p2861_p4 = pnand %p3525_p7, %p3524_p0  ;;  %p2471_p5 = scmp.ne.s32.totalorder %s3469_s4, %s2470_s27 }
  0x40   : > { %p2477_p12 = scmp.lt.u32.totalorder %s2470_s27, %s3469_s4 }
  0x41   : > { %s3526_s14 = scalar_select %p2861_p4, 1, 0 }
  0x42   : > { %p2473_p6 = pnand %p2471_p5, %p2841_p8 }
  0x44   : > { %p2474_p11 = pneg %p2473_p6 }
  0x46   : > { %p2479_p13 = pnand %p2477_p12, %p2474_p11 }
  0x48   : > { %2482 = shalt.err (!%p2479_p13)
}
  0x49   : > { %s2483_s19 = scalar_lea.vmem %s295_s28, 3072  ;;  %p2491_p1 = scmp.lt.s32.totalorder %s295_s28, %s295_s28 }
  0x4a   : > { %p2484_p3 = scmp.ne.s32.totalorder %s295_s28, %s2483_s19  ;;  %p2492_p0 = scmp.lt.s32.totalorder %s2483_s19, %s2483_s19 }
  0x4c   : > { %p2486_p9 = pnand %p2484_p3, %p2841_p8  ;;  %p2493_p7 = por %p2492_p0, %p2491_p1 }
  0x4e   : > { %p2487_p10 = pneg %p2486_p9 }
  0x50   : > { %p2494_p4 = pnand %p2493_p7, %p2487_p10 }
  0x52   : > { %2497 = shalt.err (!%p2494_p4)
}
  0x53   : > { %s2692_s9 = smov 192   ;;  %s2693_s30 = smov 12  }
  0x54   : > { %2248 = dma.hbm_to_vmem [thread:$0]  (!%p2827_p2), %s3469_s4, 3072, %s295_s28, [#allocation7], %s2692_s9, %s2692_s9, %s2693_s30  }
  0x55   : > { %s2694_s29 = smov [#allocation9]   ;;  %s327_s17 = sand.u32 1, %s2670_s11  }
  0x56   : > { %s307_s16 = sshll.u32 %s2694_s29, 4  ;;  %s2498_s25 = scalar_lea.hbm %s3470_s5, 3072  ;;  %s308_s16 = int_to_ptr.vmem [resolvable:$true] %s307_s16 }
  0x57   : > { %p2499_p4 = scmp.ne.s32.totalorder %s3470_s5, %s2498_s25  ;;  %p2505_p11 = scmp.lt.u32.totalorder %s2498_s25, %s3470_s5 }
  0x59   : > { %p2501_p5 = pnand %p2499_p4, %p2841_p8 }
  0x5b   : > { %p2502_p6 = pneg %p2501_p5 }
  0x5d   : > { %p2507_p12 = pnand %p2505_p11, %p2502_p6 }
  0x5f   : > { %2510 = shalt.err (!%p2507_p12)
}
  0x60   : > { %s2511_s28 = scalar_lea.vmem %s308_s16, 3072  ;;  %p2519_p10 = scmp.lt.s32.totalorder %s308_s16, %s308_s16 }
  0x61   : > { %p2512_p13 = scmp.ne.s32.totalorder %s308_s16, %s2511_s28  ;;  %p2520_p1 = scmp.lt.s32.totalorder %s2511_s28, %s2511_s28 }
  0x63   : > { %p2514_p3 = pnand %p2512_p13, %p2841_p8  ;;  %p2521_p0 = por %p2520_p1, %p2519_p10 }
  0x65   : > { %p2515_p9 = pneg %p2514_p3 }
  0x67   : > { %p2522_p7 = pnand %p2521_p0, %p2515_p9 }
  0x69   : > { %2525 = shalt.err (!%p2522_p7)
}
  0x6a   : > { %2251 = dma.hbm_to_vmem [thread:$0]  (!%p2827_p2), %s3470_s5, 3072, %s308_s16, [#allocation10], %s2692_s9, %s2692_s9, %s2693_s30  }
  0x6b   : > { %s1973_s8 = sshll.u32 %s327_s17, 5  ;;  %s1974_s21 = sshll.u32 %s2674_s12, 6 }
  0x6c   : > { %s2906_s29 = scalar_lea.hbm %s3465_s0, %s1974_s21  ;;  %s331_s27 = scalar_lea.vmem [#allocation3], %s1973_s8 }
  0x6d   : > { %s337_s26 = sshll.u32 %s331_s27, 4  ;;  %s2910_s22 = scalar_lea.sflag [#allocation4], %s327_s17  ;;  %s2908_s26 = int_to_ptr.vmem [resolvable:$true] %s337_s26 }
  0x6e   : > { %s2526_s25 = scalar_lea.hbm %s2906_s29, 512  ;;  %p3527_p2 = scmp.ne.s32.totalorder %s3526_s14, 0 }
  0x6f   : > { %p2527_p8 = scmp.ne.s32.totalorder %s2906_s29, %s2526_s25  ;;  %s2531_s16 = scalar_lea.hbm %s3465_s0, 1024 }
  0x70   : > { %p2528_p4 = pneg %p3527_p2  ;;  %p2532_p11 = scmp.lt.u32.totalorder %s2906_s29, %s3465_s0 }
  0x71   : > { %p2533_p12 = scmp.lt.u32.totalorder %s2531_s16, %s2526_s25  ;;  %p2535_p3 = scmp.lt.u32.totalorder %s2526_s25, %s2906_s29 }
  0x72   : > { %p2529_p5 = pnand %p2528_p4, %p2527_p8 }
  0x73   : > { %p2534_p13 = por %p2533_p12, %p2532_p11 }
  0x74   : > { %p2530_p6 = pneg %p2529_p5 }
  0x75   : > { %p2536_p9 = por %p2535_p3, %p2534_p13 }
  0x77   : > { %p2537_p10 = pnand %p2536_p9, %p2530_p6 }
  0x79   : > { %2540 = shalt.err (!%p2537_p10)
}
  0x7a   : > { %s2541_s17 = scalar_lea.vmem %s2908_s26, 512  ;;  %s2695_s2 = smov [#allocation3]  }
  0x7b   : > { %p2542_p1 = scmp.ne.s32.totalorder %s2908_s26, %s2541_s17  ;;  %s2546_s18 = sshll.u32 %s2695_s2, 4  ;;  %s2547_s18 = int_to_ptr.vmem [resolvable:$false] %s2546_s18 }
  0x7c   : > { %s2548_s8 = scalar_lea.vmem %s2547_s18, 1024  ;;  %p2549_p8 = scmp.lt.s32.totalorder %s2908_s26, %s2547_s18 }
  0x7d   : > { %p2544_p0 = pnand %p2542_p1, %p2528_p4  ;;  %p2550_p5 = scmp.lt.s32.totalorder %s2548_s8, %s2541_s17 }
  0x7f   : > { %p2545_p7 = pneg %p2544_p0  ;;  %p2551_p11 = por %p2550_p5, %p2549_p8 }
  0x81   : > { %p2552_p12 = pnand %p2551_p11, %p2545_p7 }
  0x83   : > { %2555 = shalt.err (!%p2552_p12)
}
  0x84   : > { %s2696_s21 = smov 128   ;;  %s2697_s15 = smov 64  }
  0x85   : > { %s2698_s24 = smov 4   ;;  %p3528_p4 = scmp.ne.s32.totalorder %s3520_s23, 0 }
  0x86   : > { %2255 = dma.hbm_to_vmem [thread:$0]  (!%p3527_p2), %s2906_s29, 512, %s2908_s26, %s2910_s22, %s2696_s21, %s2697_s15, %s2698_s24  }
  0x87   : > { %356 = sbr.rel (%p3528_p4) target bundleno = 846 (0x34e), region = 52 }
  0x8e   : > { %s2941_s27 = sand.u32 1, %s2666_s10   ;;  %p3529_p6 = scmp.ne.s32.totalorder %s3515_s20, 0 }
  0x8f   : > { %s1976_s25 = sshll.u32 %s2941_s27, 5  ;;  %s359_s9 = scalar_lea.sflag [#allocation4], %s2941_s27 }
  0x90   : > { %s2945_s30 = scalar_lea.vmem [#allocation3], %s1976_s25 }
  0x91   : > { %2641 = dma.done.wait (%p3529_p6), %s359_s9, 512  }
  0x92   : > { %2643 = vsyncadd (%p3529_p6), %s359_s9, 4294966784  ;;  %p3530_p2 = scmp.eq.s32.totalorder %s2780_s13, 0 }
  0x94   : > { %2645 = dma.done.wait (%p3530_p2), [#allocation7], 9216   ;;  %p3531_p13 = pmov %p3530_p2 }
  0x95   : > { %p3532_p3 = pmov %p3530_p2 }
  0x96   : > { %2647 = vsyncadd (%p3531_p13), [#allocation7], 4294958080 }
  0x97   : > { %2649 = dma.done.wait (%p3532_p3), [#allocation10], 3072   ;;  %p3533_p9 = pmov %p3530_p2 }
  0x98   : > { %s1980_s23 = sshll.u32 %s2941_s27, 6  ;;  %p418_p10 = scmp.lt.s32.totalorder %s2780_s13, 1  ;;  %v3488_v0 = vmov 0   ;;  %v2700_v1 = vmov 0.0   ;;  %v2983_v3 = vld [vmem:[%s3471_s6] ss:$0 sm:$0xff] }
  0x99   : > { %2651 = vsyncadd (%p3533_p9), [#allocation10], 4294964224  ;;  %s1981_s20 = sshll.u32 %s2941_s27, 4  ;;  %808 = vmatprep.mubr.bf16.mxu0 %v3488_v0  ;;  %881 = vmatprep.mubr.bf16.mxu1 %v3488_v0  ;;  %s2965_s29 = scalar_lea.vmem [#allocation11], %s1980_s23  ;;  %3535 = vst [vmem:[#allocation25_spill] sm:$0xff] %v2983_v3  ;;  %v2990_v5 = vld [vmem:[#allocation8] sm:$0xff] }
  0x9a   : > { %s419_s14 = scalar_select %p418_p10, %s2780_s13, 1  ;;  %1241 = vst [vmem:[%s2965_s29] sm:$0xff] %v2700_v1  ;;  %1242 = vst [vmem:[%s2965_s29 + $0x8] sm:$0xff] %v2700_v1  ;;  %v2988_v4 = vld [vmem:[%s3472_s7] ss:$0 sm:$0xff]  ;;  %v2992_v6 = vld [vmem:[#allocation8 + $0x8] sm:$0xf] }
  0x9b   : > { %1243 = vst [vmem:[%s2965_s29 + $0x10] sm:$0xff] %v2700_v1  ;;  %1244 = vst [vmem:[%s2965_s29 + $0x18] sm:$0xff] %v2700_v1  ;;  %v2994_v7 = vld [vmem:[#allocation8 + $0xc] sm:$0xff]  ;;  %v2996_v8 = vld [vmem:[#allocation8 + $0x14] sm:$0xf]  ;;  %s3198_s15 = scalar_lea.vmem [#allocation12], %s1981_s20 }
  0x9c   : > { %1245 = vst [vmem:[%s2965_s29 + $0x20] sm:$0xff] %v2700_v1  ;;  %1246 = vst [vmem:[%s2965_s29 + $0x28] sm:$0xff] %v2700_v1  ;;  %s1982_s26 = sshll.u32 %s419_s14, 3  ;;  %v2998_v9 = vld [vmem:[#allocation8 + $0x18] sm:$0xff]  ;;  %v3000_v10 = vld [vmem:[#allocation8 + $0x20] sm:$0xf] }
  0x9d   : > { %1247 = vst [vmem:[%s2965_s29 + $0x30] sm:$0xff] %v2700_v1  ;;  %1248 = vst [vmem:[%s2965_s29 + $0x38] sm:$0xff] %v2700_v1  ;;  %s421_s19 = scalar_lea.vmem %s3466_s1, %s1982_s26  ;;  %v3002_v11 = vld [vmem:[#allocation8 + $0x24] sm:$0xff]  ;;  %v3004_v12 = vld [vmem:[#allocation8 + $0x2c] sm:$0xf]  ;;  %s3204_s24 = smov 0  }
  0x9e   : > { %v2978_v2 = vld [vmem:[%s421_s19] sm:$0xff]  ;;  %3536 = vst [vmem:[#allocation26_spill] sm:$0xff] %v2988_v4  ;;  %3537 = vst [vmem:[#allocation27_spill] sm:$0xff] %v2990_v5  ;;  %v3006_v13 = vld [vmem:[#allocation8 + $0x30] sm:$0xff] }
  0x9f   : > { %3534 = vst [vmem:[#allocation24_spill] sm:$0xff] %v2978_v2  ;;  %3538 = vst [vmem:[#allocation28_spill] sm:$0xff] %v2992_v6  ;;  %v3008_v14 = vld [vmem:[#allocation8 + $0x38] sm:$0xf]  ;;  %v3010_v15 = vld [vmem:[#allocation8 + $0x3c] sm:$0xff] }
  0xa0   : > { %3539 = vst [vmem:[#allocation29_spill] sm:$0xff] %v2994_v7  ;;  %3540 = vst [vmem:[#allocation30_spill] sm:$0xff] %v2996_v8  ;;  %v3012_v16 = vld [vmem:[#allocation8 + $0x44] sm:$0xf]  ;;  %v3014_v17 = vld [vmem:[#allocation8 + $0x48] sm:$0xff] }
  0xa1   : > { %3541 = vst [vmem:[#allocation31_spill] sm:$0xff] %v2998_v9  ;;  %3542 = vst [vmem:[#allocation32_spill] sm:$0xff] %v3000_v10  ;;  %v3016_v18 = vld [vmem:[#allocation8 + $0x50] sm:$0xf]  ;;  %v3018_v19 = vld [vmem:[#allocation8 + $0x54] sm:$0xff] }
  0xa2   : > { %v3020_v20 = vld [vmem:[#allocation8 + $0x5c] sm:$0xf]  ;;  %v3022_v21 = vld [vmem:[#allocation8 + $0x60] sm:$0xff]  ;;  %v3024_v22 = vld [vmem:[#allocation8 + $0x68] sm:$0xf] }
  0xa3   : > { %v3026_v23 = vld [vmem:[#allocation8 + $0x6c] sm:$0xff]  ;;  %v3028_v24 = vld [vmem:[#allocation8 + $0x74] sm:$0xf]  ;;  %v3030_v25 = vld [vmem:[#allocation8 + $0x78] sm:$0xff] }
  0xa4   : > { %v3032_v26 = vld [vmem:[#allocation8 + $0x80] sm:$0xf]  ;;  %v3034_v27 = vld [vmem:[#allocation8 + $0x84] sm:$0xff]  ;;  %v3036_v28 = vld [vmem:[#allocation8 + $0x8c] sm:$0xf] }
  0xa5   : > { %v3038_v29 = vld [vmem:[#allocation8 + $0x90] sm:$0xff]  ;;  %v3040_v30 = vld [vmem:[#allocation8 + $0x98] sm:$0xf]  ;;  %v3042_v31 = vld [vmem:[#allocation8 + $0x9c] sm:$0xff] }
  0xa6   : > { %v3044_v32 = vld [vmem:[#allocation8 + $0xa4] sm:$0xf]  ;;  %v3046_v33 = vld [vmem:[#allocation8 + $0xa8] sm:$0xff]  ;;  %v3048_v34 = vld [vmem:[#allocation8 + $0xb0] sm:$0xf] }
  0xa7   : > { %v3050_v35 = vld [vmem:[#allocation8 + $0xb4] sm:$0xff]  ;;  %v3052_v36 = vld [vmem:[#allocation8 + $0xbc] sm:$0xf]  ;;  %v3054_v37 = vld [vmem:[#allocation9] sm:$0xff] }
  0xa8   : > { %v3056_v38 = vld [vmem:[#allocation9 + $0x8] sm:$0xf]  ;;  %v3058_v39 = vld [vmem:[#allocation9 + $0xc] sm:$0xff]  ;;  %v3060_v40 = vld [vmem:[#allocation9 + $0x14] sm:$0xf] }
  0xa9   : > { %v3062_v41 = vld [vmem:[#allocation9 + $0x18] sm:$0xff]  ;;  %v3064_v42 = vld [vmem:[#allocation9 + $0x20] sm:$0xf]  ;;  %v3066_v43 = vld [vmem:[#allocation9 + $0x24] sm:$0xff] }
  0xaa   : > { %3543 = vst [vmem:[#allocation33_spill] sm:$0xff] %v3064_v42  ;;  %v3068_v44 = vld [vmem:[#allocation9 + $0x2c] sm:$0xf]  ;;  %v3070_v45 = vld [vmem:[#allocation9 + $0x30] sm:$0xff]  ;;  %v3072_v46 = vld [vmem:[#allocation9 + $0x38] sm:$0xf] }
  0xab   : > { %3544 = vst [vmem:[#allocation34_spill] sm:$0xff] %v3068_v44  ;;  %3545 = vst [vmem:[#allocation35_spill] sm:$0xff] %v3070_v45  ;;  %v3074_v47 = vld [vmem:[#allocation9 + $0x3c] sm:$0xff]  ;;  %v3076_v48 = vld [vmem:[#allocation9 + $0x44] sm:$0xf] }
  0xac   : > { %3546 = vst [vmem:[#allocation36_spill] sm:$0xff] %v3072_v46  ;;  %3547 = vst [vmem:[#allocation37_spill] sm:$0xff] %v3074_v47  ;;  %v3078_v49 = vld [vmem:[#allocation9 + $0x48] sm:$0xff]  ;;  %v3080_v50 = vld [vmem:[#allocation9 + $0x50] sm:$0xf] }
  0xad   : > { %3548 = vst [vmem:[#allocation38_spill] sm:$0xff] %v3076_v48  ;;  %3549 = vst [vmem:[#allocation39_spill] sm:$0xff] %v3078_v49  ;;  %v3082_v51 = vld [vmem:[#allocation9 + $0x54] sm:$0xff]  ;;  %v3084_v52 = vld [vmem:[#allocation9 + $0x5c] sm:$0xf] }
  0xae   : > { %3550 = vst [vmem:[#allocation40_spill] sm:$0xff] %v3080_v50  ;;  %3551 = vst [vmem:[#allocation41_spill] sm:$0xff] %v3082_v51  ;;  %v3086_v53 = vld [vmem:[#allocation9 + $0x60] sm:$0xff]  ;;  %v3088_v54 = vld [vmem:[#allocation9 + $0x68] sm:$0xf] }
  0xaf   : > { %3552 = vst [vmem:[#allocation42_spill] sm:$0xff] %v3084_v52  ;;  %3553 = vst [vmem:[#allocation43_spill] sm:$0xff] %v3086_v53  ;;  %v3090_v55 = vld [vmem:[#allocation9 + $0x6c] sm:$0xff]  ;;  %v3092_v56 = vld [vmem:[#allocation9 + $0x74] sm:$0xf] }
  0xb0   : > { %3554 = vst [vmem:[#allocation44_spill] sm:$0xff] %v3088_v54  ;;  %3555 = vst [vmem:[#allocation45_spill] sm:$0xff] %v3090_v55  ;;  %v3094_v57 = vld [vmem:[#allocation9 + $0x78] sm:$0xff]  ;;  %v3096_v58 = vld [vmem:[#allocation9 + $0x80] sm:$0xf] }
  0xb1   : > { %3556 = vst [vmem:[#allocation46_spill] sm:$0xff] %v3092_v56  ;;  %3557 = vst [vmem:[#allocation47_spill] sm:$0xff] %v3094_v57  ;;  %v3098_v59 = vld [vmem:[#allocation9 + $0x84] sm:$0xff]  ;;  %v3100_v60 = vld [vmem:[#allocation9 + $0x8c] sm:$0xf] }
  0xb2   : > { %3558 = vst [vmem:[#allocation48_spill] sm:$0xff] %v3096_v58  ;;  %3559 = vst [vmem:[#allocation49_spill] sm:$0xff] %v3098_v59  ;;  %v3102_v61 = vld [vmem:[#allocation9 + $0x90] sm:$0xff]  ;;  %v3104_v62 = vld [vmem:[#allocation9 + $0x98] sm:$0xf] }
  0xb3   : > { %3560 = vst [vmem:[#allocation50_spill] sm:$0xff] %v3100_v60  ;;  %3561 = vst [vmem:[#allocation51_spill] sm:$0xff] %v3102_v61  ;;  %v3106_v63 = vld [vmem:[#allocation9 + $0x9c] sm:$0xff]  ;;  %v3108_v1 = vld [vmem:[#allocation9 + $0xa4] sm:$0xf] }
  0xb4   : > { %3562 = vst [vmem:[#allocation52_spill] sm:$0xff] %v3104_v62  ;;  %3563 = vst [vmem:[#allocation53_spill] sm:$0xff] %v3106_v63  ;;  %v3110_v0 = vld [vmem:[#allocation9 + $0xa8] sm:$0xff]  ;;  %v3112_v4 = vld [vmem:[#allocation9 + $0xb0] sm:$0xf] }
  0xb5   : > { %3564 = vst [vmem:[#allocation54_spill] sm:$0xff] %v3108_v1  ;;  %3565 = vst [vmem:[#allocation55_spill] sm:$0xff] %v3110_v0  ;;  %v3114_v3 = vld [vmem:[#allocation9 + $0xb4] sm:$0xff]  ;;  %v3116_v54 = vld [vmem:[#allocation9 + $0xbc] sm:$0xf] }
  0xb6   : > { %3566 = vst [vmem:[#allocation56_spill] sm:$0xff] %v3112_v4  ;;  %3567 = vst [vmem:[#allocation57_spill] sm:$0xff] %v3114_v3  ;;  %v2345_v58 = vld [vmem:[#allocation6 + $0x4] ss:$24 sps:$4 sm:$0xff]   ;;  %v2349_v57 = vld [vmem:[#allocation6] ss:$24 sps:$4 sm:$0xff]  }
  0xb7   : > { %3568 = vst [vmem:[#allocation58_spill] sm:$0xff] %v3116_v54  ;;  %v2347_v56 = vld [vmem:[#allocation6 + $0xc] ss:$24 sps:$4 sm:$0xff]   ;;  %v2350_v60 = vld [vmem:[#allocation6 + $0x8] ss:$24 sps:$4 sm:$0xff]   ;;  %776 = vmatprep.subr.bf16.mxu0 %v2345_v58 }
  0xb8   : > { %v2351_v61 = vld [vmem:[#allocation6 + $0x34] ss:$24 sps:$4 sm:$0xff]   ;;  %849 = vmatprep.subr.bf16.mxu1 %v2347_v56  ;;  %777 = vmatpush1.bf16.msra.mxu0 %v2349_v57  ;;  %v2355_v1 = vld [vmem:[#allocation6 + $0x30] ss:$24 sps:$4 sm:$0xff]   ;;  %v2357_v0 = vld [vmem:[#allocation6 + $0x64] ss:$24 sps:$4 sm:$0xff]  }
  0xb9   : > { %v2353_v62 = vld [vmem:[#allocation6 + $0x3c] ss:$24 sps:$4 sm:$0xff]   ;;  %850 = vmatpush1.bf16.msra.mxu1 %v2350_v60  ;;  %778 = vmatprep.subr.bf16.mxu0 %v2351_v61  ;;  %v2356_v63 = vld [vmem:[#allocation6 + $0x38] ss:$24 sps:$4 sm:$0xff]   ;;  %v2359_v4 = vld [vmem:[#allocation6 + $0x6c] ss:$24 sps:$4 sm:$0xff]  }
  0xba   : > { %851 = vmatprep.subr.bf16.mxu1 %v2353_v62  ;;  %v2361_v59 = vld [vmem:[#allocation6 + $0x60] ss:$24 sps:$4 sm:$0xff]   ;;  %v2363_v54 = vld [vmem:[#allocation6 + $0x94] ss:$24 sps:$4 sm:$0xff]   ;;  %v2367_v58 = vld [vmem:[#allocation6 + $0x90] ss:$24 sps:$4 sm:$0xff]  }
  0xbb   : > { %v2362_v3 = vld [vmem:[#allocation6 + $0x68] ss:$24 sps:$4 sm:$0xff]   ;;  %v2365_v50 = vld [vmem:[#allocation6 + $0x9c] ss:$24 sps:$4 sm:$0xff]   ;;  %v2368_v56 = vld [vmem:[#allocation6 + $0x98] ss:$24 sps:$4 sm:$0xff]  }
  0xbc   : > { %779 = vmatpush1.bf16.msra.mxu0 %v2355_v1  ;;  %v2369_v57 = vld [vmem:[#allocation6 + $0xc4] ss:$24 sps:$4 sm:$0xff]   ;;  %v2373_v61 = vld [vmem:[#allocation6 + $0xc0] ss:$24 sps:$4 sm:$0xff]   ;;  %v2375_v1 = vld [vmem:[#allocation6 + $0xf4] ss:$24 sps:$4 sm:$0xff]  }
  0xbd   : > { %852 = vmatpush1.bf16.msra.mxu1 %v2356_v63  ;;  %780 = vmatprep.subr.bf16.mxu0 %v2357_v0  ;;  %v2371_v60 = vld [vmem:[#allocation6 + $0xcc] ss:$24 sps:$4 sm:$0xff]   ;;  %v2374_v62 = vld [vmem:[#allocation6 + $0xc8] ss:$24 sps:$4 sm:$0xff]   ;;  %v2377_v63 = vld [vmem:[#allocation6 + $0xfc] ss:$24 sps:$4 sm:$0xff]  }
  0xbe   : > { %853 = vmatprep.subr.bf16.mxu1 %v2359_v4  ;;  %v2379_v0 = vld [vmem:[#allocation6 + $0xf0] ss:$24 sps:$4 sm:$0xff]  }
  0xbf   : > { %v2380_v4 = vld [vmem:[#allocation6 + $0xf8] ss:$24 sps:$4 sm:$0xff]  }
  0xc0   : > { %781 = vmatpush1.bf16.msra.mxu0 %v2361_v59  ;;  %v2381_v59 = vld [vmem:[#allocation6 + $0x124] ss:$24 sps:$4 sm:$0xff]  }
  0xc1   : > { %854 = vmatpush1.bf16.msra.mxu1 %v2362_v3  ;;  %782 = vmatprep.subr.bf16.mxu0 %v2363_v54  ;;  %v2383_v3 = vld [vmem:[#allocation6 + $0x12c] ss:$24 sps:$4 sm:$0xff]   ;;  %v2385_v54 = vld [vmem:[#allocation6 + $0x120] ss:$24 sps:$4 sm:$0xff]  }
  0xc2   : > { %855 = vmatprep.subr.bf16.mxu1 %v2365_v50  ;;  %v2386_v50 = vld [vmem:[#allocation6 + $0x128] ss:$24 sps:$4 sm:$0xff]  }
  0xc4   : > { %783 = vmatpush1.bf16.msra.mxu0 %v2367_v58  ;;  %v2387_v58 = vld [vmem:[#allocation6 + $0x154] ss:$24 sps:$4 sm:$0xff]  }
  0xc5   : > { %856 = vmatpush1.bf16.msra.mxu1 %v2368_v56  ;;  %784 = vmatprep.subr.bf16.mxu0 %v2369_v57  ;;  %v2389_v56 = vld [vmem:[#allocation6 + $0x15c] ss:$24 sps:$4 sm:$0xff]   ;;  %v2391_v57 = vld [vmem:[#allocation6 + $0x150] ss:$24 sps:$4 sm:$0xff]  }
  0xc6   : > { %857 = vmatprep.subr.bf16.mxu1 %v2371_v60  ;;  %v2392_v60 = vld [vmem:[#allocation6 + $0x158] ss:$24 sps:$4 sm:$0xff]  }
  0xc8   : > { %785 = vmatpush1.bf16.msra.mxu0 %v2373_v61  ;;  %v2396_v61 = vld [vmem:[#allocation6 + $0x14] ss:$24 sps:$4 sm:$0xff]  }
  0xc9   : > { %858 = vmatpush1.bf16.msra.mxu1 %v2374_v62  ;;  %786 = vmatprep.subr.bf16.mxu0 %v2375_v1  ;;  %v3119_v62 = vld [vmem:[%s2945_s30] sm:$0xff]   ;;  %v2394_v1 = vld [vmem:[#allocation6 + $0x10] ss:$24 sps:$4 sm:$0xff]  }
  0xca   : > { %859 = vmatprep.subr.bf16.mxu1 %v2377_v63  ;;  %v2399_v63 = vld [vmem:[#allocation6 + $0x44] ss:$24 sps:$4 sm:$0xff]  }
  0xcc   : > { %787 = vmatpush1.bf16.msra.mxu0 %v2379_v0  ;;  %v2397_v0 = vld [vmem:[#allocation6 + $0x40] ss:$24 sps:$4 sm:$0xff]  }
  0xcd   : > { %860 = vmatpush1.bf16.msra.mxu1 %v2380_v4  ;;  %788 = vmatprep.subr.bf16.mxu0 %v2381_v59  ;;  %v2403_v4 = vld [vmem:[#allocation6 + $0x74] ss:$24 sps:$4 sm:$0xff]   ;;  %v3569_v59 = vmov 0  }
  0xce   : > { %861 = vmatprep.subr.bf16.mxu1 %v2383_v3  ;;  %v2400_v3 = vld [vmem:[%s2945_s30 + $0x8] sm:$0xff]  }
  0xd0   : > { %789 = vmatpush1.bf16.msra.mxu0 %v2385_v54  ;;  %v2401_v54 = vld [vmem:[#allocation6 + $0x70] ss:$24 sps:$4 sm:$0xff]  }
  0xd1   : > { %862 = vmatpush1.bf16.msra.mxu1 %v2386_v50  ;;  %790 = vmatprep.subr.bf16.mxu0 %v2387_v58  ;;  %v2406_v50 = vld [vmem:[#allocation6 + $0xa4] ss:$24 sps:$4 sm:$0xff]   ;;  %v2404_v58 = vld [vmem:[#allocation6 + $0xa0] ss:$24 sps:$4 sm:$0xff]  }
  0xd2   : > { %863 = vmatprep.subr.bf16.mxu1 %v2389_v56  ;;  %v2410_v56 = vld [vmem:[#allocation6 + $0xd4] ss:$24 sps:$4 sm:$0xff]  }
  0xd4   : > { %791 = vmatpush1.bf16.msra.mxu0 %v2391_v57  ;;  %v2407_v57 = vld [vmem:[%s2945_s30 + $0x10] sm:$0xff]  }
  0xd5   : > { %864 = vmatpush1.bf16.msra.mxu1 %v2392_v60  ;;  %922 = vmatprep.subr.bf16.mxu0 %v2396_v61  ;;  %v2408_v60 = vld [vmem:[#allocation6 + $0xd0] ss:$24 sps:$4 sm:$0xff]  }
  0xd6   : > { %2208 = vmatprep.subr.bf16.mxu1 %v2396_v61  ;;  %v2413_v61 = vld [vmem:[#allocation6 + $0x104] ss:$24 sps:$4 sm:$0xff]  }
  0xd7   : > { %809 = vmatmul.mubr.bf16.vlgmr.msra.gmra.mrb[0].mxu0 %v3119_v62 }
  0xd8   : > { %882 = vmatmul.mubr.bf16.vlgmr.msra.gmra.mrb[0].mxu1 %v3119_v62  ;;  %923 = vmatpush1.bf16.msra.mxu0 %v2394_v1 }
  0xd9   : > { %2216 = vmatpush1.bf16.msra.mxu1 %v2394_v1  ;;  %924 = vmatprep.subr.bf16.mxu0 %v2399_v63  ;;  %v2411_v1 = vld [vmem:[#allocation6 + $0x100] ss:$24 sps:$4 sm:$0xff]  }
  0xda   : > { %2209 = vmatprep.subr.bf16.mxu1 %v2399_v63  ;;  %818 = vmatprep.mubr.bf16.mxu0 %v3569_v59  ;;  %v2417_v63 = vld [vmem:[#allocation6 + $0x134] ss:$24 sps:$4 sm:$0xff]  }
  0xdb   : > { %891 = vmatprep.mubr.bf16.mxu1 %v3569_v59 }
  0xdc   : > { %925 = vmatpush1.bf16.msra.mxu0 %v2397_v0 }
  0xdd   : > { %2217 = vmatpush1.bf16.msra.mxu1 %v2397_v0  ;;  %926 = vmatprep.subr.bf16.mxu0 %v2403_v4  ;;  %v2414_v0 = vld [vmem:[%s2945_s30 + $0x18] sm:$0xff]  }
  0xde   : > { %2210 = vmatprep.subr.bf16.mxu1 %v2403_v4  ;;  %v2415_v4 = vld [vmem:[#allocation6 + $0x130] ss:$24 sps:$4 sm:$0xff]  }
  0xdf   : > { %819 = vmatmul.mubr.bf16.gmra.mrb[4].mxu0 %v2400_v3 }
  0xe0   : > { %892 = vmatmul.mubr.bf16.gmra.mrb[4].mxu1 %v2400_v3  ;;  %927 = vmatpush1.bf16.msra.mxu0 %v2401_v54 }
  0xe1   : > { %2218 = vmatpush1.bf16.msra.mxu1 %v2401_v54  ;;  %928 = vmatprep.subr.bf16.mxu0 %v2406_v50  ;;  %v2420_v54 = vld [vmem:[#allocation6 + $0x164] ss:$24 sps:$4 sm:$0xff]  }
  0xe2   : > { %2211 = vmatprep.subr.bf16.mxu1 %v2406_v50  ;;  %828 = vmatprep.mubr.bf16.mxu0 %v3569_v59  ;;  %v2418_v50 = vld [vmem:[#allocation6 + $0x160] ss:$24 sps:$4 sm:$0xff]  }
  0xe3   : > { %901 = vmatprep.mubr.bf16.mxu1 %v3569_v59 }
  0xe4   : > { %929 = vmatpush1.bf16.msra.mxu0 %v2404_v58 }
  0xe5   : > { %2219 = vmatpush1.bf16.msra.mxu1 %v2404_v58  ;;  %930 = vmatprep.subr.bf16.mxu0 %v2410_v56  ;;  %v482_v58 = vlaneseq }
  0xe6   : > { %2212 = vmatprep.subr.bf16.mxu1 %v2410_v56 }
  0xe7   : > { %829 = vmatmul.mubr.bf16.gmra.mrb[8].mxu0 %v2407_v57  ;;  %v3137_v56 = vshrl.u32 %v482_v58, 7 }
  0xe8   : > { %902 = vmatmul.mubr.bf16.gmra.mrb[8].mxu1 %v2407_v57  ;;  %931 = vmatpush1.bf16.msra.mxu0 %v2408_v60 }
  0xe9   : > { %2220 = vmatpush1.bf16.msra.mxu1 %v2408_v60  ;;  %932 = vmatprep.subr.bf16.mxu0 %v2413_v61  ;;  %v484_v60 = vsub.s32 0, %v3137_v56 }
  0xea   : > { %2213 = vmatprep.subr.bf16.mxu1 %v2413_v61  ;;  %838 = vmatprep.mubr.bf16.mxu0 %v3569_v59  ;;  %v3143_v61 = vld [vmem:[%s3468_s3] sm:$0x3f] }
  0xeb   : > { %911 = vmatprep.mubr.bf16.mxu1 %v3569_v59 }
  0xec   : > { %933 = vmatpush1.bf16.msra.mxu0 %v2411_v1 }
  0xed   : > { %2221 = vmatpush1.bf16.msra.mxu1 %v2411_v1  ;;  %934 = vmatprep.subr.bf16.mxu0 %v2417_v63  ;;  %v492_v1 = vsub.s32 2, %v3137_v56 }
  0xee   : > { %2214 = vmatprep.subr.bf16.mxu1 %v2417_v63 }
  0xef   : > { %839 = vmatmul.mubr.bf16.gmra.mrb[12].mxu0 %v2414_v0 }
  0xf0   : > { %912 = vmatmul.mubr.bf16.gmra.mrb[12].mxu1 %v2414_v0  ;;  %935 = vmatpush1.bf16.msra.mxu0 %v2415_v4 }
  0xf1   : > { %2222 = vmatpush1.bf16.msra.mxu1 %v2415_v4  ;;  %936 = vmatprep.subr.bf16.mxu0 %v2420_v54 }
  0xf2   : > { %2215 = vmatprep.subr.bf16.mxu1 %v2420_v54  ;;  %954 = vmatprep.mubr.bf16.mxu0 %v3569_v59 }
  0xf3   : > { %974 = vmatprep.mubr.bf16.mxu1 %v3569_v59 }
  0xf4   : > { %937 = vmatpush1.bf16.msra.mxu0 %v2418_v50 }
  0xf5   : > { %2223 = vmatpush1.bf16.msra.mxu1 %v2418_v50 }
  0xf7   : > { %955 = vmatmul.mubr.bf16.vlgmr.msra.gmra.mrb[16].mxu0 %v3119_v62  ;;  %v488_v62 = vsub.s32 1, %v3137_v56 }
  0xf8   : > { %975 = vmatmul.mubr.bf16.vlgmr.msra.gmra.mrb[16].mxu1 %v2407_v57  ;;  %964 = vmatprep.mubr.bf16.mxu0 %v3569_v59  ;;  %v496_v57 = vsub.s32 3, %v3137_v56 }
  0xf9   : > { %984 = vmatprep.mubr.bf16.mxu1 %v3569_v59  ;;  %v3149_v59 = vrot.slane %v3143_v61, %v484_v60  ;;  %v3155_v63 = vrot.slane %v3143_v61, %v488_v62 }
  0xff   : > { %965 = vmatmul.mubr.bf16.gmra.mrb[20].mxu0 %v2400_v3  ;;  %v3152_v3 = vrot.slane %v3143_v61, %v492_v1 }
 0x100   : > { %985 = vmatmul.mubr.bf16.gmra.mrb[20].mxu1 %v2414_v0  ;;  %v3158_v0 = vrot.slane %v3143_v61, %v496_v57 }
 0x1aa   : > { %v810_v4 = vpop.f32.mrb[0].mxu0 }
 0x1ab   : > { %v811_v54 = vadd.f32 %v810_v4, %v3149_v59  ;;  %v883_v50 = vpop.f32.mrb[0].mxu1  ;;  %v812_v58 = vpop.f32.mrb[1].mxu0 }
 0x1ac   : > { %v884_v52 = vadd.f32 %v883_v50, %v3152_v3  ;;  %v813_v53 = vadd.f32 %v812_v58, %v3155_v63  ;;  %v885_v60 = vpop.f32.mrb[1].mxu1  ;;  %v814_v55 = vpop.f32.mrb[2].mxu0 }
 0x1ad   : > { %v886_v1 = vadd.f32 %v885_v60, %v3158_v0  ;;  %v815_v46 = vadd.f32 %v814_v55, %v3149_v59  ;;  %v887_v62 = vpop.f32.mrb[2].mxu1  ;;  %v816_v48 = vpop.f32.mrb[3].mxu0 }
 0x1ae   : > { %v2124_v49 = vpack.c.bf16 %v813_v53, %v811_v54  ;;  %v888_v57 = vadd.f32 %v887_v62, %v3152_v3  ;;  %v817_v51 = vadd.f32 %v816_v48, %v3155_v63  ;;  %v889_v4 = vpop.f32.mrb[3].mxu1 }
 0x1af   : > { %v2125_v42 = vpack.c.bf16 %v886_v1, %v884_v52  ;;  %v890_v44 = vadd.f32 %v889_v4, %v3158_v0 }
 0x1b0   : > { %1139 = vst [vmem:[#allocation2] sm:$0xff] %v2124_v49  ;;  %v2127_v50 = vpack.c.bf16 %v817_v51, %v815_v46 }
 0x1b1   : > { %1140 = vst [vmem:[#allocation2 + $0x8] sm:$0xff] %v2125_v42  ;;  %v2128_v58 = vpack.c.bf16 %v890_v44, %v888_v57 }
 0x1b2   : > { %1142 = vst [vmem:[#allocation2 + $0x18] sm:$0xff] %v2127_v50  ;;  %v820_v45 = vpop.f32.mrb[4].mxu0 }
 0x1b3   : > { %1143 = vst [vmem:[#allocation2 + $0x20] sm:$0xff] %v2128_v58  ;;  %v821_v55 = vadd.f32 %v820_v45, %v3149_v59  ;;  %v893_v60 = vpop.f32.mrb[4].mxu1  ;;  %v822_v47 = vpop.f32.mrb[5].mxu0 }
 0x1b4   : > { %v894_v53 = vadd.f32 %v893_v60, %v3152_v3  ;;  %v823_v54 = vadd.f32 %v822_v47, %v3155_v63  ;;  %v895_v48 = vpop.f32.mrb[5].mxu1  ;;  %v824_v62 = vpop.f32.mrb[6].mxu0 }
 0x1b5   : > { %v896_v52 = vadd.f32 %v895_v48, %v3158_v0  ;;  %v825_v49 = vadd.f32 %v824_v62, %v3149_v59  ;;  %v897_v46 = vpop.f32.mrb[6].mxu1  ;;  %v826_v42 = vpop.f32.mrb[7].mxu0 }
 0x1b6   : > { %v2130_v44 = vpack.c.bf16 %v823_v54, %v821_v55  ;;  %v898_v51 = vadd.f32 %v897_v46, %v3152_v3  ;;  %v827_v1 = vadd.f32 %v826_v42, %v3155_v63  ;;  %v899_v45 = vpop.f32.mrb[7].mxu1 }
 0x1b7   : > { %v2131_v57 = vpack.c.bf16 %v896_v52, %v894_v53  ;;  %v900_v4 = vadd.f32 %v899_v45, %v3158_v0 }
 0x1b8   : > { %1145 = vst [vmem:[#allocation2 + $0x30] sm:$0xff] %v2130_v44  ;;  %v2133_v50 = vpack.c.bf16 %v827_v1, %v825_v49 }
 0x1b9   : > { %1146 = vst [vmem:[#allocation2 + $0x38] sm:$0xff] %v2131_v57  ;;  %v2134_v47 = vpack.c.bf16 %v900_v4, %v898_v51 }
 0x1ba   : > { %1148 = vst [vmem:[#allocation2 + $0x48] sm:$0xff] %v2133_v50  ;;  %v830_v58 = vpop.f32.mrb[8].mxu0 }
 0x1bb   : > { %1149 = vst [vmem:[#allocation2 + $0x50] sm:$0xff] %v2134_v47  ;;  %v831_v60 = vadd.f32 %v830_v58, %v3149_v59  ;;  %v903_v48 = vpop.f32.mrb[8].mxu1  ;;  %v832_v62 = vpop.f32.mrb[9].mxu0 }
 0x1bc   : > { %v904_v55 = vadd.f32 %v903_v48, %v3152_v3  ;;  %v833_v54 = vadd.f32 %v832_v62, %v3155_v63  ;;  %v905_v46 = vpop.f32.mrb[9].mxu1  ;;  %v834_v42 = vpop.f32.mrb[10].mxu0 }
 0x1bd   : > { %v906_v53 = vadd.f32 %v905_v46, %v3158_v0  ;;  %v835_v52 = vadd.f32 %v834_v42, %v3149_v59  ;;  %v907_v49 = vpop.f32.mrb[10].mxu1  ;;  %v836_v44 = vpop.f32.mrb[11].mxu0 }
 0x1be   : > { %v2136_v51 = vpack.c.bf16 %v833_v54, %v831_v60  ;;  %v908_v1 = vadd.f32 %v907_v49, %v3152_v3  ;;  %v837_v45 = vadd.f32 %v836_v44, %v3155_v63  ;;  %v909_v57 = vpop.f32.mrb[11].mxu1  ;;  %v500_v60 = vsub.s32 4, %v3137_v56 }
 0x1bf   : > { %v2137_v4 = vpack.c.bf16 %v906_v53, %v904_v55  ;;  %v910_v50 = vadd.f32 %v909_v57, %v3158_v0  ;;  %v504_v44 = vsub.s32 5, %v3137_v56 }
 0x1c0   : > { %1151 = vst [vmem:[#allocation2 + $0x60] sm:$0xff] %v2136_v51  ;;  %v2139_v47 = vpack.c.bf16 %v837_v45, %v835_v52 }
 0x1c1   : > { %1152 = vst [vmem:[#allocation2 + $0x68] sm:$0xff] %v2137_v4  ;;  %v2140_v58 = vpack.c.bf16 %v910_v50, %v908_v1  ;;  %v505_v56 = vrot.slane %v3143_v61, %v504_v44 }
 0x1c2   : > { %1154 = vst [vmem:[#allocation2 + $0x78] sm:$0xff] %v2139_v47  ;;  %v840_v48 = vpop.f32.mrb[12].mxu0 }
 0x1c3   : > { %1155 = vst [vmem:[#allocation2 + $0x80] sm:$0xff] %v2140_v58  ;;  %v841_v62 = vadd.f32 %v840_v48, %v3149_v59  ;;  %v913_v46 = vpop.f32.mrb[12].mxu1  ;;  %v842_v42 = vpop.f32.mrb[13].mxu0 }
 0x1c4   : > { %v914_v54 = vadd.f32 %v913_v46, %v3152_v3  ;;  %v843_v49 = vadd.f32 %v842_v42, %v3155_v63  ;;  %v915_v55 = vpop.f32.mrb[13].mxu1  ;;  %v844_v53 = vpop.f32.mrb[14].mxu0  ;;  %v501_v46 = vrot.slane %v3143_v61, %v500_v60 }
 0x1c5   : > { %v916_v52 = vadd.f32 %v915_v55, %v3158_v0  ;;  %v845_v51 = vadd.f32 %v844_v53, %v3149_v59  ;;  %v917_v1 = vpop.f32.mrb[14].mxu1  ;;  %v846_v45 = vpop.f32.mrb[15].mxu0 }
 0x1c6   : > { %v2142_v57 = vpack.c.bf16 %v843_v49, %v841_v62  ;;  %v918_v4 = vadd.f32 %v917_v1, %v3152_v3  ;;  %v847_v50 = vadd.f32 %v846_v45, %v3155_v63  ;;  %v919_v47 = vpop.f32.mrb[15].mxu1 }
 0x1c7   : > { %v2143_v58 = vpack.c.bf16 %v916_v52, %v914_v54  ;;  %v920_v48 = vadd.f32 %v919_v47, %v3158_v0 }
 0x1c8   : > { %1157 = vst [vmem:[#allocation2 + $0x90] sm:$0xff] %v2142_v57  ;;  %v2145_v42 = vpack.c.bf16 %v847_v50, %v845_v51 }
 0x1c9   : > { %1158 = vst [vmem:[#allocation2 + $0x98] sm:$0xff] %v2143_v58  ;;  %v2146_v55 = vpack.c.bf16 %v920_v48, %v918_v4 }
 0x1ca   : > { %1160 = vst [vmem:[#allocation2 + $0xa8] sm:$0xff] %v2145_v42  ;;  %v956_v59 = vpop.f32.mrb[16].mxu0 }
 0x1cb   : > { %1161 = vst [vmem:[#allocation2 + $0xb0] sm:$0xff] %v2146_v55  ;;  %v957_v62 = vadd.f32 %v956_v59, %v501_v46  ;;  %v976_v49 = vpop.f32.mrb[16].mxu1  ;;  %v958_v3 = vpop.f32.mrb[17].mxu0 }
 0x1cc   : > { %v977_v53 = vadd.f32 %v976_v49, %v501_v46  ;;  %v959_v63 = vadd.f32 %v958_v3, %v505_v56  ;;  %v978_v1 = vpop.f32.mrb[17].mxu1  ;;  %v960_v54 = vpop.f32.mrb[18].mxu0 }
 0x1cd   : > { %v979_v52 = vadd.f32 %v978_v1, %v505_v56  ;;  %v961_v0 = vadd.f32 %v960_v54, %v501_v46  ;;  %v980_v45 = vpop.f32.mrb[18].mxu1  ;;  %v962_v60 = vpop.f32.mrb[19].mxu0 }
 0x1ce   : > { %v2126_v57 = vpack.c.bf16 %v959_v63, %v957_v62  ;;  %v981_v51 = vadd.f32 %v980_v45, %v501_v46  ;;  %v963_v50 = vadd.f32 %v962_v60, %v505_v56  ;;  %v982_v61 = vpop.f32.mrb[19].mxu1 }
 0x1cf   : > { %v2138_v44 = vpack.c.bf16 %v979_v52, %v977_v53  ;;  %v983_v4 = vadd.f32 %v982_v61, %v505_v56 }
 0x1d0   : > { %1141 = vst [vmem:[#allocation2 + $0x10] sm:$0xff] %v2126_v57  ;;  %v2129_v47 = vpack.c.bf16 %v963_v50, %v961_v0 }
 0x1d1   : > { %1153 = vst [vmem:[#allocation2 + $0x70] sm:$0xff] %v2138_v44  ;;  %v2141_v58 = vpack.c.bf16 %v983_v4, %v981_v51  ;;  %v3200_v4 = vmov 0.0  }
 0x1d2   : > { %1144 = vst [vmem:[#allocation2 + $0x28] sm:$0xff] %v2129_v47  ;;  %v966_v48 = vpop.f32.mrb[20].mxu0  ;;  %v3202_v47 = vmov 0.0  }
 0x1d3   : > { %1156 = vst [vmem:[#allocation2 + $0x88] sm:$0xff] %v2141_v58  ;;  %v967_v42 = vadd.f32 %v966_v48, %v501_v46  ;;  %v986_v55 = vpop.f32.mrb[20].mxu1  ;;  %v968_v59 = vpop.f32.mrb[21].mxu0 }
 0x1d4   : > { %v987_v49 = vadd.f32 %v986_v55, %v501_v46  ;;  %v969_v3 = vadd.f32 %v968_v59, %v505_v56  ;;  %v988_v1 = vpop.f32.mrb[21].mxu1  ;;  %v970_v54 = vpop.f32.mrb[22].mxu0 }
 0x1d5   : > { %v989_v62 = vadd.f32 %v988_v1, %v505_v56  ;;  %v971_v63 = vadd.f32 %v970_v54, %v501_v46  ;;  %v990_v45 = vpop.f32.mrb[22].mxu1  ;;  %v972_v53 = vpop.f32.mrb[23].mxu0 }
 0x1d6   : > { %v2132_v52 = vpack.c.bf16 %v969_v3, %v967_v42  ;;  %v991_v60 = vadd.f32 %v990_v45, %v501_v46  ;;  %v973_v0 = vadd.f32 %v972_v53, %v505_v56  ;;  %v992_v57 = vpop.f32.mrb[23].mxu1 }
 0x1d7   : > { %v2144_v51 = vpack.c.bf16 %v989_v62, %v987_v49  ;;  %v993_v50 = vadd.f32 %v992_v57, %v505_v56 }
 0x1d8   : > { %1147 = vst [vmem:[#allocation2 + $0x40] sm:$0xff] %v2132_v52  ;;  %v2135_v61 = vpack.c.bf16 %v973_v0, %v971_v63 }
 0x1d9   : > { %1159 = vst [vmem:[#allocation2 + $0xa0] sm:$0xff] %v2144_v51  ;;  %v2147_v44 = vpack.c.bf16 %v993_v50, %v991_v60 }
 0x1da   : > { %1150 = vst [vmem:[#allocation2 + $0x58] sm:$0xff] %v2135_v61 }
 0x1db   : > { %1162 = vst [vmem:[#allocation2 + $0xb8] sm:$0xff] %v2147_v44 }
 0x1dc LB: >> { %v3570_v9 = vld [vmem:[#allocation31_spill] sm:$0xff]  ;;  %v3571_v7 = vld [vmem:[#allocation29_spill] sm:$0xff]  ;;  %v3573_v2 = vld [vmem:[#allocation24_spill] sm:$0xff]  ;;  %v2068_v55 = vcombine.high %v3006_v13, %v3010_v15  ;;  %v2701_v59 = vmov 0.0   ;;  %v2702_v3 = vmov 0   ;;  %v2067_v1 = vcombine.low %v3006_v13, %v3010_v15  ;;  %s3245_s25 = ssub.s32 7, %s2686_s24  ;;  %v2678_v4 = vphi %v3200_v4, %v3605_v4   ;;  %s2686_s24 = sphi %s3204_s24, %s1254_s24   ;;  %v2682_v47 = vphi %v3202_v47, %v3606_v47  }
 0x1dd   : >> { %v3572_v5 = vld [vmem:[#allocation27_spill] sm:$0xff]  ;;  %v2065_v58 = vcombine.high %v3570_v9, %v3002_v11  ;;  %v2064_v48 = vcombine.low %v3570_v9, %v3002_v11  ;;  %v3574_v8 = vld [vmem:[#allocation30_spill] sm:$0xff]  ;;  %v3575_v6 = vld [vmem:[#allocation28_spill] sm:$0xff]  ;;  %2168 = vmatprep.subr.bf16.mxu1 %v2701_v59  ;;  %1419 = vmatprep.mubr.bf16.mxu0 %v2702_v3  ;;  %v2071_v54 = vcombine.high %v3014_v17, %v3018_v19  ;;  %vm2703_vm0 = vmmov 0   ;;  %s2148_s9 = smul.u32 24, %s2686_s24  ;;  %s2115_s14 = sshll.u32 %s2686_s24, 3 }
 0x1de   : >> { %v2062_v46 = vcombine.high %v3572_v5, %v3571_v7  ;;  %v2061_v56 = vcombine.low %v3572_v5, %v3571_v7  ;;  %v2063_v42 = vcombine.low %v3575_v6, %v3574_v8  ;;  %v3576_v10 = vld [vmem:[#allocation32_spill] sm:$0xff]  ;;  %2421 = vset.pattern.permute.xlu0 %v2702_v3  ;;  %v2069_v62 = vcombine.low %v3008_v14, %v3012_v16  ;;  %s2149_s23 = smul.u32 24, %s3245_s25  ;;  %s1743_s26 = scalar_lea.vmem %s2965_s29, %s2115_s14 [#allocation11] }
 0x1df   : >> { %v2066_v49 = vcombine.low %v3576_v10, %v3004_v12  ;;  %v2070_v63 = vcombine.low %v3014_v17, %v3018_v19  ;;  %2184 = vmatprep.mubr.msk.bf16.mxu1 %vm2703_vm0, %v2701_v59  ;;  %v2074_v45 = vcombine.high %v3022_v21, %v3026_v23  ;;  %v2072_v53 = vcombine.low %v3016_v18, %v3020_v20  ;;  %s1680_s30 = scalar_lea.vmem [#allocation2], %s2148_s9  ;;  %s2116_s22 = sshll.u32 %s3245_s25, 3 }
 0x1e0   : >> { %1387 = vmatprep.subr.bf16.mxu0 %v2062_v46  ;;  %2169 = vmatpush3.bf16.msra.mxu1 %v2063_v42  ;;  %v1738_v52 = vstv %s2686_s24  ;;  %v1740_v60 = vstv %s3245_s25  ;;  %v2073_v0 = vcombine.low %v3022_v21, %v3026_v23  ;;  %v2077_v57 = vcombine.high %v3030_v25, %v3034_v27  ;;  %s3350_s20 = scalar_lea.vmem [#allocation2], %s2149_s23  ;;  %s1754_s16 = scalar_lea.vmem %s2965_s29, %s2116_s22 [#allocation11] }
 0x1e1   : >> { %1388 = vmatpush1.bf16.msra.mxu0 %v2061_v56  ;;  %2170 = vmatprep.subr.bf16.mxu1 %v2701_v59  ;;  %vm1739_vm1 = vcmp.lt.s32.totalorder %v1738_v52, %v3573_v2  ;;  %vm1741_vm2 = vcmp.lt.s32.totalorder %v1740_v60, %v3573_v2  ;;  %v2075_v50 = vcombine.low %v3024_v22, %v3028_v24  ;;  %v3577_v52 = vld [vmem:[#allocation37_spill] sm:$0xff]  ;;  %v3578_v60 = vld [vmem:[#allocation35_spill] sm:$0xff]  ;;  %s1254_s24 = sadd.s32 1, %s2686_s24  }
 0x1e2   : >> { %1389 = vmatprep.subr.bf16.mxu0 %v2065_v58  ;;  %v1745_v51 = vsel %vm1739_vm1, 1, %v2702_v3  ;;  %v1756_v61 = vsel %vm1741_vm2, 1, %v2702_v3  ;;  %v2076_v44 = vcombine.low %v3030_v25, %v3034_v27  ;;  %v2080_v46 = vcombine.high %v3038_v29, %v3042_v31  ;;  %p1251_p1 = scmp.ge.s32.totalorder %s1254_s24, 8  }
 0x1e3   : >> { %1747 = vperm.xlu0 %2421, %v1745_v51   ;;  %v2078_v56 = vcombine.low %v3032_v26, %v3036_v28  ;;  %v2079_v58 = vcombine.low %v3038_v29, %v3042_v31  ;;  %v2081_v42 = vcombine.low %v3040_v30, %v3044_v32  ;;  %v3580_v51 = vld [vmem:[#allocation33_spill] sm:$0xff]  ;;  %s3607_s19 = sld [smem:[#allocation22_spill]] (%p1251_p1)  ;;  %s2120_s28 = sshll.u32 (%p1251_p1), %s2780_s13, 7 }
 0x1e4   : >> { %2171 = vmatpush3.bf16.msra.mxu1 %v2066_v49  ;;  %v2086_v49 = vcombine.high %v3054_v37, %v3058_v39  ;;  %s3608_s18 = sld [smem:[#allocation60_spill]] (%p1251_p1)  ;;  %s1787_s21 = sshll.u32 (%p1251_p1), %s2965_s29, 4  ;;  %s3381_s21 = int_to_ptr.vmem [resolvable:$true] %s1787_s21 }
 0x1e5   : >> { %1390 = vmatpush1.bf16.msra.mxu0 %v2064_v48  ;;  %2172 = vmatprep.subr.bf16.mxu1 %v2701_v59  ;;  %v2083_v48 = vcombine.high %v3046_v33, %v3050_v35  ;;  %s1770_s24 = scalar_lea.sflag (%p1251_p1), [#allocation5], %s2941_s27  ;;  %s2556_s25 = scalar_lea.vmem (%p1251_p1), %s3381_s21, 1024 }
 0x1e6   : >> { %1391 = vmatprep.subr.bf16.mxu0 %v2068_v55  ;;  %v2082_v55 = vcombine.low %v3046_v33, %v3050_v35  ;;  %p2557_p0 = scmp.ne.s32.totalorder (%p1251_p1), %s3381_s21, %s2556_s25  ;;  %s2704_s9 = smov (%p1251_p1), [#allocation11]  }
 0x1e7   : >> { %1758 = vperm.xlu0 %2421, %v1756_v61   ;;  %v2091_v61 = vcombine.low %v3578_v60, %v3577_v52 }
 0x1e8   : >> { %2173 = vmatpush3.bf16.msra.mxu1 %v2069_v62  ;;  %v2085_v62 = vcombine.low %v3054_v37, %v3058_v39 }
 0x1e9   : >> { %1392 = vmatpush1.bf16.msra.mxu0 %v2067_v1  ;;  %2174 = vmatprep.subr.bf16.mxu1 %v2701_v59  ;;  %v2084_v1 = vcombine.low %v3048_v34, %v3052_v36  ;;  %p3609_p7 = scmp.ne.s32.totalorder (%p1251_p1), %s3607_s19, 0 }
 0x1ea   : >> { %1393 = vmatprep.subr.bf16.mxu0 %v2071_v54  ;;  %v1258_v54 = vpack.c.bf16 %v2682_v47, %v2682_v47  ;;  %s3378_s8 = scalar_lea.hbm (%p1251_p1), %s3608_s18, %s2120_s28 }
 0x1eb   : > { %p2558_p8 = pnand (%p1251_p1), %p2557_p0, %p3609_p7 }
 0x1ec   : >> { %2175 = vmatpush3.bf16.msra.mxu1 %v2072_v53  ;;  %v2088_v53 = vcombine.low %v3062_v41, %v3066_v43 }
 0x1ed   : >> { %1394 = vmatpush1.bf16.msra.mxu0 %v2070_v63  ;;  %2176 = vmatprep.subr.bf16.mxu1 %v2701_v59  ;;  %v2089_v63 = vcombine.high %v3062_v41, %v3066_v43  ;;  %p2559_p5 = pneg (%p1251_p1), %p2558_p8 }
 0x1ee   : >> { %1395 = vmatprep.subr.bf16.mxu0 %v2074_v45  ;;  %v2087_v45 = vcombine.low %v3056_v38, %v3060_v40 }
 0x1f0   : >> { %2177 = vmatpush3.bf16.msra.mxu1 %v2075_v50 }
 0x1f1   : >> { %1396 = vmatpush1.bf16.msra.mxu0 %v2073_v0  ;;  %2178 = vmatprep.subr.bf16.mxu1 %v2701_v59  ;;  %v2092_v0 = vcombine.high %v3578_v60, %v3577_v52 }
 0x1f2   : >> { %1397 = vmatprep.subr.bf16.mxu0 %v2077_v57  ;;  %v3579_v57 = vld [vmem:[#allocation34_spill] sm:$0xff] }
 0x1f3   : >> { %v2090_v50 = vcombine.low %v3580_v51, %v3579_v57  ;;  %v3591_v51 = vld [vmem:[#allocation46_spill] sm:$0xff] }
 0x1f4   : >> { %2179 = vmatpush3.bf16.msra.mxu1 %v2078_v56  ;;  %v3583_v56 = vld [vmem:[#allocation38_spill] sm:$0xff] }
 0x1f5   : >> { %1398 = vmatpush1.bf16.msra.mxu0 %v2076_v44  ;;  %2180 = vmatprep.subr.bf16.mxu1 %v2701_v59  ;;  %v3582_v44 = vld [vmem:[#allocation39_spill] sm:$0xff] }
 0x1f6   : >> { %1399 = vmatprep.subr.bf16.mxu0 %v2080_v46 }
 0x1f8   : >> { %2181 = vmatpush3.bf16.msra.mxu1 %v2081_v42 }
 0x1f9   : >> { %1400 = vmatpush1.bf16.msra.mxu0 %v2079_v58  ;;  %2182 = vmatprep.subr.bf16.mxu1 %v2701_v59  ;;  %v3584_v58 = vld [vmem:[#allocation36_spill] sm:$0xff] }
 0x1fa   : >> { %1401 = vmatprep.subr.bf16.mxu0 %v2083_v48  ;;  %v2093_v48 = vcombine.low %v3584_v58, %v3583_v56  ;;  %v3593_v56 = vld [vmem:[#allocation53_spill] sm:$0xff]  ;;  %v3594_v58 = vld [vmem:[#allocation51_spill] sm:$0xff] }
 0x1fc   : >> { %2183 = vmatpush3.bf16.msra.mxu1 %v2084_v1 }
 0x1fd   : >> { %1402 = vmatpush1.bf16.msra.mxu0 %v2082_v55  ;;  %2188 = vmatprep.subr.bf16.mxu1 %v2701_v59  ;;  %v3585_v55 = vld [vmem:[#allocation45_spill] sm:$0xff] }
 0x1fe   : >> { %1597 = vmatprep.subr.bf16.mxu0 %v2086_v49  ;;  %v3586_v49 = vld [vmem:[#allocation43_spill] sm:$0xff] }
 0x1ff   : >> { %2185 = vmatmul.mubr.bf16.vlgmr.msra.gmra.mrb[0].mxu1 %v1258_v54  ;;  %v2098_v1 = vcombine.high %v3586_v49, %v3585_v55 }
 0x200   : >> { %1420 = vmatmul.mubr.bf16.vlgmr.msra.gmra.mrb[0].mxu0 %v1258_v54  ;;  %2189 = vmatpush3.bf16.msra.mxu1 %v2087_v45  ;;  %v3587_v54 = vld [vmem:[#allocation42_spill] sm:$0xff]  ;;  %v2097_v45 = vcombine.low %v3586_v49, %v3585_v55 }
 0x201   : >> { %1598 = vmatpush1.bf16.msra.mxu0 %v2085_v62  ;;  %1629 = vmatprep.mubr.bf16.mxu0 %v2702_v3  ;;  %v3581_v3 = vld [vmem:[#allocation41_spill] sm:$0xff]  ;;  %v3588_v62 = vld [vmem:[#allocation40_spill] sm:$0xff] }
 0x202   : >> { %1599 = vmatprep.subr.bf16.mxu0 %v2089_v63  ;;  %2204 = vmatprep.mubr.msk.bf16.mxu1 %vm2703_vm0, %v2701_v59  ;;  %v2095_v46 = vcombine.high %v3582_v44, %v3581_v3  ;;  %v2094_v42 = vcombine.low %v3582_v44, %v3581_v3  ;;  %v2096_v63 = vcombine.low %v3588_v62, %v3587_v54 }
 0x203   : >> { %2190 = vmatprep.subr.bf16.mxu1 %v2701_v59  ;;  %v2103_v62 = vcombine.low %v3594_v58, %v3593_v56 }
 0x204   : >> { %2191 = vmatpush3.bf16.msra.mxu1 %v2090_v50  ;;  %v3592_v50 = vld [vmem:[#allocation44_spill] sm:$0xff] }
 0x205   : >> { %1600 = vmatpush1.bf16.msra.mxu0 %v2088_v53  ;;  %2192 = vmatprep.subr.bf16.mxu1 %v2701_v59  ;;  %v3589_v53 = vld [vmem:[#allocation49_spill] sm:$0xff] }
 0x206   : >> { %1601 = vmatprep.subr.bf16.mxu0 %v2092_v0  ;;  %v3590_v0 = vld [vmem:[#allocation47_spill] sm:$0xff] }
 0x207   : >> { %v2101_v57 = vcombine.high %v3590_v0, %v3589_v53 }
 0x208   : >> { %2193 = vmatpush3.bf16.msra.mxu1 %v2093_v48  ;;  %v2104_v48 = vcombine.high %v3594_v58, %v3593_v56 }
 0x209   : >> { %1602 = vmatpush1.bf16.msra.mxu0 %v2091_v61  ;;  %2194 = vmatprep.subr.bf16.mxu1 %v2701_v59  ;;  %v2099_v61 = vcombine.low %v3592_v50, %v3591_v51  ;;  %v3600_v50 = vld [vmem:[#allocation52_spill] sm:$0xff] }
 0x20a   : >> { %1603 = vmatprep.subr.bf16.mxu0 %v2095_v46  ;;  %v2100_v46 = vcombine.low %v3590_v0, %v3589_v53 }
 0x20c   : >> { %2195 = vmatpush3.bf16.msra.mxu1 %v2096_v63  ;;  %v3597_v63 = vld [vmem:[#allocation57_spill] sm:$0xff] }
 0x20d   : >> { %1604 = vmatpush1.bf16.msra.mxu0 %v2094_v42  ;;  %2196 = vmatprep.subr.bf16.mxu1 %v2701_v59  ;;  %v3595_v42 = vld [vmem:[#allocation50_spill] sm:$0xff] }
 0x20e   : >> { %1605 = vmatprep.subr.bf16.mxu0 %v2098_v1  ;;  %v3596_v1 = vld [vmem:[#allocation48_spill] sm:$0xff] }
 0x20f   : >> { %v2102_v54 = vcombine.low %v3596_v1, %v3595_v42  ;;  %v3602_v42 = vld [vmem:[#allocation56_spill] sm:$0xff] }
 0x210   : >> { %2197 = vmatpush3.bf16.msra.mxu1 %v2099_v61 }
 0x211   : >> { %1606 = vmatpush1.bf16.msra.mxu0 %v2097_v45  ;;  %2198 = vmatprep.subr.bf16.mxu1 %v2701_v59  ;;  %v3598_v45 = vld [vmem:[#allocation55_spill] sm:$0xff] }
 0x212   : >> { %1607 = vmatprep.subr.bf16.mxu0 %v2101_v57  ;;  %v2107_v51 = vcombine.high %v3598_v45, %v3597_v63  ;;  %v3599_v57 = vld [vmem:[#allocation54_spill] sm:$0xff]  ;;  %v2106_v61 = vcombine.low %v3598_v45, %v3597_v63 }
 0x213   : >> { %v2105_v0 = vcombine.low %v3600_v50, %v3599_v57 }
 0x214   : >> { %2199 = vmatpush3.bf16.msra.mxu1 %v2102_v54  ;;  %v1681_v54 = vld [vmem:[%s1680_s30] sm:$0xff] }
 0x215   : >> { %1608 = vmatpush1.bf16.msra.mxu0 %v2100_v46  ;;  %2200 = vmatprep.subr.bf16.mxu1 %v2701_v59  ;;  %v3601_v46 = vld [vmem:[#allocation58_spill] sm:$0xff]  ;;  %v1684_v50 = vunpack.c.h.bf16 %v1681_v54 }
 0x216   : >> { %1609 = vmatprep.subr.bf16.mxu0 %v2104_v48  ;;  %v2108_v1 = vcombine.low %v3602_v42, %v3601_v46  ;;  %v1468_v48 = vpack.c.bf16 %v2678_v4, %v2678_v4 }
 0x218   : >> { %2201 = vmatpush3.bf16.msra.mxu1 %v2105_v0 }
 0x219   : >> { %1610 = vmatpush1.bf16.msra.mxu0 %v2103_v62  ;;  %2202 = vmatprep.subr.bf16.mxu1 %v2701_v59  ;;  %v1683_v62 = vunpack.c.l.bf16 %v1681_v54  ;;  %v1682_v54 = vld [vmem:[%s1680_s30 + $0x8] sm:$0xf]  ;;  %s2560_s30 = sshll.u32 (%p1251_p1), %s2704_s9, 4  ;;  %s2561_s30 = int_to_ptr.vmem [resolvable:$false] %s2560_s30 }
 0x21a   : >> { %1611 = vmatprep.subr.bf16.mxu0 %v2107_v51  ;;  %s2562_s23 = scalar_lea.vmem (%p1251_p1), %s2561_s30, 2048  ;;  %p2563_p11 = scmp.lt.s32.totalorder (%p1251_p1), %s3381_s21, %s2561_s30 }
 0x21b   : > { %p2564_p12 = scmp.lt.s32.totalorder (%p1251_p1), %s2562_s23, %s2556_s25 }
 0x21c   : >> { %2203 = vmatpush3.bf16.msra.mxu1 %v2108_v1 }
 0x21d   : >> { %1612 = vmatpush1.bf16.msra.mxu0 %v2106_v61  ;;  %p2565_p4 = por (%p1251_p1), %p2564_p12, %p2563_p11 }
 0x21f   : >> { %2205 = vmatmul.mubr.bf16.vlgmr.msra.gmra.mrb[4].mxu1 %v1468_v48  ;;  %p2566_p6 = pnand (%p1251_p1), %p2565_p4, %p2559_p5 }
 0x220   : >> { %1630 = vmatmul.mubr.bf16.vlgmr.msra.gmra.mrb[4].mxu0 %v1468_v48 }
 0x2d2   : >> { %v1462_v46 = vpop.f32.mrb[0].mxu1 }
 0x2d3   : >> { %v1421_v57 = vpop.f32.mrb[0].mxu0  ;;  %v2186_v5 = vpop.f32.mrb[1].mxu1 }
 0x2d4   : >> { %v1694_v51 = vadd.f32 %v1683_v62, %v1421_v57  ;;  %v1423_v0 = vpop.f32.mrb[1].mxu0  ;;  %v1465_v59 = vpop.f32.mrb[2].mxu1  ;;  %v3603_v57 = vld [vmem:[#allocation25_spill] sm:$0xff]  ;;  %v1685_v5 = vunpack.c.l.bf16 %v1682_v54 }
 0x2d5   : >> { %v1425_v2 = vpop.f32.mrb[2].mxu0  ;;  %v1701_v6 = vadd.f32 %v1684_v50, %v1423_v0  ;;  %v2187_v61 = vpop.f32.mrb[3].mxu1  ;;  %v1708_v9 = vadd.f32 %v3603_v57, %v1462_v46 }
 0x2d6   : >> { %v2111_v42 = vmul.f32 -1.442695, %v1694_v51  ;;  %v1426_v3 = vpop.f32.mrb[3].mxu0  ;;  %v1689_v2 = vld [vmem:[%s3350_s20 + $0xc] sm:$0xff] }
 0x2d7   : >> { %v2112_v1 = vmul.f32 -1.442695, %v1701_v6  ;;  %v1691_v51 = vunpack.c.l.bf16 %v1689_v2 }
 0x2d8   : >> { %2422 = vpow2.f32 %v2111_v42  ;;  %v1692_v42 = vunpack.c.h.bf16 %v1689_v2 }
 0x2d9   : >> { %2424 = vpow2.f32 %v2112_v1 }
 0x2e2   : >> { %v2423_v48 = vpop.eup %2422 }
 0x2e3   : >> { %v1698_v7 = vadd.f32 1.0, %v2423_v48  ;;  %v2425_v8 = vpop.eup %2424 }
 0x2e4   : >> { %v1705_v62 = vadd.f32 1.0, %v2425_v8 }
 0x2e5   : >> { %2426 = vrcp.f32 %v1698_v7 }
 0x2e6   : >> { %2428 = vrcp.f32 %v1705_v62 }
 0x2ef   : >> { %v2427_v3 = vpop.eup %2426 }
 0x2f0   : >> { %v1709_v50 = vmul.f32 %v2427_v3, %v1708_v9  ;;  %v2429_v62 = vpop.eup %2428 }
 0x2f1   : >> { %v1712_v3 = vsub.f32 1.0, %v2429_v62 }
 0x2f2   : >> { %v1710_v6 = vadd.f32 %v1709_v50, %v1685_v5  ;;  %v1672_v61 = vpop.f32.mrb[4].mxu1  ;;  %v1748_v5 = vpop.permute.xlu0 %1747 }
 0x2f3   : >> { %v1631_v0 = vpop.f32.mrb[4].mxu0  ;;  %v2206_v48 = vpop.f32.mrb[5].mxu1  ;;  %vm1749_vm3 = vcmp.eq.s32.totalorder %v1748_v5, 1 }
 0x2f4   : >> { %2430 = vtanh.f32 %v1710_v6  ;;  %v1716_v7 = vadd.f32 %v1691_v51, %v1631_v0  ;;  %v1633_v59 = vpop.f32.mrb[5].mxu0  ;;  %v1675_v10 = vpop.f32.mrb[6].mxu1  ;;  %v1714_v51 = vmul.f32 %v2682_v47, %v2429_v62  ;;  %v1744_v6 = vld [vmem:[%s1743_s26] sm:$0xff] }
 0x2f5   : >> { %v1635_v8 = vpop.f32.mrb[6].mxu0  ;;  %v1723_v57 = vadd.f32 %v1692_v42, %v1633_v59  ;;  %v2207_v54 = vpop.f32.mrb[7].mxu1 }
 0x2f6   : >> { %v2113_v46 = vmul.f32 -1.442695, %v1716_v7  ;;  %v1636_v1 = vpop.f32.mrb[7].mxu0 }
 0x2f7   : >> { %v2114_v9 = vmul.f32 -1.442695, %v1723_v57  ;;  %v1690_v1 = vld [vmem:[%s3350_s20 + $0x14] sm:$0xf] }
 0x2f8   : >> { %2432 = vpow2.f32 %v2113_v46  ;;  %v3604_v57 = vld [vmem:[#allocation26_spill] sm:$0xff] }
 0x2f9   : >> { %2434 = vpow2.f32 %v2114_v9  ;;  %v1730_v54 = vadd.f32 %v3604_v57, %v1672_v61  ;;  %v1693_v9 = vunpack.c.l.bf16 %v1690_v1 }
 0x2fe   : >> { %v2431_v50 = vpop.eup %2430 }
 0x2ff   : >> { %v1713_v2 = vmul.f32 %v2431_v50, %v1712_v3 }
 0x301   : >> { %v1715_v0 = vadd.f32 %v1714_v51, %v1713_v2 }
 0x302   : >> { %v2433_v7 = vpop.eup %2432 }
 0x303   : >> { %v1720_v42 = vadd.f32 1.0, %v2433_v7  ;;  %v1750_v10 = vsel %vm1749_vm3, %v1715_v0, 0.0  ;;  %v1764_v59 = vsel %vm1749_vm3, %v1715_v0, %v2682_v47   ;;  %v2435_v46 = vpop.eup %2434  ;;  %v1759_v47 = vpop.permute.xlu0 %1758 }
 0x304   : >> { %v1751_v8 = vadd.f32 %v1750_v10, %v1744_v6  ;;  %v1727_v48 = vadd.f32 1.0, %v2435_v46  ;;  %vm1760_vm4 = vcmp.eq.s32.totalorder %v1759_v47, 1  ;;  %v3606_v47 = vmov %v1764_v59  ;;  %1766 = vst [vmem:[%s3198_s15] sm:$0xff] (%p1251_p1), %v1764_v59 }
 0x305   : >> { %2436 = vrcp.f32 %v1720_v42 }
 0x306   : >> { %1752 = vst [vmem:[%s1743_s26] sm:$0xff] %v1751_v8  ;;  %2438 = vrcp.f32 %v1727_v48 }
 0x30d   : >> { %v1755_v42 = vld [vmem:[%s1754_s16] sm:$0xff] }
 0x30f   : >> { %v2437_v62 = vpop.eup %2436 }
 0x310   : >> { %v1731_v5 = vmul.f32 %v2437_v62, %v1730_v54  ;;  %v2439_v50 = vpop.eup %2438 }
 0x311   : >> { %v1734_v2 = vsub.f32 1.0, %v2439_v50  ;;  %v1736_v0 = vmul.f32 %v2678_v4, %v2439_v50 }
 0x312   : >> { %v1732_v3 = vadd.f32 %v1731_v5, %v1693_v9 }
 0x314   : >> { %2440 = vtanh.f32 %v1732_v3 }
 0x31e   : >> { %v2441_v51 = vpop.eup %2440 }
 0x31f   : >> { %v1735_v6 = vmul.f32 %v2441_v51, %v1734_v2 }
 0x320   : > { %1253 = sbr.rel (!%p1251_p1) target bundleno = 476 (0x1dc), region = 141 }
 0x321   : >> { %v1737_v7 = vadd.f32 %v1736_v0, %v1735_v6 }
 0x323   : >> { %v1761_v10 = vsel %vm1760_vm4, %v1737_v7, 0.0  ;;  %v1765_v61 = vsel %vm1760_vm4, %v1737_v7, %v2678_v4  }
 0x324   : >> { %v1762_v8 = vadd.f32 %v1761_v10, %v1755_v42  ;;  %v3605_v4 = vmov %v1765_v61  ;;  %2117 = vst [vmem:[%s3198_s15 + $0x8] sm:$0xff] (%p1251_p1), %v1765_v61 }
 0x326   : >> { %1763 = vst [vmem:[%s1754_s16] sm:$0xff] %v1762_v8 }
 0x327   : > { %2569 = shalt.err (!%p2566_p6)
}
 0x328   : > { %s2570_s29 = scalar_lea.hbm %s3378_s8, 1024  ;;  %s2574_s26 = scalar_lea.hbm %s3608_s18, 2048 }
 0x329   : > { %p2571_p2 = scmp.ne.s32.totalorder %s3378_s8, %s2570_s29  ;;  %p2575_p9 = scmp.lt.u32.totalorder %s3378_s8, %s3608_s18 }
 0x32a   : > { %p2576_p10 = scmp.lt.u32.totalorder %s2574_s26, %s2570_s29  ;;  %p2578_p0 = scmp.lt.u32.totalorder %s2570_s29, %s3378_s8 }
 0x32b   : > { %p2572_p13 = pnand %p2571_p2, %p3609_p7 }
 0x32c   : > { %p2577_p1 = por %p2576_p10, %p2575_p9 }
 0x32d   : > { %p2573_p3 = pneg %p2572_p13 }
 0x32e   : > { %p2579_p8 = por %p2578_p0, %p2577_p1 }
 0x330   : > { %p2580_p5 = pnand %p2579_p8, %p2573_p3 }
 0x332   : > { %2583 = shalt.err (!%p2580_p5)
}
 0x333   : > { %s2705_s17 = smov 128   ;;  %s2706_s2 = smov 256  }
 0x334   : > { %s2707_s25 = smov 8   ;;  %s3610_s23 = sld [smem:[#allocation61_spill]] }
 0x335   : > { %2238 = dma.vmem_to_hbm [thread:$0]  (%p3609_p7), %s3381_s21, 1024, %s3378_s8, %s1770_s24, %s2705_s17, %s2706_s2, %s2707_s25  }
 0x336   : > { %s1802_s20 = sshll.u32 %s3198_s15, 4  ;;  %s1775_s14 = scalar_lea.sflag [#allocation13], %s2941_s27  ;;  %s3418_s20 = int_to_ptr.vmem [resolvable:$true] %s1802_s20 }
 0x337   : > { %s2584_s26 = scalar_lea.vmem %s3418_s20, 256  ;;  %s2708_s22 = smov [#allocation12]  }
 0x338   : > { %p2585_p11 = scmp.ne.s32.totalorder %s3418_s20, %s2584_s26  ;;  %s2588_s8 = sshll.u32 %s2708_s22, 4  ;;  %s2589_s8 = int_to_ptr.vmem [resolvable:$false] %s2588_s8 }
 0x339   : > { %s2590_s13 = scalar_lea.vmem %s2589_s8, 512  ;;  %p2591_p6 = scmp.lt.s32.totalorder %s3418_s20, %s2589_s8 }
 0x33a   : > { %s3415_s29 = scalar_lea.hbm %s3610_s23, %s2120_s28  ;;  %p2586_p12 = pnand %p2585_p11, %p3609_p7 }
 0x33b   : > { %p2592_p2 = scmp.lt.s32.totalorder %s2590_s13, %s2584_s26 }
 0x33c   : > { %p2587_p4 = pneg %p2586_p12 }
 0x33d   : > { %p2593_p13 = por %p2592_p2, %p2591_p6 }
 0x33f   : > { %p2594_p3 = pnand %p2593_p13, %p2587_p4 }
 0x341   : > { %2597 = shalt.err (!%p2594_p3)
}
 0x342   : > { %s2598_s15 = scalar_lea.hbm %s3415_s29, 256  ;;  %s2602_s24 = scalar_lea.hbm %s3610_s23, 512 }
 0x343   : > { %p2599_p9 = scmp.ne.s32.totalorder %s3415_s29, %s2598_s15  ;;  %p2603_p0 = scmp.lt.u32.totalorder %s3415_s29, %s3610_s23 }
 0x344   : > { %p2604_p8 = scmp.lt.u32.totalorder %s2602_s24, %s2598_s15  ;;  %p2606_p11 = scmp.lt.u32.totalorder %s2598_s15, %s3415_s29 }
 0x345   : > { %p2600_p10 = pnand %p2599_p9, %p3609_p7 }
 0x346   : > { %p2605_p5 = por %p2604_p8, %p2603_p0 }
 0x347   : > { %p2601_p1 = pneg %p2600_p10 }
 0x348   : > { %p2607_p12 = por %p2606_p11, %p2605_p5 }
 0x34a   : > { %p2608_p4 = pnand %p2607_p12, %p2601_p1 }
 0x34c   : > { %2611 = shalt.err (!%p2608_p4)
}
 0x34d   : > { %2239 = dma.vmem_to_hbm [thread:$0]  (%p3609_p7), %s3418_s20, 256, %s3415_s29, %s1775_s14, %s2705_s17, %s2706_s2, %s2707_s25  }
 0x34e PF: > { %s3611_s30 = sld [smem:[#allocation19_spill]]  ;;  %s3612_s26 = sld [smem:[#allocation23_spill]] }
 0x34f   : > { %p3614_p2 = scmp.ge.s32.totalorder %s2674_s12, 2 }
 0x354   : > { %s1817_s22 = sand.u32 1, %s3611_s30   ;;  %p3613_p6 = scmp.ne.s32.totalorder %s3612_s26, 0 }
 0x355   : > { %s1818_s8 = scalar_lea.sflag [#allocation5], %s1817_s22 }
 0x356   : > { %p2257_p13 = pnand %p3614_p2, %p3613_p6 }
 0x358   : > { %2653 = dma.done.wait (!%p2257_p13), %s1818_s8, 1024  }
 0x359   : > { %2655 = vsyncadd (!%p2257_p13), %s1818_s8, 4294966272  ;;  %s1827_s19 = scalar_lea.sflag [#allocation13], %s1817_s22 }
 0x35a   : > { %2657 = dma.done.wait (!%p2257_p13), %s1827_s19, 256  }
 0x35b   : > { %2659 = vsyncadd (!%p2257_p13), %s1827_s19, 4294967040  ;;  %s3615_s12 = sld [smem:[#allocation20_spill]]  ;;  %s3616_s27 = sld [smem:[#allocation21_spill]] }
 0x35c   : > { %s3617_s30 = smov %s2666_s10  ;;  %s3618_s10 = smov %s2670_s11 }
 0x361   : > { %p28_p7 = scmp.ge.s32.totalorder %s3615_s12, 4   ;;  %s3619_s11 = smov %s3616_s27 }
 0x363   :  { %30 = sbr.rel (!%p28_p7) target bundleno = 13 (0xd), region = 152 }
 0x36a   :  { %1832 = vsyncpa [#allocation4], 1 }
 0x36b   :  { %1834 = vsyncpa [#allocation4 + $0x1], 1 }
 0x36c   :  { %1835 = vsyncpa [#allocation7], 1 }
 0x36d   :  { %1836 = vsyncpa [#allocation10], 1 }
 0x36e   :  { %1837 = vsyncpa [#allocation5], 1 }
 0x36f   :  { %1839 = vsyncpa [#allocation5 + $0x1], 1 }
 0x370   :  { %1840 = vsyncpa [#allocation13], 1 }
 0x371   :  { %1842 = vsyncpa [#allocation13 + $0x1], 1 }

// kernel: tpu_custom_call.1
= control target key start
LH: loop header
LB: loop body
LE: loop exit
PB: predicated region body
PF: predicated region fallthrough
CT: control target
= control target key end

     0   :  { %s3465_s0 = inlined_call_operand.hbm [shape: bf16[8,16,128], index: 0, kind: input, shape index: {}]   ;;  %s3466_s1 = inlined_call_operand.vmem [shape: s32[16,1], index: 1, kind: input, shape index: {}]   ;;  %s3467_s2 = inlined_call_operand.hbm [shape: bf16[128,768], index: 2, kind: input, shape index: {}]   ;;  %s3468_s3 = inlined_call_operand.vmem [shape: f32[1,768], index: 3, kind: input, shape index: {}]   ;;  %s3469_s4 = inlined_call_operand.hbm [shape: bf16[128,384], index: 4, kind: input, shape index: {}]   ;;  %s3470_s5 = inlined_call_operand.hbm [shape: bf16[128,384], index: 5, kind: input, shape index: {}]   ;;  %s3471_s6 = inlined_call_operand.vmem [shape: f32[1,128], index: 6, kind: input, shape index: {}]   ;;  %s3472_s7 = inlined_call_operand.vmem [shape: f32[1,128], index: 7, kind: input, shape index: {}]   ;;  %s3473_s8 = inlined_call_operand.hbm [shape: f32[8,16,128], index: 8, kind: output, shape index: {0}]   ;;  %s3474_s9 = inlined_call_operand.hbm [shape: f32[2,16,128], index: 9, kind: output, shape index: {1}]  }
   0x1   :  { %3508 = sst [smem:[#allocation59_spill]] %s3467_s2 }
   0x2   :  { %3509 = sst [smem:[#allocation60_spill]] %s3473_s8 }
   0x3   :  { %3510 = sst [smem:[#allocation61_spill]] %s3474_s9 }
   0x4   :  { %15 = vsyncpa [#allocation4], 0 }
   0x5   :  { %17 = vsyncpa [#allocation4 + $0x1], 0 }
   0x6   :  { %18 = vsyncpa [#allocation7], 0 }
   0x7   :  { %19 = vsyncpa [#allocation10], 0 }
   0x8   :  { %20 = vsyncpa [#allocation5], 0 }
   0x9   :  { %22 = vsyncpa [#allocation5 + $0x1], 0 }
   0xa   :  { %23 = vsyncpa [#allocation13], 0 }
   0xb   :  { %25 = vsyncpa [#allocation13 + $0x1], 0  ;;  %s2759_s30 = smov 0   ;;  %s2761_s10 = smov 0  }
   0xc   :  { %s2763_s11 = smov 0   ;;  %s2765_s12 = smov 0  }
   0xd LB: > { %3511 = sst [smem:[#allocation19_spill]] %s2662_s30  ;;  %s2780_s13 = sadd.s32 4294967295, %s2674_s12   ;;  %s2674_s12 = sphi %s2765_s12, %s3615_s12   ;;  %s2670_s11 = sphi %s2763_s11, %s3619_s11   ;;  %s2666_s10 = sphi %s2761_s10, %s3618_s10   ;;  %s2662_s30 = sphi %s2759_s30, %s3617_s30  }
   0xe   : > { %s1967_s14 = sadd.s32 4294967294, %s2674_s12   ;;  %s2784_s15 = sadd.s32 1, %s2674_s12  }
   0xf   : > { %3512 = sst [smem:[#allocation20_spill]] %s2784_s15  ;;  %s38_s16 = sadd.s32 1, %s2670_s11 }
  0x10   : > { %s35_s17 = ssub.s32 %s2674_s12, %s2784_s15  ;;  %p45_p0 = scmp.ne.s32.totalorder %s2670_s11, %s2666_s10 }
  0x11   : > { %p36_p1 = scmp.eq.s32.totalorder %s35_s17, 0  ;;  %p46_p2 = scmp.eq.s32.totalorder %s2674_s12, 0 }
  0x12   : > { %p51_p3 = scmp.ne.s32.totalorder %s2666_s10, %s2662_s30  ;;  %p3478_p4 = scmp.eq.s32.totalorder %s2780_s13, 0 }
  0x13   : > { %s2796_s18 = scalar_select %p36_p1, %s2670_s11, %s38_s16  }
  0x14   : > { %p2798_p5 = por %p46_p2, %p45_p0  ;;  %p2804_p6 = por %p3478_p4, %p51_p3 }
  0x15   : > { %3513 = sst [smem:[#allocation21_spill]] %s2796_s18  ;;  %p227_p7 = scmp.eq.s32.totalorder %s2780_s13, 1 }
  0x16   : > { %s3514_s19 = scalar_select %p2798_p5, 1, 0 }
  0x17   : > { %s3515_s20 = scalar_select %p2804_p6, 1, 0 }
  0x18   : > { %p233_p8 = scmp.eq.s32.totalorder %s1967_s14, 1  ;;  %p1968_p9 = scmp.ge.s32.totalorder %s2674_s12, 1 }
  0x19   : > { %p266_p10 = scmp.lt.s32.totalorder %s2674_s12, 3  ;;  %p2811_p11 = por %p227_p7, %p45_p0 }
  0x1a   : > { %p2815_p12 = por %p233_p8, %p51_p3  ;;  %s2688_s24 = smov [#allocation6]  }
  0x1b   : > { %s3516_s21 = scalar_select %p2811_p11, 1, 0 }
  0x1c   : > { %s3518_s22 = scalar_select %p2815_p12, 1, 0 }
  0x1d   : > { %3517 = sst [smem:[#allocation22_spill]] %s3516_s21  ;;  %p2819_p13 = pnand %p1968_p9, %p266_p10 }
  0x1e   : > { %3519 = sst [smem:[#allocation23_spill]] %s3518_s22  ;;  %s278_s25 = sshll.u32 %s2688_s24, 4  ;;  %s279_s25 = int_to_ptr.vmem [resolvable:$true] %s278_s25 }
  0x1f   : > { %s3520_s23 = scalar_select %p2819_p13, 1, 0 }
  0x20   : > { %p2242_p1 = pneg %p2819_p13  ;;  %s2689_s27 = smov [#allocation8]  }
  0x21   : > { %s294_s28 = sshll.u32 %s2689_s27, 4  ;;  %s3522_s2 = sld [smem:[#allocation59_spill]]  ;;  %s295_s28 = int_to_ptr.vmem [resolvable:$true] %s294_s28 }
  0x22   : > { %p2827_p2 = pnand %p2242_p1, %p3478_p4 }
  0x24   : > { %p2841_p8 = pneg %p2827_p2 }
  0x27   : > { %s2442_s16 = scalar_lea.hbm %s3522_s2, 6144 }
  0x28   : > { %p2443_p7 = scmp.ne.s32.totalorder %s3522_s2, %s2442_s16  ;;  %p2449_p1 = scmp.lt.u32.totalorder %s2442_s16, %s3522_s2 }
  0x2a   : > { %p2445_p9 = pnand %p2841_p8, %p2443_p7 }
  0x2c   : > { %p2446_p10 = pneg %p2445_p9 }
  0x2e   : > { %p2451_p0 = pnand %p2449_p1, %p2446_p10 }
  0x30   : > { %2454 = shalt.err (!%p2451_p0)
}
  0x31   : > { %s2455_s27 = scalar_lea.vmem %s279_s25, 6144  ;;  %p2463_p11 = scmp.lt.s32.totalorder %s279_s25, %s279_s25 }
  0x32   : > { %p2456_p4 = scmp.ne.s32.totalorder %s279_s25, %s2455_s27  ;;  %p2464_p6 = scmp.lt.s32.totalorder %s2455_s27, %s2455_s27 }
  0x34   : > { %p2458_p3 = pnand %p2456_p4, %p2841_p8  ;;  %p2465_p13 = por %p2464_p6, %p2463_p11 }
  0x36   : > { %p2459_p12 = pneg %p2458_p3 }
  0x38   : > { %p2466_p5 = pnand %p2465_p13, %p2459_p12 }
  0x3a   : > { %2469 = shalt.err (!%p2466_p5)
}
  0x3b   : > { %s2690_s18 = smov 384   ;;  %s2691_s15 = smov 24  }
  0x3c   : > { %2245 = dma.hbm_to_vmem [thread:$0]  (!%p2827_p2), %s3522_s2, 6144, %s279_s25, [#allocation7], %s2690_s18, %s2690_s18, %s2691_s15  }
  0x3d   : > { %p3524_p0 = scmp.ne.s32.totalorder %s3514_s19, 0  ;;  %p3525_p7 = scmp.lt.s32.totalorder %s2674_s12, 2 }
  0x3e   : > { %s2470_s27 = scalar_lea.hbm %s3469_s4, 3072 }
  0x3f   : > { %p2861_p4 = pnand %p3525_p7, %p3524_p0  ;;  %p2471_p5 = scmp.ne.s32.totalorder %s3469_s4, %s2470_s27 }
  0x40   : > { %p2477_p12 = scmp.lt.u32.totalorder %s2470_s27, %s3469_s4 }
  0x41   : > { %s3526_s14 = scalar_select %p2861_p4, 1, 0 }
  0x42   : > { %p2473_p6 = pnand %p2471_p5, %p2841_p8 }
  0x44   : > { %p2474_p11 = pneg %p2473_p6 }
  0x46   : > { %p2479_p13 = pnand %p2477_p12, %p2474_p11 }
  0x48   : > { %2482 = shalt.err (!%p2479_p13)
}
  0x49   : > { %s2483_s19 = scalar_lea.vmem %s295_s28, 3072  ;;  %p2491_p1 = scmp.lt.s32.totalorder %s295_s28, %s295_s28 }
  0x4a   : > { %p2484_p3 = scmp.ne.s32.totalorder %s295_s28, %s2483_s19  ;;  %p2492_p0 = scmp.lt.s32.totalorder %s2483_s19, %s2483_s19 }
  0x4c   : > { %p2486_p9 = pnand %p2484_p3, %p2841_p8  ;;  %p2493_p7 = por %p2492_p0, %p2491_p1 }
  0x4e   : > { %p2487_p10 = pneg %p2486_p9 }
  0x50   : > { %p2494_p4 = pnand %p2493_p7, %p2487_p10 }
  0x52   : > { %2497 = shalt.err (!%p2494_p4)
}
  0x53   : > { %s2692_s9 = smov 192   ;;  %s2693_s30 = smov 12  }
  0x54   : > { %2248 = dma.hbm_to_vmem [thread:$0]  (!%p2827_p2), %s3469_s4, 3072, %s295_s28, [#allocation7], %s2692_s9, %s2692_s9, %s2693_s30  }
  0x55   : > { %s2694_s29 = smov [#allocation9]   ;;  %s327_s17 = sand.u32 1, %s2670_s11  }
  0x56   : > { %s307_s16 = sshll.u32 %s2694_s29, 4  ;;  %s2498_s25 = scalar_lea.hbm %s3470_s5, 3072  ;;  %s308_s16 = int_to_ptr.vmem [resolvable:$true] %s307_s16 }
  0x57   : > { %p2499_p4 = scmp.ne.s32.totalorder %s3470_s5, %s2498_s25  ;;  %p2505_p11 = scmp.lt.u32.totalorder %s2498_s25, %s3470_s5 }
  0x59   : > { %p2501_p5 = pnand %p2499_p4, %p2841_p8 }
  0x5b   : > { %p2502_p6 = pneg %p2501_p5 }
  0x5d   : > { %p2507_p12 = pnand %p2505_p11, %p2502_p6 }
  0x5f   : > { %2510 = shalt.err (!%p2507_p12)
}
  0x60   : > { %s2511_s28 = scalar_lea.vmem %s308_s16, 3072  ;;  %p2519_p10 = scmp.lt.s32.totalorder %s308_s16, %s308_s16 }
  0x61   : > { %p2512_p13 = scmp.ne.s32.totalorder %s308_s16, %s2511_s28  ;;  %p2520_p1 = scmp.lt.s32.totalorder %s2511_s28, %s2511_s28 }
  0x63   : > { %p2514_p3 = pnand %p2512_p13, %p2841_p8  ;;  %p2521_p0 = por %p2520_p1, %p2519_p10 }
  0x65   : > { %p2515_p9 = pneg %p2514_p3 }
  0x67   : > { %p2522_p7 = pnand %p2521_p0, %p2515_p9 }
  0x69   : > { %2525 = shalt.err (!%p2522_p7)
}
  0x6a   : > { %2251 = dma.hbm_to_vmem [thread:$0]  (!%p2827_p2), %s3470_s5, 3072, %s308_s16, [#allocation10], %s2692_s9, %s2692_s9, %s2693_s30  }
  0x6b   : > { %s1973_s8 = sshll.u32 %s327_s17, 5  ;;  %s1974_s21 = sshll.u32 %s2674_s12, 6 }
  0x6c   : > { %s2906_s29 = scalar_lea.hbm %s3465_s0, %s1974_s21  ;;  %s331_s27 = scalar_lea.vmem [#allocation3], %s1973_s8 }
  0x6d   : > { %s337_s26 = sshll.u32 %s331_s27, 4  ;;  %s2910_s22 = scalar_lea.sflag [#allocation4], %s327_s17  ;;  %s2908_s26 = int_to_ptr.vmem [resolvable:$true] %s337_s26 }
  0x6e   : > { %s2526_s25 = scalar_lea.hbm %s2906_s29, 512  ;;  %p3527_p2 = scmp.ne.s32.totalorder %s3526_s14, 0 }
  0x6f   : > { %p2527_p8 = scmp.ne.s32.totalorder %s2906_s29, %s2526_s25  ;;  %s2531_s16 = scalar_lea.hbm %s3465_s0, 1024 }
  0x70   : > { %p2528_p4 = pneg %p3527_p2  ;;  %p2532_p11 = scmp.lt.u32.totalorder %s2906_s29, %s3465_s0 }
  0x71   : > { %p2533_p12 = scmp.lt.u32.totalorder %s2531_s16, %s2526_s25  ;;  %p2535_p3 = scmp.lt.u32.totalorder %s2526_s25, %s2906_s29 }
  0x72   : > { %p2529_p5 = pnand %p2528_p4, %p2527_p8 }
  0x73   : > { %p2534_p13 = por %p2533_p12, %p2532_p11 }
  0x74   : > { %p2530_p6 = pneg %p2529_p5 }
  0x75   : > { %p2536_p9 = por %p2535_p3, %p2534_p13 }
  0x77   : > { %p2537_p10 = pnand %p2536_p9, %p2530_p6 }
  0x79   : > { %2540 = shalt.err (!%p2537_p10)
}
  0x7a   : > { %s2541_s17 = scalar_lea.vmem %s2908_s26, 512  ;;  %s2695_s2 = smov [#allocation3]  }
  0x7b   : > { %p2542_p1 = scmp.ne.s32.totalorder %s2908_s26, %s2541_s17  ;;  %s2546_s18 = sshll.u32 %s2695_s2, 4  ;;  %s2547_s18 = int_to_ptr.vmem [resolvable:$false] %s2546_s18 }
  0x7c   : > { %s2548_s8 = scalar_lea.vmem %s2547_s18, 1024  ;;  %p2549_p8 = scmp.lt.s32.totalorder %s2908_s26, %s2547_s18 }
  0x7d   : > { %p2544_p0 = pnand %p2542_p1, %p2528_p4  ;;  %p2550_p5 = scmp.lt.s32.totalorder %s2548_s8, %s2541_s17 }
  0x7f   : > { %p2545_p7 = pneg %p2544_p0  ;;  %p2551_p11 = por %p2550_p5, %p2549_p8 }
  0x81   : > { %p2552_p12 = pnand %p2551_p11, %p2545_p7 }
  0x83   : > { %2555 = shalt.err (!%p2552_p12)
}
  0x84   : > { %s2696_s21 = smov 128   ;;  %s2697_s15 = smov 64  }
  0x85   : > { %s2698_s24 = smov 4   ;;  %p3528_p4 = scmp.ne.s32.totalorder %s3520_s23, 0 }
  0x86   : > { %2255 = dma.hbm_to_vmem [thread:$0]  (!%p3527_p2), %s2906_s29, 512, %s2908_s26, %s2910_s22, %s2696_s21, %s2697_s15, %s2698_s24  }
  0x87   : > { %356 = sbr.rel (%p3528_p4) target bundleno = 846 (0x34e), region = 52 }
  0x8e   : > { %s2941_s27 = sand.u32 1, %s2666_s10   ;;  %p3529_p6 = scmp.ne.s32.totalorder %s3515_s20, 0 }
  0x8f   : > { %s1976_s25 = sshll.u32 %s2941_s27, 5  ;;  %s359_s9 = scalar_lea.sflag [#allocation4], %s2941_s27 }
  0x90   : > { %s2945_s30 = scalar_lea.vmem [#allocation3], %s1976_s25 }
  0x91   : > { %2641 = dma.done.wait (%p3529_p6), %s359_s9, 512  }
  0x92   : > { %2643 = vsyncadd (%p3529_p6), %s359_s9, 4294966784  ;;  %p3530_p2 = scmp.eq.s32.totalorder %s2780_s13, 0 }
  0x94   : > { %2645 = dma.done.wait (%p3530_p2), [#allocation7], 9216   ;;  %p3531_p13 = pmov %p3530_p2 }
  0x95   : > { %p3532_p3 = pmov %p3530_p2 }
  0x96   : > { %2647 = vsyncadd (%p3531_p13), [#allocation7], 4294958080 }
  0x97   : > { %2649 = dma.done.wait (%p3532_p3), [#allocation10], 3072   ;;  %p3533_p9 = pmov %p3530_p2 }
  0x98   : > { %s1980_s23 = sshll.u32 %s2941_s27, 6  ;;  %p418_p10 = scmp.lt.s32.totalorder %s2780_s13, 1  ;;  %v3488_v0 = vmov 0   ;;  %v2700_v1 = vmov 0.0   ;;  %v2983_v3 = vld [vmem:[%s3471_s6] ss:$0 sm:$0xff] }
  0x99   : > { %2651 = vsyncadd (%p3533_p9), [#allocation10], 4294964224  ;;  %s1981_s20 = sshll.u32 %s2941_s27, 4  ;;  %808 = vmatprep.mubr.bf16.mxu0 %v3488_v0  ;;  %881 = vmatprep.mubr.bf16.mxu1 %v3488_v0  ;;  %s2965_s29 = scalar_lea.vmem [#allocation11], %s1980_s23  ;;  %3535 = vst [vmem:[#allocation25_spill] sm:$0xff] %v2983_v3  ;;  %v2990_v5 = vld [vmem:[#allocation8] sm:$0xff] }
  0x9a   : > { %s419_s14 = scalar_select %p418_p10, %s2780_s13, 1  ;;  %1241 = vst [vmem:[%s2965_s29] sm:$0xff] %v2700_v1  ;;  %1242 = vst [vmem:[%s2965_s29 + $0x8] sm:$0xff] %v2700_v1  ;;  %v2988_v4 = vld [vmem:[%s3472_s7] ss:$0 sm:$0xff]  ;;  %v2992_v6 = vld [vmem:[#allocation8 + $0x8] sm:$0xf] }
  0x9b   : > { %1243 = vst [vmem:[%s2965_s29 + $0x10] sm:$0xff] %v2700_v1  ;;  %1244 = vst [vmem:[%s2965_s29 + $0x18] sm:$0xff] %v2700_v1  ;;  %v2994_v7 = vld [vmem:[#allocation8 + $0xc] sm:$0xff]  ;;  %v2996_v8 = vld [vmem:[#allocation8 + $0x14] sm:$0xf]  ;;  %s3198_s15 = scalar_lea.vmem [#allocation12], %s1981_s20 }
  0x9c   : > { %1245 = vst [vmem:[%s2965_s29 + $0x20] sm:$0xff] %v2700_v1  ;;  %1246 = vst [vmem:[%s2965_s29 + $0x28] sm:$0xff] %v2700_v1  ;;  %s1982_s26 = sshll.u32 %s419_s14, 3  ;;  %v2998_v9 = vld [vmem:[#allocation8 + $0x18] sm:$0xff]  ;;  %v3000_v10 = vld [vmem:[#allocation8 + $0x20] sm:$0xf] }
  0x9d   : > { %1247 = vst [vmem:[%s2965_s29 + $0x30] sm:$0xff] %v2700_v1  ;;  %1248 = vst [vmem:[%s2965_s29 + $0x38] sm:$0xff] %v2700_v1  ;;  %s421_s19 = scalar_lea.vmem %s3466_s1, %s1982_s26  ;;  %v3002_v11 = vld [vmem:[#allocation8 + $0x24] sm:$0xff]  ;;  %v3004_v12 = vld [vmem:[#allocation8 + $0x2c] sm:$0xf]  ;;  %s3204_s24 = smov 0  }
  0x9e   : > { %v2978_v2 = vld [vmem:[%s421_s19] sm:$0xff]  ;;  %3536 = vst [vmem:[#allocation26_spill] sm:$0xff] %v2988_v4  ;;  %3537 = vst [vmem:[#allocation27_spill] sm:$0xff] %v2990_v5  ;;  %v3006_v13 = vld [vmem:[#allocation8 + $0x30] sm:$0xff] }
  0x9f   : > { %3534 = vst [vmem:[#allocation24_spill] sm:$0xff] %v2978_v2  ;;  %3538 = vst [vmem:[#allocation28_spill] sm:$0xff] %v2992_v6  ;;  %v3008_v14 = vld [vmem:[#allocation8 + $0x38] sm:$0xf]  ;;  %v3010_v15 = vld [vmem:[#allocation8 + $0x3c] sm:$0xff] }
  0xa0   : > { %3539 = vst [vmem:[#allocation29_spill] sm:$0xff] %v2994_v7  ;;  %3540 = vst [vmem:[#allocation30_spill] sm:$0xff] %v2996_v8  ;;  %v3012_v16 = vld [vmem:[#allocation8 + $0x44] sm:$0xf]  ;;  %v3014_v17 = vld [vmem:[#allocation8 + $0x48] sm:$0xff] }
  0xa1   : > { %3541 = vst [vmem:[#allocation31_spill] sm:$0xff] %v2998_v9  ;;  %3542 = vst [vmem:[#allocation32_spill] sm:$0xff] %v3000_v10  ;;  %v3016_v18 = vld [vmem:[#allocation8 + $0x50] sm:$0xf]  ;;  %v3018_v19 = vld [vmem:[#allocation8 + $0x54] sm:$0xff] }
  0xa2   : > { %v3020_v20 = vld [vmem:[#allocation8 + $0x5c] sm:$0xf]  ;;  %v3022_v21 = vld [vmem:[#allocation8 + $0x60] sm:$0xff]  ;;  %v3024_v22 = vld [vmem:[#allocation8 + $0x68] sm:$0xf] }
  0xa3   : > { %v3026_v23 = vld [vmem:[#allocation8 + $0x6c] sm:$0xff]  ;;  %v3028_v24 = vld [vmem:[#allocation8 + $0x74] sm:$0xf]  ;;  %v3030_v25 = vld [vmem:[#allocation8 + $0x78] sm:$0xff] }
  0xa4   : > { %v3032_v26 = vld [vmem:[#allocation8 + $0x80] sm:$0xf]  ;;  %v3034_v27 = vld [vmem:[#allocation8 + $0x84] sm:$0xff]  ;;  %v3036_v28 = vld [vmem:[#allocation8 + $0x8c] sm:$0xf] }
  0xa5   : > { %v3038_v29 = vld [vmem:[#allocation8 + $0x90] sm:$0xff]  ;;  %v3040_v30 = vld [vmem:[#allocation8 + $0x98] sm:$0xf]  ;;  %v3042_v31 = vld [vmem:[#allocation8 + $0x9c] sm:$0xff] }
  0xa6   : > { %v3044_v32 = vld [vmem:[#allocation8 + $0xa4] sm:$0xf]  ;;  %v3046_v33 = vld [vmem:[#allocation8 + $0xa8] sm:$0xff]  ;;  %v3048_v34 = vld [vmem:[#allocation8 + $0xb0] sm:$0xf] }
  0xa7   : > { %v3050_v35 = vld [vmem:[#allocation8 + $0xb4] sm:$0xff]  ;;  %v3052_v36 = vld [vmem:[#allocation8 + $0xbc] sm:$0xf]  ;;  %v3054_v37 = vld [vmem:[#allocation9] sm:$0xff] }
  0xa8   : > { %v3056_v38 = vld [vmem:[#allocation9 + $0x8] sm:$0xf]  ;;  %v3058_v39 = vld [vmem:[#allocation9 + $0xc] sm:$0xff]  ;;  %v3060_v40 = vld [vmem:[#allocation9 + $0x14] sm:$0xf] }
  0xa9   : > { %v3062_v41 = vld [vmem:[#allocation9 + $0x18] sm:$0xff]  ;;  %v3064_v42 = vld [vmem:[#allocation9 + $0x20] sm:$0xf]  ;;  %v3066_v43 = vld [vmem:[#allocation9 + $0x24] sm:$0xff] }
  0xaa   : > { %3543 = vst [vmem:[#allocation33_spill] sm:$0xff] %v3064_v42  ;;  %v3068_v44 = vld [vmem:[#allocation9 + $0x2c] sm:$0xf]  ;;  %v3070_v45 = vld [vmem:[#allocation9 + $0x30] sm:$0xff]  ;;  %v3072_v46 = vld [vmem:[#allocation9 + $0x38] sm:$0xf] }
  0xab   : > { %3544 = vst [vmem:[#allocation34_spill] sm:$0xff] %v3068_v44  ;;  %3545 = vst [vmem:[#allocation35_spill] sm:$0xff] %v3070_v45  ;;  %v3074_v47 = vld [vmem:[#allocation9 + $0x3c] sm:$0xff]  ;;  %v3076_v48 = vld [vmem:[#allocation9 + $0x44] sm:$0xf] }
  0xac   : > { %3546 = vst [vmem:[#allocation36_spill] sm:$0xff] %v3072_v46  ;;  %3547 = vst [vmem:[#allocation37_spill] sm:$0xff] %v3074_v47  ;;  %v3078_v49 = vld [vmem:[#allocation9 + $0x48] sm:$0xff]  ;;  %v3080_v50 = vld [vmem:[#allocation9 + $0x50] sm:$0xf] }
  0xad   : > { %3548 = vst [vmem:[#allocation38_spill] sm:$0xff] %v3076_v48  ;;  %3549 = vst [vmem:[#allocation39_spill] sm:$0xff] %v3078_v49  ;;  %v3082_v51 = vld [vmem:[#allocation9 + $0x54] sm:$0xff]  ;;  %v3084_v52 = vld [vmem:[#allocation9 + $0x5c] sm:$0xf] }
  0xae   : > { %3550 = vst [vmem:[#allocation40_spill] sm:$0xff] %v3080_v50  ;;  %3551 = vst [vmem:[#allocation41_spill] sm:$0xff] %v3082_v51  ;;  %v3086_v53 = vld [vmem:[#allocation9 + $0x60] sm:$0xff]  ;;  %v3088_v54 = vld [vmem:[#allocation9 + $0x68] sm:$0xf] }
  0xaf   : > { %3552 = vst [vmem:[#allocation42_spill] sm:$0xff] %v3084_v52  ;;  %3553 = vst [vmem:[#allocation43_spill] sm:$0xff] %v3086_v53  ;;  %v3090_v55 = vld [vmem:[#allocation9 + $0x6c] sm:$0xff]  ;;  %v3092_v56 = vld [vmem:[#allocation9 + $0x74] sm:$0xf] }
  0xb0   : > { %3554 = vst [vmem:[#allocation44_spill] sm:$0xff] %v3088_v54  ;;  %3555 = vst [vmem:[#allocation45_spill] sm:$0xff] %v3090_v55  ;;  %v3094_v57 = vld [vmem:[#allocation9 + $0x78] sm:$0xff]  ;;  %v3096_v58 = vld [vmem:[#allocation9 + $0x80] sm:$0xf] }
  0xb1   : > { %3556 = vst [vmem:[#allocation46_spill] sm:$0xff] %v3092_v56  ;;  %3557 = vst [vmem:[#allocation47_spill] sm:$0xff] %v3094_v57  ;;  %v3098_v59 = vld [vmem:[#allocation9 + $0x84] sm:$0xff]  ;;  %v3100_v60 = vld [vmem:[#allocation9 + $0x8c] sm:$0xf] }
  0xb2   : > { %3558 = vst [vmem:[#allocation48_spill] sm:$0xff] %v3096_v58  ;;  %3559 = vst [vmem:[#allocation49_spill] sm:$0xff] %v3098_v59  ;;  %v3102_v61 = vld [vmem:[#allocation9 + $0x90] sm:$0xff]  ;;  %v3104_v62 = vld [vmem:[#allocation9 + $0x98] sm:$0xf] }
  0xb3   : > { %3560 = vst [vmem:[#allocation50_spill] sm:$0xff] %v3100_v60  ;;  %3561 = vst [vmem:[#allocation51_spill] sm:$0xff] %v3102_v61  ;;  %v3106_v63 = vld [vmem:[#allocation9 + $0x9c] sm:$0xff]  ;;  %v3108_v1 = vld [vmem:[#allocation9 + $0xa4] sm:$0xf] }
  0xb4   : > { %3562 = vst [vmem:[#allocation52_spill] sm:$0xff] %v3104_v62  ;;  %3563 = vst [vmem:[#allocation53_spill] sm:$0xff] %v3106_v63  ;;  %v3110_v0 = vld [vmem:[#allocation9 + $0xa8] sm:$0xff]  ;;  %v3112_v4 = vld [vmem:[#allocation9 + $0xb0] sm:$0xf] }
  0xb5   : > { %3564 = vst [vmem:[#allocation54_spill] sm:$0xff] %v3108_v1  ;;  %3565 = vst [vmem:[#allocation55_spill] sm:$0xff] %v3110_v0  ;;  %v3114_v3 = vld [vmem:[#allocation9 + $0xb4] sm:$0xff]  ;;  %v3116_v54 = vld [vmem:[#allocation9 + $0xbc] sm:$0xf] }
  0xb6   : > { %3566 = vst [vmem:[#allocation56_spill] sm:$0xff] %v3112_v4  ;;  %3567 = vst [vmem:[#allocation57_spill] sm:$0xff] %v3114_v3  ;;  %v2345_v58 = vld [vmem:[#allocation6 + $0x4] ss:$24 sps:$4 sm:$0xff]   ;;  %v2349_v57 = vld [vmem:[#allocation6] ss:$24 sps:$4 sm:$0xff]  }
  0xb7   : > { %3568 = vst [vmem:[#allocation58_spill] sm:$0xff] %v3116_v54  ;;  %v2347_v56 = vld [vmem:[#allocation6 + $0xc] ss:$24 sps:$4 sm:$0xff]   ;;  %v2350_v60 = vld [vmem:[#allocation6 + $0x8] ss:$24 sps:$4 sm:$0xff]   ;;  %776 = vmatprep.subr.bf16.mxu0 %v2345_v58 }
  0xb8   : > { %v2351_v61 = vld [vmem:[#allocation6 + $0x34] ss:$24 sps:$4 sm:$0xff]   ;;  %849 = vmatprep.subr.bf16.mxu1 %v2347_v56  ;;  %777 = vmatpush1.bf16.msra.mxu0 %v2349_v57  ;;  %v2355_v1 = vld [vmem:[#allocation6 + $0x30] ss:$24 sps:$4 sm:$0xff]   ;;  %v2357_v0 = vld [vmem:[#allocation6 + $0x64] ss:$24 sps:$4 sm:$0xff]  }
  0xb9   : > { %v2353_v62 = vld [vmem:[#allocation6 + $0x3c] ss:$24 sps:$4 sm:$0xff]   ;;  %850 = vmatpush1.bf16.msra.mxu1 %v2350_v60  ;;  %778 = vmatprep.subr.bf16.mxu0 %v2351_v61  ;;  %v2356_v63 = vld [vmem:[#allocation6 + $0x38] ss:$24 sps:$4 sm:$0xff]   ;;  %v2359_v4 = vld [vmem:[#allocation6 + $0x6c] ss:$24 sps:$4 sm:$0xff]  }
  0xba   : > { %851 = vmatprep.subr.bf16.mxu1 %v2353_v62  ;;  %v2361_v59 = vld [vmem:[#allocation6 + $0x60] ss:$24 sps:$4 sm:$0xff]   ;;  %v2363_v54 = vld [vmem:[#allocation6 + $0x94] ss:$24 sps:$4 sm:$0xff]   ;;  %v2367_v58 = vld [vmem:[#allocation6 + $0x90] ss:$24 sps:$4 sm:$0xff]  }
  0xbb   : > { %v2362_v3 = vld [vmem:[#allocation6 + $0x68] ss:$24 sps:$4 sm:$0xff]   ;;  %v2365_v50 = vld [vmem:[#allocation6 + $0x9c] ss:$24 sps:$4 sm:$0xff]   ;;  %v2368_v56 = vld [vmem:[#allocation6 + $0x98] ss:$24 sps:$4 sm:$0xff]  }
  0xbc   : > { %779 = vmatpush1.bf16.msra.mxu0 %v2355_v1  ;;  %v2369_v57 = vld [vmem:[#allocation6 + $0xc4] ss:$24 sps:$4 sm:$0xff]   ;;  %v2373_v61 = vld [vmem:[#allocation6 + $0xc0] ss:$24 sps:$4 sm:$0xff]   ;;  %v2375_v1 = vld [vmem:[#allocation6 + $0xf4] ss:$24 sps:$4 sm:$0xff]  }
  0xbd   : > { %852 = vmatpush1.bf16.msra.mxu1 %v2356_v63  ;;  %780 = vmatprep.subr.bf16.mxu0 %v2357_v0  ;;  %v2371_v60 = vld [vmem:[#allocation6 + $0xcc] ss:$24 sps:$4 sm:$0xff]   ;;  %v2374_v62 = vld [vmem:[#allocation6 + $0xc8] ss:$24 sps:$4 sm:$0xff]   ;;  %v2377_v63 = vld [vmem:[#allocation6 + $0xfc] ss:$24 sps:$4 sm:$0xff]  }
  0xbe   : > { %853 = vmatprep.subr.bf16.mxu1 %v2359_v4  ;;  %v2379_v0 = vld [vmem:[#allocation6 + $0xf0] ss:$24 sps:$4 sm:$0xff]  }
  0xbf   : > { %v2380_v4 = vld [vmem:[#allocation6 + $0xf8] ss:$24 sps:$4 sm:$0xff]  }
  0xc0   : > { %781 = vmatpush1.bf16.msra.mxu0 %v2361_v59  ;;  %v2381_v59 = vld [vmem:[#allocation6 + $0x124] ss:$24 sps:$4 sm:$0xff]  }
  0xc1   : > { %854 = vmatpush1.bf16.msra.mxu1 %v2362_v3  ;;  %782 = vmatprep.subr.bf16.mxu0 %v2363_v54  ;;  %v2383_v3 = vld [vmem:[#allocation6 + $0x12c] ss:$24 sps:$4 sm:$0xff]   ;;  %v2385_v54 = vld [vmem:[#allocation6 + $0x120] ss:$24 sps:$4 sm:$0xff]  }
  0xc2   : > { %855 = vmatprep.subr.bf16.mxu1 %v2365_v50  ;;  %v2386_v50 = vld [vmem:[#allocation6 + $0x128] ss:$24 sps:$4 sm:$0xff]  }
  0xc4   : > { %783 = vmatpush1.bf16.msra.mxu0 %v2367_v58  ;;  %v2387_v58 = vld [vmem:[#allocation6 + $0x154] ss:$24 sps:$4 sm:$0xff]  }
  0xc5   : > { %856 = vmatpush1.bf16.msra.mxu1 %v2368_v56  ;;  %784 = vmatprep.subr.bf16.mxu0 %v2369_v57  ;;  %v2389_v56 = vld [vmem:[#allocation6 + $0x15c] ss:$24 sps:$4 sm:$0xff]   ;;  %v2391_v57 = vld [vmem:[#allocation6 + $0x150] ss:$24 sps:$4 sm:$0xff]  }
  0xc6   : > { %857 = vmatprep.subr.bf16.mxu1 %v2371_v60  ;;  %v2392_v60 = vld [vmem:[#allocation6 + $0x158] ss:$24 sps:$4 sm:$0xff]  }
  0xc8   : > { %785 = vmatpush1.bf16.msra.mxu0 %v2373_v61  ;;  %v2396_v61 = vld [vmem:[#allocation6 + $0x14] ss:$24 sps:$4 sm:$0xff]  }
  0xc9   : > { %858 = vmatpush1.bf16.msra.mxu1 %v2374_v62  ;;  %786 = vmatprep.subr.bf16.mxu0 %v2375_v1  ;;  %v3119_v62 = vld [vmem:[%s2945_s30] sm:$0xff]   ;;  %v2394_v1 = vld [vmem:[#allocation6 + $0x10] ss:$24 sps:$4 sm:$0xff]  }
  0xca   : > { %859 = vmatprep.subr.bf16.mxu1 %v2377_v63  ;;  %v2399_v63 = vld [vmem:[#allocation6 + $0x44] ss:$24 sps:$4 sm:$0xff]  }
  0xcc   : > { %787 = vmatpush1.bf16.msra.mxu0 %v2379_v0  ;;  %v2397_v0 = vld [vmem:[#allocation6 + $0x40] ss:$24 sps:$4 sm:$0xff]  }
  0xcd   : > { %860 = vmatpush1.bf16.msra.mxu1 %v2380_v4  ;;  %788 = vmatprep.subr.bf16.mxu0 %v2381_v59  ;;  %v2403_v4 = vld [vmem:[#allocation6 + $0x74] ss:$24 sps:$4 sm:$0xff]   ;;  %v3569_v59 = vmov 0  }
  0xce   : > { %861 = vmatprep.subr.bf16.mxu1 %v2383_v3  ;;  %v2400_v3 = vld [vmem:[%s2945_s30 + $0x8] sm:$0xff]  }
  0xd0   : > { %789 = vmatpush1.bf16.msra.mxu0 %v2385_v54  ;;  %v2401_v54 = vld [vmem:[#allocation6 + $0x70] ss:$24 sps:$4 sm:$0xff]  }
  0xd1   : > { %862 = vmatpush1.bf16.msra.mxu1 %v2386_v50  ;;  %790 = vmatprep.subr.bf16.mxu0 %v2387_v58  ;;  %v2406_v50 = vld [vmem:[#allocation6 + $0xa4] ss:$24 sps:$4 sm:$0xff]   ;;  %v2404_v58 = vld [vmem:[#allocation6 + $0xa0] ss:$24 sps:$4 sm:$0xff]  }
  0xd2   : > { %863 = vmatprep.subr.bf16.mxu1 %v2389_v56  ;;  %v2410_v56 = vld [vmem:[#allocation6 + $0xd4] ss:$24 sps:$4 sm:$0xff]  }
  0xd4   : > { %791 = vmatpush1.bf16.msra.mxu0 %v2391_v57  ;;  %v2407_v57 = vld [vmem:[%s2945_s30 + $0x10] sm:$0xff]  }
  0xd5   : > { %864 = vmatpush1.bf16.msra.mxu1 %v2392_v60  ;;  %922 = vmatprep.subr.bf16.mxu0 %v2396_v61  ;;  %v2408_v60 = vld [vmem:[#allocation6 + $0xd0] ss:$24 sps:$4 sm:$0xff]  }
  0xd6   : > { %2208 = vmatprep.subr.bf16.mxu1 %v2396_v61  ;;  %v2413_v61 = vld [vmem:[#allocation6 + $0x104] ss:$24 sps:$4 sm:$0xff]  }
  0xd7   : > { %809 = vmatmul.mubr.bf16.vlgmr.msra.gmra.mrb[0].mxu0 %v3119_v62 }
  0xd8   : > { %882 = vmatmul.mubr.bf16.vlgmr.msra.gmra.mrb[0].mxu1 %v3119_v62  ;;  %923 = vmatpush1.bf16.msra.mxu0 %v2394_v1 }
  0xd9   : > { %2216 = vmatpush1.bf16.msra.mxu1 %v2394_v1  ;;  %924 = vmatprep.subr.bf16.mxu0 %v2399_v63  ;;  %v2411_v1 = vld [vmem:[#allocation6 + $0x100] ss:$24 sps:$4 sm:$0xff]  }
  0xda   : > { %2209 = vmatprep.subr.bf16.mxu1 %v2399_v63  ;;  %818 = vmatprep.mubr.bf16.mxu0 %v3569_v59  ;;  %v2417_v63 = vld [vmem:[#allocation6 + $0x134] ss:$24 sps:$4 sm:$0xff]  }
  0xdb   : > { %891 = vmatprep.mubr.bf16.mxu1 %v3569_v59 }
  0xdc   : > { %925 = vmatpush1.bf16.msra.mxu0 %v2397_v0 }
  0xdd   : > { %2217 = vmatpush1.bf16.msra.mxu1 %v2397_v0  ;;  %926 = vmatprep.subr.bf16.mxu0 %v2403_v4  ;;  %v2414_v0 = vld [vmem:[%s2945_s30 + $0x18] sm:$0xff]  }
  0xde   : > { %2210 = vmatprep.subr.bf16.mxu1 %v2403_v4  ;;  %v2415_v4 = vld [vmem:[#allocation6 + $0x130] ss:$24 sps:$4 sm:$0xff]  }
  0xdf   : > { %819 = vmatmul.mubr.bf16.gmra.mrb[4].mxu0 %v2400_v3 }
  0xe0   : > { %892 = vmatmul.mubr.bf16.gmra.mrb[4].mxu1 %v2400_v3  ;;  %927 = vmatpush1.bf16.msra.mxu0 %v2401_v54 }
  0xe1   : > { %2218 = vmatpush1.bf16.msra.mxu1 %v2401_v54  ;;  %928 = vmatprep.subr.bf16.mxu0 %v2406_v50  ;;  %v2420_v54 = vld [vmem:[#allocation6 + $0x164] ss:$24 sps:$4 sm:$0xff]  }
  0xe2   : > { %2211 = vmatprep.subr.bf16.mxu1 %v2406_v50  ;;  %828 = vmatprep.mubr.bf16.mxu0 %v3569_v59  ;;  %v2418_v50 = vld [vmem:[#allocation6 + $0x160] ss:$24 sps:$4 sm:$0xff]  }
  0xe3   : > { %901 = vmatprep.mubr.bf16.mxu1 %v3569_v59 }
  0xe4   : > { %929 = vmatpush1.bf16.msra.mxu0 %v2404_v58 }
  0xe5   : > { %2219 = vmatpush1.bf16.msra.mxu1 %v2404_v58  ;;  %930 = vmatprep.subr.bf16.mxu0 %v2410_v56  ;;  %v482_v58 = vlaneseq }
  0xe6   : > { %2212 = vmatprep.subr.bf16.mxu1 %v2410_v56 }
  0xe7   : > { %829 = vmatmul.mubr.bf16.gmra.mrb[8].mxu0 %v2407_v57  ;;  %v3137_v56 = vshrl.u32 %v482_v58, 7 }
  0xe8   : > { %902 = vmatmul.mubr.bf16.gmra.mrb[8].mxu1 %v2407_v57  ;;  %931 = vmatpush1.bf16.msra.mxu0 %v2408_v60 }
  0xe9   : > { %2220 = vmatpush1.bf16.msra.mxu1 %v2408_v60  ;;  %932 = vmatprep.subr.bf16.mxu0 %v2413_v61  ;;  %v484_v60 = vsub.s32 0, %v3137_v56 }
  0xea   : > { %2213 = vmatprep.subr.bf16.mxu1 %v2413_v61  ;;  %838 = vmatprep.mubr.bf16.mxu0 %v3569_v59  ;;  %v3143_v61 = vld [vmem:[%s3468_s3] sm:$0x3f] }
  0xeb   : > { %911 = vmatprep.mubr.bf16.mxu1 %v3569_v59 }
  0xec   : > { %933 = vmatpush1.bf16.msra.mxu0 %v2411_v1 }
  0xed   : > { %2221 = vmatpush1.bf16.msra.mxu1 %v2411_v1  ;;  %934 = vmatprep.subr.bf16.mxu0 %v2417_v63  ;;  %v492_v1 = vsub.s32 2, %v3137_v56 }
  0xee   : > { %2214 = vmatprep.subr.bf16.mxu1 %v2417_v63 }
  0xef   : > { %839 = vmatmul.mubr.bf16.gmra.mrb[12].mxu0 %v2414_v0 }
  0xf0   : > { %912 = vmatmul.mubr.bf16.gmra.mrb[12].mxu1 %v2414_v0  ;;  %935 = vmatpush1.bf16.msra.mxu0 %v2415_v4 }
  0xf1   : > { %2222 = vmatpush1.bf16.msra.mxu1 %v2415_v4  ;;  %936 = vmatprep.subr.bf16.mxu0 %v2420_v54 }
  0xf2   : > { %2215 = vmatprep.subr.bf16.mxu1 %v2420_v54  ;;  %954 = vmatprep.mubr.bf16.mxu0 %v3569_v59 }
  0xf3   : > { %974 = vmatprep.mubr.bf16.mxu1 %v3569_v59 }
  0xf4   : > { %937 = vmatpush1.bf16.msra.mxu0 %v2418_v50 }
  0xf5   : > { %2223 = vmatpush1.bf16.msra.mxu1 %v2418_v50 }
  0xf7   : > { %955 = vmatmul.mubr.bf16.vlgmr.msra.gmra.mrb[16].mxu0 %v3119_v62  ;;  %v488_v62 = vsub.s32 1, %v3137_v56 }
  0xf8   : > { %975 = vmatmul.mubr.bf16.vlgmr.msra.gmra.mrb[16].mxu1 %v2407_v57  ;;  %964 = vmatprep.mubr.bf16.mxu0 %v3569_v59  ;;  %v496_v57 = vsub.s32 3, %v3137_v56 }
  0xf9   : > { %984 = vmatprep.mubr.bf16.mxu1 %v3569_v59  ;;  %v3149_v59 = vrot.slane %v3143_v61, %v484_v60  ;;  %v3155_v63 = vrot.slane %v3143_v61, %v488_v62 }
  0xff   : > { %965 = vmatmul.mubr.bf16.gmra.mrb[20].mxu0 %v2400_v3  ;;  %v3152_v3 = vrot.slane %v3143_v61, %v492_v1 }
 0x100   : > { %985 = vmatmul.mubr.bf16.gmra.mrb[20].mxu1 %v2414_v0  ;;  %v3158_v0 = vrot.slane %v3143_v61, %v496_v57 }
 0x1aa   : > { %v810_v4 = vpop.f32.mrb[0].mxu0 }
 0x1ab   : > { %v811_v54 = vadd.f32 %v810_v4, %v3149_v59  ;;  %v883_v50 = vpop.f32.mrb[0].mxu1  ;;  %v812_v58 = vpop.f32.mrb[1].mxu0 }
 0x1ac   : > { %v884_v52 = vadd.f32 %v883_v50, %v3152_v3  ;;  %v813_v53 = vadd.f32 %v812_v58, %v3155_v63  ;;  %v885_v60 = vpop.f32.mrb[1].mxu1  ;;  %v814_v55 = vpop.f32.mrb[2].mxu0 }
 0x1ad   : > { %v886_v1 = vadd.f32 %v885_v60, %v3158_v0  ;;  %v815_v46 = vadd.f32 %v814_v55, %v3149_v59  ;;  %v887_v62 = vpop.f32.mrb[2].mxu1  ;;  %v816_v48 = vpop.f32.mrb[3].mxu0 }
 0x1ae   : > { %v2124_v49 = vpack.c.bf16 %v813_v53, %v811_v54  ;;  %v888_v57 = vadd.f32 %v887_v62, %v3152_v3  ;;  %v817_v51 = vadd.f32 %v816_v48, %v3155_v63  ;;  %v889_v4 = vpop.f32.mrb[3].mxu1 }
 0x1af   : > { %v2125_v42 = vpack.c.bf16 %v886_v1, %v884_v52  ;;  %v890_v44 = vadd.f32 %v889_v4, %v3158_v0 }
 0x1b0   : > { %1139 = vst [vmem:[#allocation2] sm:$0xff] %v2124_v49  ;;  %v2127_v50 = vpack.c.bf16 %v817_v51, %v815_v46 }
 0x1b1   : > { %1140 = vst [vmem:[#allocation2 + $0x8] sm:$0xff] %v2125_v42  ;;  %v2128_v58 = vpack.c.bf16 %v890_v44, %v888_v57 }
 0x1b2   : > { %1142 = vst [vmem:[#allocation2 + $0x18] sm:$0xff] %v2127_v50  ;;  %v820_v45 = vpop.f32.mrb[4].mxu0 }
 0x1b3   : > { %1143 = vst [vmem:[#allocation2 + $0x20] sm:$0xff] %v2128_v58  ;;  %v821_v55 = vadd.f32 %v820_v45, %v3149_v59  ;;  %v893_v60 = vpop.f32.mrb[4].mxu1  ;;  %v822_v47 = vpop.f32.mrb[5].mxu0 }
 0x1b4   : > { %v894_v53 = vadd.f32 %v893_v60, %v3152_v3  ;;  %v823_v54 = vadd.f32 %v822_v47, %v3155_v63  ;;  %v895_v48 = vpop.f32.mrb[5].mxu1  ;;  %v824_v62 = vpop.f32.mrb[6].mxu0 }
 0x1b5   : > { %v896_v52 = vadd.f32 %v895_v48, %v3158_v0  ;;  %v825_v49 = vadd.f32 %v824_v62, %v3149_v59  ;;  %v897_v46 = vpop.f32.mrb[6].mxu1  ;;  %v826_v42 = vpop.f32.mrb[7].mxu0 }
 0x1b6   : > { %v2130_v44 = vpack.c.bf16 %v823_v54, %v821_v55  ;;  %v898_v51 = vadd.f32 %v897_v46, %v3152_v3  ;;  %v827_v1 = vadd.f32 %v826_v42, %v3155_v63  ;;  %v899_v45 = vpop.f32.mrb[7].mxu1 }
 0x1b7   : > { %v2131_v57 = vpack.c.bf16 %v896_v52, %v894_v53  ;;  %v900_v4 = vadd.f32 %v899_v45, %v3158_v0 }
 0x1b8   : > { %1145 = vst [vmem:[#allocation2 + $0x30] sm:$0xff] %v2130_v44  ;;  %v2133_v50 = vpack.c.bf16 %v827_v1, %v825_v49 }
 0x1b9   : > { %1146 = vst [vmem:[#allocation2 + $0x38] sm:$0xff] %v2131_v57  ;;  %v2134_v47 = vpack.c.bf16 %v900_v4, %v898_v51 }
 0x1ba   : > { %1148 = vst [vmem:[#allocation2 + $0x48] sm:$0xff] %v2133_v50  ;;  %v830_v58 = vpop.f32.mrb[8].mxu0 }
 0x1bb   : > { %1149 = vst [vmem:[#allocation2 + $0x50] sm:$0xff] %v2134_v47  ;;  %v831_v60 = vadd.f32 %v830_v58, %v3149_v59  ;;  %v903_v48 = vpop.f32.mrb[8].mxu1  ;;  %v832_v62 = vpop.f32.mrb[9].mxu0 }
 0x1bc   : > { %v904_v55 = vadd.f32 %v903_v48, %v3152_v3  ;;  %v833_v54 = vadd.f32 %v832_v62, %v3155_v63  ;;  %v905_v46 = vpop.f32.mrb[9].mxu1  ;;  %v834_v42 = vpop.f32.mrb[10].mxu0 }
 0x1bd   : > { %v906_v53 = vadd.f32 %v905_v46, %v3158_v0  ;;  %v835_v52 = vadd.f32 %v834_v42, %v3149_v59  ;;  %v907_v49 = vpop.f32.mrb[10].mxu1  ;;  %v836_v44 = vpop.f32.mrb[11].mxu0 }
 0x1be   : > { %v2136_v51 = vpack.c.bf16 %v833_v54, %v831_v60  ;;  %v908_v1 = vadd.f32 %v907_v49, %v3152_v3  ;;  %v837_v45 = vadd.f32 %v836_v44, %v3155_v63  ;;  %v909_v57 = vpop.f32.mrb[11].mxu1  ;;  %v500_v60 = vsub.s32 4, %v3137_v56 }
 0x1bf   : > { %v2137_v4 = vpack.c.bf16 %v906_v53, %v904_v55  ;;  %v910_v50 = vadd.f32 %v909_v57, %v3158_v0  ;;  %v504_v44 = vsub.s32 5, %v3137_v56 }
 0x1c0   : > { %1151 = vst [vmem:[#allocation2 + $0x60] sm:$0xff] %v2136_v51  ;;  %v2139_v47 = vpack.c.bf16 %v837_v45, %v835_v52 }
 0x1c1   : > { %1152 = vst [vmem:[#allocation2 + $0x68] sm:$0xff] %v2137_v4  ;;  %v2140_v58 = vpack.c.bf16 %v910_v50, %v908_v1  ;;  %v505_v56 = vrot.slane %v3143_v61, %v504_v44 }
 0x1c2   : > { %1154 = vst [vmem:[#allocation2 + $0x78] sm:$0xff] %v2139_v47  ;;  %v840_v48 = vpop.f32.mrb[12].mxu0 }
 0x1c3   : > { %1155 = vst [vmem:[#allocation2 + $0x80] sm:$0xff] %v2140_v58  ;;  %v841_v62 = vadd.f32 %v840_v48, %v3149_v59  ;;  %v913_v46 = vpop.f32.mrb[12].mxu1  ;;  %v842_v42 = vpop.f32.mrb[13].mxu0 }
 0x1c4   : > { %v914_v54 = vadd.f32 %v913_v46, %v3152_v3  ;;  %v843_v49 = vadd.f32 %v842_v42, %v3155_v63  ;;  %v915_v55 = vpop.f32.mrb[13].mxu1  ;;  %v844_v53 = vpop.f32.mrb[14].mxu0  ;;  %v501_v46 = vrot.slane %v3143_v61, %v500_v60 }
 0x1c5   : > { %v916_v52 = vadd.f32 %v915_v55, %v3158_v0  ;;  %v845_v51 = vadd.f32 %v844_v53, %v3149_v59  ;;  %v917_v1 = vpop.f32.mrb[14].mxu1  ;;  %v846_v45 = vpop.f32.mrb[15].mxu0 }
 0x1c6   : > { %v2142_v57 = vpack.c.bf16 %v843_v49, %v841_v62  ;;  %v918_v4 = vadd.f32 %v917_v1, %v3152_v3  ;;  %v847_v50 = vadd.f32 %v846_v45, %v3155_v63  ;;  %v919_v47 = vpop.f32.mrb[15].mxu1 }
 0x1c7   : > { %v2143_v58 = vpack.c.bf16 %v916_v52, %v914_v54  ;;  %v920_v48 = vadd.f32 %v919_v47, %v3158_v0 }
 0x1c8   : > { %1157 = vst [vmem:[#allocation2 + $0x90] sm:$0xff] %v2142_v57  ;;  %v2145_v42 = vpack.c.bf16 %v847_v50, %v845_v51 }
 0x1c9   : > { %1158 = vst [vmem:[#allocation2 + $0x98] sm:$0xff] %v2143_v58  ;;  %v2146_v55 = vpack.c.bf16 %v920_v48, %v918_v4 }
 0x1ca   : > { %1160 = vst [vmem:[#allocation2 + $0xa8] sm:$0xff] %v2145_v42  ;;  %v956_v59 = vpop.f32.mrb[16].mxu0 }
 0x1cb   : > { %1161 = vst [vmem:[#allocation2 + $0xb0] sm:$0xff] %v2146_v55  ;;  %v957_v62 = vadd.f32 %v956_v59, %v501_v46  ;;  %v976_v49 = vpop.f32.mrb[16].mxu1  ;;  %v958_v3 = vpop.f32.mrb[17].mxu0 }
 0x1cc   : > { %v977_v53 = vadd.f32 %v976_v49, %v501_v46  ;;  %v959_v63 = vadd.f32 %v958_v3, %v505_v56  ;;  %v978_v1 = vpop.f32.mrb[17].mxu1  ;;  %v960_v54 = vpop.f32.mrb[18].mxu0 }
 0x1cd   : > { %v979_v52 = vadd.f32 %v978_v1, %v505_v56  ;;  %v961_v0 = vadd.f32 %v960_v54, %v501_v46  ;;  %v980_v45 = vpop.f32.mrb[18].mxu1  ;;  %v962_v60 = vpop.f32.mrb[19].mxu0 }
 0x1ce   : > { %v2126_v57 = vpack.c.bf16 %v959_v63, %v957_v62  ;;  %v981_v51 = vadd.f32 %v980_v45, %v501_v46  ;;  %v963_v50 = vadd.f32 %v962_v60, %v505_v56  ;;  %v982_v61 = vpop.f32.mrb[19].mxu1 }
 0x1cf   : > { %v2138_v44 = vpack.c.bf16 %v979_v52, %v977_v53  ;;  %v983_v4 = vadd.f32 %v982_v61, %v505_v56 }
 0x1d0   : > { %1141 = vst [vmem:[#allocation2 + $0x10] sm:$0xff] %v2126_v57  ;;  %v2129_v47 = vpack.c.bf16 %v963_v50, %v961_v0 }
 0x1d1   : > { %1153 = vst [vmem:[#allocation2 + $0x70] sm:$0xff] %v2138_v44  ;;  %v2141_v58 = vpack.c.bf16 %v983_v4, %v981_v51  ;;  %v3200_v4 = vmov 0.0  }
 0x1d2   : > { %1144 = vst [vmem:[#allocation2 + $0x28] sm:$0xff] %v2129_v47  ;;  %v966_v48 = vpop.f32.mrb[20].mxu0  ;;  %v3202_v47 = vmov 0.0  }
 0x1d3   : > { %1156 = vst [vmem:[#allocation2 + $0x88] sm:$0xff] %v2141_v58  ;;  %v967_v42 = vadd.f32 %v966_v48, %v501_v46  ;;  %v986_v55 = vpop.f32.mrb[20].mxu1  ;;  %v968_v59 = vpop.f32.mrb[21].mxu0 }
 0x1d4   : > { %v987_v49 = vadd.f32 %v986_v55, %v501_v46  ;;  %v969_v3 = vadd.f32 %v968_v59, %v505_v56  ;;  %v988_v1 = vpop.f32.mrb[21].mxu1  ;;  %v970_v54 = vpop.f32.mrb[22].mxu0 }
 0x1d5   : > { %v989_v62 = vadd.f32 %v988_v1, %v505_v56  ;;  %v971_v63 = vadd.f32 %v970_v54, %v501_v46  ;;  %v990_v45 = vpop.f32.mrb[22].mxu1  ;;  %v972_v53 = vpop.f32.mrb[23].mxu0 }
 0x1d6   : > { %v2132_v52 = vpack.c.bf16 %v969_v3, %v967_v42  ;;  %v991_v60 = vadd.f32 %v990_v45, %v501_v46  ;;  %v973_v0 = vadd.f32 %v972_v53, %v505_v56  ;;  %v992_v57 = vpop.f32.mrb[23].mxu1 }
 0x1d7   : > { %v2144_v51 = vpack.c.bf16 %v989_v62, %v987_v49  ;;  %v993_v50 = vadd.f32 %v992_v57, %v505_v56 }
 0x1d8   : > { %1147 = vst [vmem:[#allocation2 + $0x40] sm:$0xff] %v2132_v52  ;;  %v2135_v61 = vpack.c.bf16 %v973_v0, %v971_v63 }
 0x1d9   : > { %1159 = vst [vmem:[#allocation2 + $0xa0] sm:$0xff] %v2144_v51  ;;  %v2147_v44 = vpack.c.bf16 %v993_v50, %v991_v60 }
 0x1da   : > { %1150 = vst [vmem:[#allocation2 + $0x58] sm:$0xff] %v2135_v61 }
 0x1db   : > { %1162 = vst [vmem:[#allocation2 + $0xb8] sm:$0xff] %v2147_v44 }
 0x1dc LB: >> { %v3570_v9 = vld [vmem:[#allocation31_spill] sm:$0xff]  ;;  %v3571_v7 = vld [vmem:[#allocation29_spill] sm:$0xff]  ;;  %v3573_v2 = vld [vmem:[#allocation24_spill] sm:$0xff]  ;;  %v2068_v55 = vcombine.high %v3006_v13, %v3010_v15  ;;  %v2701_v59 = vmov 0.0   ;;  %v2702_v3 = vmov 0   ;;  %v2067_v1 = vcombine.low %v3006_v13, %v3010_v15  ;;  %s3245_s25 = ssub.s32 7, %s2686_s24  ;;  %v2678_v4 = vphi %v3200_v4, %v3605_v4   ;;  %s2686_s24 = sphi %s3204_s24, %s1254_s24   ;;  %v2682_v47 = vphi %v3202_v47, %v3606_v47  }
 0x1dd   : >> { %v3572_v5 = vld [vmem:[#allocation27_spill] sm:$0xff]  ;;  %v2065_v58 = vcombine.high %v3570_v9, %v3002_v11  ;;  %v2064_v48 = vcombine.low %v3570_v9, %v3002_v11  ;;  %v3574_v8 = vld [vmem:[#allocation30_spill] sm:$0xff]  ;;  %v3575_v6 = vld [vmem:[#allocation28_spill] sm:$0xff]  ;;  %2168 = vmatprep.subr.bf16.mxu1 %v2701_v59  ;;  %1419 = vmatprep.mubr.bf16.mxu0 %v2702_v3  ;;  %v2071_v54 = vcombine.high %v3014_v17, %v3018_v19  ;;  %vm2703_vm0 = vmmov 0   ;;  %s2148_s9 = smul.u32 24, %s2686_s24  ;;  %s2115_s14 = sshll.u32 %s2686_s24, 3 }
 0x1de   : >> { %v2062_v46 = vcombine.high %v3572_v5, %v3571_v7  ;;  %v2061_v56 = vcombine.low %v3572_v5, %v3571_v7  ;;  %v2063_v42 = vcombine.low %v3575_v6, %v3574_v8  ;;  %v3576_v10 = vld [vmem:[#allocation32_spill] sm:$0xff]  ;;  %2421 = vset.pattern.permute.xlu0 %v2702_v3  ;;  %v2069_v62 = vcombine.low %v3008_v14, %v3012_v16  ;;  %s2149_s23 = smul.u32 24, %s3245_s25  ;;  %s1743_s26 = scalar_lea.vmem %s2965_s29, %s2115_s14 [#allocation11] }
 0x1df   : >> { %v2066_v49 = vcombine.low %v3576_v10, %v3004_v12  ;;  %v2070_v63 = vcombine.low %v3014_v17, %v3018_v19  ;;  %2184 = vmatprep.mubr.msk.bf16.mxu1 %vm2703_vm0, %v2701_v59  ;;  %v2074_v45 = vcombine.high %v3022_v21, %v3026_v23  ;;  %v2072_v53 = vcombine.low %v3016_v18, %v3020_v20  ;;  %s1680_s30 = scalar_lea.vmem [#allocation2], %s2148_s9  ;;  %s2116_s22 = sshll.u32 %s3245_s25, 3 }
 0x1e0   : >> { %1387 = vmatprep.subr.bf16.mxu0 %v2062_v46  ;;  %2169 = vmatpush3.bf16.msra.mxu1 %v2063_v42  ;;  %v1738_v52 = vstv %s2686_s24  ;;  %v1740_v60 = vstv %s3245_s25  ;;  %v2073_v0 = vcombine.low %v3022_v21, %v3026_v23  ;;  %v2077_v57 = vcombine.high %v3030_v25, %v3034_v27  ;;  %s3350_s20 = scalar_lea.vmem [#allocation2], %s2149_s23  ;;  %s1754_s16 = scalar_lea.vmem %s2965_s29, %s2116_s22 [#allocation11] }
 0x1e1   : >> { %1388 = vmatpush1.bf16.msra.mxu0 %v2061_v56  ;;  %2170 = vmatprep.subr.bf16.mxu1 %v2701_v59  ;;  %vm1739_vm1 = vcmp.lt.s32.totalorder %v1738_v52, %v3573_v2  ;;  %vm1741_vm2 = vcmp.lt.s32.totalorder %v1740_v60, %v3573_v2  ;;  %v2075_v50 = vcombine.low %v3024_v22, %v3028_v24  ;;  %v3577_v52 = vld [vmem:[#allocation37_spill] sm:$0xff]  ;;  %v3578_v60 = vld [vmem:[#allocation35_spill] sm:$0xff]  ;;  %s1254_s24 = sadd.s32 1, %s2686_s24  }
 0x1e2   : >> { %1389 = vmatprep.subr.bf16.mxu0 %v2065_v58  ;;  %v1745_v51 = vsel %vm1739_vm1, 1, %v2702_v3  ;;  %v1756_v61 = vsel %vm1741_vm2, 1, %v2702_v3  ;;  %v2076_v44 = vcombine.low %v3030_v25, %v3034_v27  ;;  %v2080_v46 = vcombine.high %v3038_v29, %v3042_v31  ;;  %p1251_p1 = scmp.ge.s32.totalorder %s1254_s24, 8  }
 0x1e3   : >> { %1747 = vperm.xlu0 %2421, %v1745_v51   ;;  %v2078_v56 = vcombine.low %v3032_v26, %v3036_v28  ;;  %v2079_v58 = vcombine.low %v3038_v29, %v3042_v31  ;;  %v2081_v42 = vcombine.low %v3040_v30, %v3044_v32  ;;  %v3580_v51 = vld [vmem:[#allocation33_spill] sm:$0xff]  ;;  %s3607_s19 = sld [smem:[#allocation22_spill]] (%p1251_p1)  ;;  %s2120_s28 = sshll.u32 (%p1251_p1), %s2780_s13, 7 }
 0x1e4   : >> { %2171 = vmatpush3.bf16.msra.mxu1 %v2066_v49  ;;  %v2086_v49 = vcombine.high %v3054_v37, %v3058_v39  ;;  %s3608_s18 = sld [smem:[#allocation60_spill]] (%p1251_p1)  ;;  %s1787_s21 = sshll.u32 (%p1251_p1), %s2965_s29, 4  ;;  %s3381_s21 = int_to_ptr.vmem [resolvable:$true] %s1787_s21 }
 0x1e5   : >> { %1390 = vmatpush1.bf16.msra.mxu0 %v2064_v48  ;;  %2172 = vmatprep.subr.bf16.mxu1 %v2701_v59  ;;  %v2083_v48 = vcombine.high %v3046_v33, %v3050_v35  ;;  %s1770_s24 = scalar_lea.sflag (%p1251_p1), [#allocation5], %s2941_s27  ;;  %s2556_s25 = scalar_lea.vmem (%p1251_p1), %s3381_s21, 1024 }
 0x1e6   : >> { %1391 = vmatprep.subr.bf16.mxu0 %v2068_v55  ;;  %v2082_v55 = vcombine.low %v3046_v33, %v3050_v35  ;;  %p2557_p0 = scmp.ne.s32.totalorder (%p1251_p1), %s3381_s21, %s2556_s25  ;;  %s2704_s9 = smov (%p1251_p1), [#allocation11]  }
 0x1e7   : >> { %1758 = vperm.xlu0 %2421, %v1756_v61   ;;  %v2091_v61 = vcombine.low %v3578_v60, %v3577_v52 }
 0x1e8   : >> { %2173 = vmatpush3.bf16.msra.mxu1 %v2069_v62  ;;  %v2085_v62 = vcombine.low %v3054_v37, %v3058_v39 }
 0x1e9   : >> { %1392 = vmatpush1.bf16.msra.mxu0 %v2067_v1  ;;  %2174 = vmatprep.subr.bf16.mxu1 %v2701_v59  ;;  %v2084_v1 = vcombine.low %v3048_v34, %v3052_v36  ;;  %p3609_p7 = scmp.ne.s32.totalorder (%p1251_p1), %s3607_s19, 0 }
 0x1ea   : >> { %1393 = vmatprep.subr.bf16.mxu0 %v2071_v54  ;;  %v1258_v54 = vpack.c.bf16 %v2682_v47, %v2682_v47  ;;  %s3378_s8 = scalar_lea.hbm (%p1251_p1), %s3608_s18, %s2120_s28 }
 0x1eb   : > { %p2558_p8 = pnand (%p1251_p1), %p2557_p0, %p3609_p7 }
 0x1ec   : >> { %2175 = vmatpush3.bf16.msra.mxu1 %v2072_v53  ;;  %v2088_v53 = vcombine.low %v3062_v41, %v3066_v43 }
 0x1ed   : >> { %1394 = vmatpush1.bf16.msra.mxu0 %v2070_v63  ;;  %2176 = vmatprep.subr.bf16.mxu1 %v2701_v59  ;;  %v2089_v63 = vcombine.high %v3062_v41, %v3066_v43  ;;  %p2559_p5 = pneg (%p1251_p1), %p2558_p8 }
 0x1ee   : >> { %1395 = vmatprep.subr.bf16.mxu0 %v2074_v45  ;;  %v2087_v45 = vcombine.low %v3056_v38, %v3060_v40 }
 0x1f0   : >> { %2177 = vmatpush3.bf16.msra.mxu1 %v2075_v50 }
 0x1f1   : >> { %1396 = vmatpush1.bf16.msra.mxu0 %v2073_v0  ;;  %2178 = vmatprep.subr.bf16.mxu1 %v2701_v59  ;;  %v2092_v0 = vcombine.high %v3578_v60, %v3577_v52 }
 0x1f2   : >> { %1397 = vmatprep.subr.bf16.mxu0 %v2077_v57  ;;  %v3579_v57 = vld [vmem:[#allocation34_spill] sm:$0xff] }
 0x1f3   : >> { %v2090_v50 = vcombine.low %v3580_v51, %v3579_v57  ;;  %v3591_v51 = vld [vmem:[#allocation46_spill] sm:$0xff] }
 0x1f4   : >> { %2179 = vmatpush3.bf16.msra.mxu1 %v2078_v56  ;;  %v3583_v56 = vld [vmem:[#allocation38_spill] sm:$0xff] }
 0x1f5   : >> { %1398 = vmatpush1.bf16.msra.mxu0 %v2076_v44  ;;  %2180 = vmatprep.subr.bf16.mxu1 %v2701_v59  ;;  %v3582_v44 = vld [vmem:[#allocation39_spill] sm:$0xff] }
 0x1f6   : >> { %1399 = vmatprep.subr.bf16.mxu0 %v2080_v46 }
 0x1f8   : >> { %2181 = vmatpush3.bf16.msra.mxu1 %v2081_v42 }
 0x1f9   : >> { %1400 = vmatpush1.bf16.msra.mxu0 %v2079_v58  ;;  %2182 = vmatprep.subr.bf16.mxu1 %v2701_v59  ;;  %v3584_v58 = vld [vmem:[#allocation36_spill] sm:$0xff] }
 0x1fa   : >> { %1401 = vmatprep.subr.bf16.mxu0 %v2083_v48  ;;  %v2093_v48 = vcombine.low %v3584_v58, %v3583_v56  ;;  %v3593_v56 = vld [vmem:[#allocation53_spill] sm:$0xff]  ;;  %v3594_v58 = vld [vmem:[#allocation51_spill] sm:$0xff] }
 0x1fc   : >> { %2183 = vmatpush3.bf16.msra.mxu1 %v2084_v1 }
 0x1fd   : >> { %1402 = vmatpush1.bf16.msra.mxu0 %v2082_v55  ;;  %2188 = vmatprep.subr.bf16.mxu1 %v2701_v59  ;;  %v3585_v55 = vld [vmem:[#allocation45_spill] sm:$0xff] }
 0x1fe   : >> { %1597 = vmatprep.subr.bf16.mxu0 %v2086_v49  ;;  %v3586_v49 = vld [vmem:[#allocation43_spill] sm:$0xff] }
 0x1ff   : >> { %2185 = vmatmul.mubr.bf16.vlgmr.msra.gmra.mrb[0].mxu1 %v1258_v54  ;;  %v2098_v1 = vcombine.high %v3586_v49, %v3585_v55 }
 0x200   : >> { %1420 = vmatmul.mubr.bf16.vlgmr.msra.gmra.mrb[0].mxu0 %v1258_v54  ;;  %2189 = vmatpush3.bf16.msra.mxu1 %v2087_v45  ;;  %v3587_v54 = vld [vmem:[#allocation42_spill] sm:$0xff]  ;;  %v2097_v45 = vcombine.low %v3586_v49, %v3585_v55 }
 0x201   : >> { %1598 = vmatpush1.bf16.msra.mxu0 %v2085_v62  ;;  %1629 = vmatprep.mubr.bf16.mxu0 %v2702_v3  ;;  %v3581_v3 = vld [vmem:[#allocation41_spill] sm:$0xff]  ;;  %v3588_v62 = vld [vmem:[#allocation40_spill] sm:$0xff] }
 0x202   : >> { %1599 = vmatprep.subr.bf16.mxu0 %v2089_v63  ;;  %2204 = vmatprep.mubr.msk.bf16.mxu1 %vm2703_vm0, %v2701_v59  ;;  %v2095_v46 = vcombine.high %v3582_v44, %v3581_v3  ;;  %v2094_v42 = vcombine.low %v3582_v44, %v3581_v3  ;;  %v2096_v63 = vcombine.low %v3588_v62, %v3587_v54 }
 0x203   : >> { %2190 = vmatprep.subr.bf16.mxu1 %v2701_v59  ;;  %v2103_v62 = vcombine.low %v3594_v58, %v3593_v56 }
 0x204   : >> { %2191 = vmatpush3.bf16.msra.mxu1 %v2090_v50  ;;  %v3592_v50 = vld [vmem:[#allocation44_spill] sm:$0xff] }
 0x205   : >> { %1600 = vmatpush1.bf16.msra.mxu0 %v2088_v53  ;;  %2192 = vmatprep.subr.bf16.mxu1 %v2701_v59  ;;  %v3589_v53 = vld [vmem:[#allocation49_spill] sm:$0xff] }
 0x206   : >> { %1601 = vmatprep.subr.bf16.mxu0 %v2092_v0  ;;  %v3590_v0 = vld [vmem:[#allocation47_spill] sm:$0xff] }
 0x207   : >> { %v2101_v57 = vcombine.high %v3590_v0, %v3589_v53 }
 0x208   : >> { %2193 = vmatpush3.bf16.msra.mxu1 %v2093_v48  ;;  %v2104_v48 = vcombine.high %v3594_v58, %v3593_v56 }
 0x209   : >> { %1602 = vmatpush1.bf16.msra.mxu0 %v2091_v61  ;;  %2194 = vmatprep.subr.bf16.mxu1 %v2701_v59  ;;  %v2099_v61 = vcombine.low %v3592_v50, %v3591_v51  ;;  %v3600_v50 = vld [vmem:[#allocation52_spill] sm:$0xff] }
 0x20a   : >> { %1603 = vmatprep.subr.bf16.mxu0 %v2095_v46  ;;  %v2100_v46 = vcombine.low %v3590_v0, %v3589_v53 }
 0x20c   : >> { %2195 = vmatpush3.bf16.msra.mxu1 %v2096_v63  ;;  %v3597_v63 = vld [vmem:[#allocation57_spill] sm:$0xff] }
 0x20d   : >> { %1604 = vmatpush1.bf16.msra.mxu0 %v2094_v42  ;;  %2196 = vmatprep.subr.bf16.mxu1 %v2701_v59  ;;  %v3595_v42 = vld [vmem:[#allocation50_spill] sm:$0xff] }
 0x20e   : >> { %1605 = vmatprep.subr.bf16.mxu0 %v2098_v1  ;;  %v3596_v1 = vld [vmem:[#allocation48_spill] sm:$0xff] }
 0x20f   : >> { %v2102_v54 = vcombine.low %v3596_v1, %v3595_v42  ;;  %v3602_v42 = vld [vmem:[#allocation56_spill] sm:$0xff] }
 0x210   : >> { %2197 = vmatpush3.bf16.msra.mxu1 %v2099_v61 }
 0x211   : >> { %1606 = vmatpush1.bf16.msra.mxu0 %v2097_v45  ;;  %2198 = vmatprep.subr.bf16.mxu1 %v2701_v59  ;;  %v3598_v45 = vld [vmem:[#allocation55_spill] sm:$0xff] }
 0x212   : >> { %1607 = vmatprep.subr.bf16.mxu0 %v2101_v57  ;;  %v2107_v51 = vcombine.high %v3598_v45, %v3597_v63  ;;  %v3599_v57 = vld [vmem:[#allocation54_spill] sm:$0xff]  ;;  %v2106_v61 = vcombine.low %v3598_v45, %v3597_v63 }
 0x213   : >> { %v2105_v0 = vcombine.low %v3600_v50, %v3599_v57 }
 0x214   : >> { %2199 = vmatpush3.bf16.msra.mxu1 %v2102_v54  ;;  %v1681_v54 = vld [vmem:[%s1680_s30] sm:$0xff] }
 0x215   : >> { %1608 = vmatpush1.bf16.msra.mxu0 %v2100_v46  ;;  %2200 = vmatprep.subr.bf16.mxu1 %v2701_v59  ;;  %v3601_v46 = vld [vmem:[#allocation58_spill] sm:$0xff]  ;;  %v1684_v50 = vunpack.c.h.bf16 %v1681_v54 }
 0x216   : >> { %1609 = vmatprep.subr.bf16.mxu0 %v2104_v48  ;;  %v2108_v1 = vcombine.low %v3602_v42, %v3601_v46  ;;  %v1468_v48 = vpack.c.bf16 %v2678_v4, %v2678_v4 }
 0x218   : >> { %2201 = vmatpush3.bf16.msra.mxu1 %v2105_v0 }
 0x219   : >> { %1610 = vmatpush1.bf16.msra.mxu0 %v2103_v62  ;;  %2202 = vmatprep.subr.bf16.mxu1 %v2701_v59  ;;  %v1683_v62 = vunpack.c.l.bf16 %v1681_v54  ;;  %v1682_v54 = vld [vmem:[%s1680_s30 + $0x8] sm:$0xf]  ;;  %s2560_s30 = sshll.u32 (%p1251_p1), %s2704_s9, 4  ;;  %s2561_s30 = int_to_ptr.vmem [resolvable:$false] %s2560_s30 }
 0x21a   : >> { %1611 = vmatprep.subr.bf16.mxu0 %v2107_v51  ;;  %s2562_s23 = scalar_lea.vmem (%p1251_p1), %s2561_s30, 2048  ;;  %p2563_p11 = scmp.lt.s32.totalorder (%p1251_p1), %s3381_s21, %s2561_s30 }
 0x21b   : > { %p2564_p12 = scmp.lt.s32.totalorder (%p1251_p1), %s2562_s23, %s2556_s25 }
 0x21c   : >> { %2203 = vmatpush3.bf16.msra.mxu1 %v2108_v1 }
 0x21d   : >> { %1612 = vmatpush1.bf16.msra.mxu0 %v2106_v61  ;;  %p2565_p4 = por (%p1251_p1), %p2564_p12, %p2563_p11 }
 0x21f   : >> { %2205 = vmatmul.mubr.bf16.vlgmr.msra.gmra.mrb[4].mxu1 %v1468_v48  ;;  %p2566_p6 = pnand (%p1251_p1), %p2565_p4, %p2559_p5 }
 0x220   : >> { %1630 = vmatmul.mubr.bf16.vlgmr.msra.gmra.mrb[4].mxu0 %v1468_v48 }
 0x2d2   : >> { %v1462_v46 = vpop.f32.mrb[0].mxu1 }
 0x2d3   : >> { %v1421_v57 = vpop.f32.mrb[0].mxu0  ;;  %v2186_v5 = vpop.f32.mrb[1].mxu1 }
 0x2d4   : >> { %v1694_v51 = vadd.f32 %v1683_v62, %v1421_v57  ;;  %v1423_v0 = vpop.f32.mrb[1].mxu0  ;;  %v1465_v59 = vpop.f32.mrb[2].mxu1  ;;  %v3603_v57 = vld [vmem:[#allocation25_spill] sm:$0xff]  ;;  %v1685_v5 = vunpack.c.l.bf16 %v1682_v54 }
 0x2d5   : >> { %v1425_v2 = vpop.f32.mrb[2].mxu0  ;;  %v1701_v6 = vadd.f32 %v1684_v50, %v1423_v0  ;;  %v2187_v61 = vpop.f32.mrb[3].mxu1  ;;  %v1708_v9 = vadd.f32 %v3603_v57, %v1462_v46 }
 0x2d6   : >> { %v2111_v42 = vmul.f32 -1.442695, %v1694_v51  ;;  %v1426_v3 = vpop.f32.mrb[3].mxu0  ;;  %v1689_v2 = vld [vmem:[%s3350_s20 + $0xc] sm:$0xff] }
 0x2d7   : >> { %v2112_v1 = vmul.f32 -1.442695, %v1701_v6  ;;  %v1691_v51 = vunpack.c.l.bf16 %v1689_v2 }
 0x2d8   : >> { %2422 = vpow2.f32 %v2111_v42  ;;  %v1692_v42 = vunpack.c.h.bf16 %v1689_v2 }
 0x2d9   : >> { %2424 = vpow2.f32 %v2112_v1 }
 0x2e2   : >> { %v2423_v48 = vpop.eup %2422 }
 0x2e3   : >> { %v1698_v7 = vadd.f32 1.0, %v2423_v48  ;;  %v2425_v8 = vpop.eup %2424 }
 0x2e4   : >> { %v1705_v62 = vadd.f32 1.0, %v2425_v8 }
 0x2e5   : >> { %2426 = vrcp.f32 %v1698_v7 }
 0x2e6   : >> { %2428 = vrcp.f32 %v1705_v62 }
 0x2ef   : >> { %v2427_v3 = vpop.eup %2426 }
 0x2f0   : >> { %v1709_v50 = vmul.f32 %v2427_v3, %v1708_v9  ;;  %v2429_v62 = vpop.eup %2428 }
 0x2f1   : >> { %v1712_v3 = vsub.f32 1.0, %v2429_v62 }
 0x2f2   : >> { %v1710_v6 = vadd.f32 %v1709_v50, %v1685_v5  ;;  %v1672_v61 = vpop.f32.mrb[4].mxu1  ;;  %v1748_v5 = vpop.permute.xlu0 %1747 }
 0x2f3   : >> { %v1631_v0 = vpop.f32.mrb[4].mxu0  ;;  %v2206_v48 = vpop.f32.mrb[5].mxu1  ;;  %vm1749_vm3 = vcmp.eq.s32.totalorder %v1748_v5, 1 }
 0x2f4   : >> { %2430 = vtanh.f32 %v1710_v6  ;;  %v1716_v7 = vadd.f32 %v1691_v51, %v1631_v0  ;;  %v1633_v59 = vpop.f32.mrb[5].mxu0  ;;  %v1675_v10 = vpop.f32.mrb[6].mxu1  ;;  %v1714_v51 = vmul.f32 %v2682_v47, %v2429_v62  ;;  %v1744_v6 = vld [vmem:[%s1743_s26] sm:$0xff] }
 0x2f5   : >> { %v1635_v8 = vpop.f32.mrb[6].mxu0  ;;  %v1723_v57 = vadd.f32 %v1692_v42, %v1633_v59  ;;  %v2207_v54 = vpop.f32.mrb[7].mxu1 }
 0x2f6   : >> { %v2113_v46 = vmul.f32 -1.442695, %v1716_v7  ;;  %v1636_v1 = vpop.f32.mrb[7].mxu0 }
 0x2f7   : >> { %v2114_v9 = vmul.f32 -1.442695, %v1723_v57  ;;  %v1690_v1 = vld [vmem:[%s3350_s20 + $0x14] sm:$0xf] }
 0x2f8   : >> { %2432 = vpow2.f32 %v2113_v46  ;;  %v3604_v57 = vld [vmem:[#allocation26_spill] sm:$0xff] }
 0x2f9   : >> { %2434 = vpow2.f32 %v2114_v9  ;;  %v1730_v54 = vadd.f32 %v3604_v57, %v1672_v61  ;;  %v1693_v9 = vunpack.c.l.bf16 %v1690_v1 }
 0x2fe   : >> { %v2431_v50 = vpop.eup %2430 }
 0x2ff   : >> { %v1713_v2 = vmul.f32 %v2431_v50, %v1712_v3 }
 0x301   : >> { %v1715_v0 = vadd.f32 %v1714_v51, %v1713_v2 }
 0x302   : >> { %v2433_v7 = vpop.eup %2432 }
 0x303   : >> { %v1720_v42 = vadd.f32 1.0, %v2433_v7  ;;  %v1750_v10 = vsel %vm1749_vm3, %v1715_v0, 0.0  ;;  %v1764_v59 = vsel %vm1749_vm3, %v1715_v0, %v2682_v47   ;;  %v2435_v46 = vpop.eup %2434  ;;  %v1759_v47 = vpop.permute.xlu0 %1758 }
 0x304   : >> { %v1751_v8 = vadd.f32 %v1750_v10, %v1744_v6  ;;  %v1727_v48 = vadd.f32 1.0, %v2435_v46  ;;  %vm1760_vm4 = vcmp.eq.s32.totalorder %v1759_v47, 1  ;;  %v3606_v47 = vmov %v1764_v59  ;;  %1766 = vst [vmem:[%s3198_s15] sm:$0xff] (%p1251_p1), %v1764_v59 }
 0x305   : >> { %2436 = vrcp.f32 %v1720_v42 }
 0x306   : >> { %1752 = vst [vmem:[%s1743_s26] sm:$0xff] %v1751_v8  ;;  %2438 = vrcp.f32 %v1727_v48 }
 0x30d   : >> { %v1755_v42 = vld [vmem:[%s1754_s16] sm:$0xff] }
 0x30f   : >> { %v2437_v62 = vpop.eup %2436 }
 0x310   : >> { %v1731_v5 = vmul.f32 %v2437_v62, %v1730_v54  ;;  %v2439_v50 = vpop.eup %2438 }
 0x311   : >> { %v1734_v2 = vsub.f32 1.0, %v2439_v50  ;;  %v1736_v0 = vmul.f32 %v2678_v4, %v2439_v50 }
 0x312   : >> { %v1732_v3 = vadd.f32 %v1731_v5, %v1693_v9 }
 0x314   : >> { %2440 = vtanh.f32 %v1732_v3 }
 0x31e   : >> { %v2441_v51 = vpop.eup %2440 }
 0x31f   : >> { %v1735_v6 = vmul.f32 %v2441_v51, %v1734_v2 }
 0x320   : > { %1253 = sbr.rel (!%p1251_p1) target bundleno = 476 (0x1dc), region = 141 }
 0x321   : >> { %v1737_v7 = vadd.f32 %v1736_v0, %v1735_v6 }
 0x323   : >> { %v1761_v10 = vsel %vm1760_vm4, %v1737_v7, 0.0  ;;  %v1765_v61 = vsel %vm1760_vm4, %v1737_v7, %v2678_v4  }
 0x324   : >> { %v1762_v8 = vadd.f32 %v1761_v10, %v1755_v42  ;;  %v3605_v4 = vmov %v1765_v61  ;;  %2117 = vst [vmem:[%s3198_s15 + $0x8] sm:$0xff] (%p1251_p1), %v1765_v61 }
 0x326   : >> { %1763 = vst [vmem:[%s1754_s16] sm:$0xff] %v1762_v8 }
 0x327   : > { %2569 = shalt.err (!%p2566_p6)
}
 0x328   : > { %s2570_s29 = scalar_lea.hbm %s3378_s8, 1024  ;;  %s2574_s26 = scalar_lea.hbm %s3608_s18, 2048 }
 0x329   : > { %p2571_p2 = scmp.ne.s32.totalorder %s3378_s8, %s2570_s29  ;;  %p2575_p9 = scmp.lt.u32.totalorder %s3378_s8, %s3608_s18 }
 0x32a   : > { %p2576_p10 = scmp.lt.u32.totalorder %s2574_s26, %s2570_s29  ;;  %p2578_p0 = scmp.lt.u32.totalorder %s2570_s29, %s3378_s8 }
 0x32b   : > { %p2572_p13 = pnand %p2571_p2, %p3609_p7 }
 0x32c   : > { %p2577_p1 = por %p2576_p10, %p2575_p9 }
 0x32d   : > { %p2573_p3 = pneg %p2572_p13 }
 0x32e   : > { %p2579_p8 = por %p2578_p0, %p2577_p1 }
 0x330   : > { %p2580_p5 = pnand %p2579_p8, %p2573_p3 }
 0x332   : > { %2583 = shalt.err (!%p2580_p5)
}
 0x333   : > { %s2705_s17 = smov 128   ;;  %s2706_s2 = smov 256  }
 0x334   : > { %s2707_s25 = smov 8   ;;  %s3610_s23 = sld [smem:[#allocation61_spill]] }
 0x335   : > { %2238 = dma.vmem_to_hbm [thread:$0]  (%p3609_p7), %s3381_s21, 1024, %s3378_s8, %s1770_s24, %s2705_s17, %s2706_s2, %s2707_s25  }
 0x336   : > { %s1802_s20 = sshll.u32 %s3198_s15, 4  ;;  %s1775_s14 = scalar_lea.sflag [#allocation13], %s2941_s27  ;;  %s3418_s20 = int_to_ptr.vmem [resolvable:$true] %s1802_s20 }
 0x337   : > { %s2584_s26 = scalar_lea.vmem %s3418_s20, 256  ;;  %s2708_s22 = smov [#allocation12]  }
 0x338   : > { %p2585_p11 = scmp.ne.s32.totalorder %s3418_s20, %s2584_s26  ;;  %s2588_s8 = sshll.u32 %s2708_s22, 4  ;;  %s2589_s8 = int_to_ptr.vmem [resolvable:$false] %s2588_s8 }
 0x339   : > { %s2590_s13 = scalar_lea.vmem %s2589_s8, 512  ;;  %p2591_p6 = scmp.lt.s32.totalorder %s3418_s20, %s2589_s8 }
 0x33a   : > { %s3415_s29 = scalar_lea.hbm %s3610_s23, %s2120_s28  ;;  %p2586_p12 = pnand %p2585_p11, %p3609_p7 }
 0x33b   : > { %p2592_p2 = scmp.lt.s32.totalorder %s2590_s13, %s2584_s26 }
 0x33c   : > { %p2587_p4 = pneg %p2586_p12 }
 0x33d   : > { %p2593_p13 = por %p2592_p2, %p2591_p6 }
 0x33f   : > { %p2594_p3 = pnand %p2593_p13, %p2587_p4 }
 0x341   : > { %2597 = shalt.err (!%p2594_p3)
}
 0x342   : > { %s2598_s15 = scalar_lea.hbm %s3415_s29, 256  ;;  %s2602_s24 = scalar_lea.hbm %s3610_s23, 512 }
 0x343   : > { %p2599_p9 = scmp.ne.s32.totalorder %s3415_s29, %s2598_s15  ;;  %p2603_p0 = scmp.lt.u32.totalorder %s3415_s29, %s3610_s23 }
 0x344   : > { %p2604_p8 = scmp.lt.u32.totalorder %s2602_s24, %s2598_s15  ;;  %p2606_p11 = scmp.lt.u32.totalorder %s2598_s15, %s3415_s29 }
 0x345   : > { %p2600_p10 = pnand %p2599_p9, %p3609_p7 }
 0x346   : > { %p2605_p5 = por %p2604_p8, %p2603_p0 }
 0x347   : > { %p2601_p1 = pneg %p2600_p10 }
 0x348   : > { %p2607_p12 = por %p2606_p11, %p2605_p5 }
 0x34a   : > { %p2608_p4 = pnand %p2607_p12, %p2601_p1 }
 0x34c   : > { %2611 = shalt.err (!%p2608_p4)
}
 0x34d   : > { %2239 = dma.vmem_to_hbm [thread:$0]  (%p3609_p7), %s3418_s20, 256, %s3415_s29, %s1775_s14, %s2705_s17, %s2706_s2, %s2707_s25  }
 0x34e PF: > { %s3611_s30 = sld [smem:[#allocation19_spill]]  ;;  %s3612_s26 = sld [smem:[#allocation23_spill]] }
 0x34f   : > { %p3614_p2 = scmp.ge.s32.totalorder %s2674_s12, 2 }
 0x354   : > { %s1817_s22 = sand.u32 1, %s3611_s30   ;;  %p3613_p6 = scmp.ne.s32.totalorder %s3612_s26, 0 }
 0x355   : > { %s1818_s8 = scalar_lea.sflag [#allocation5], %s1817_s22 }
 0x356   : > { %p2257_p13 = pnand %p3614_p2, %p3613_p6 }
 0x358   : > { %2653 = dma.done.wait (!%p2257_p13), %s1818_s8, 1024  }
 0x359   : > { %2655 = vsyncadd (!%p2257_p13), %s1818_s8, 4294966272  ;;  %s1827_s19 = scalar_lea.sflag [#allocation13], %s1817_s22 }
 0x35a   : > { %2657 = dma.done.wait (!%p2257_p13), %s1827_s19, 256  }
 0x35b   : > { %2659 = vsyncadd (!%p2257_p13), %s1827_s19, 4294967040  ;;  %s3615_s12 = sld [smem:[#allocation20_spill]]  ;;  %s3616_s27 = sld [smem:[#allocation21_spill]] }
 0x35c   : > { %s3617_s30 = smov %s2666_s10  ;;  %s3618_s10 = smov %s2670_s11 }
 0x361   : > { %p28_p7 = scmp.ge.s32.totalorder %s3615_s12, 4   ;;  %s3619_s11 = smov %s3616_s27 }
 0x363   :  { %30 = sbr.rel (!%p28_p7) target bundleno = 13 (0xd), region = 152 }
 0x36a   :  { %1832 = vsyncpa [#allocation4], 1 }
 0x36b   :  { %1834 = vsyncpa [#allocation4 + $0x1], 1 }
 0x36c   :  { %1835 = vsyncpa [#allocation7], 1 }
 0x36d   :  { %1836 = vsyncpa [#allocation10], 1 }
 0x36e   :  { %1837 = vsyncpa [#allocation5], 1 }
 0x36f   :  { %1839 = vsyncpa [#allocation5 + $0x1], 1 }
 0x370   :  { %1840 = vsyncpa [#allocation13], 1 }
 0x371   :  { %1842 = vsyncpa [#allocation13 + $0x1], 1 }

</bundles_post_ra>
